<compile_context>
chip_gen: v7x
topology: tpu7x:2x2x1
jax: 0.10.0
libtpu: 0.0.40
codegen_flags: <defaults>
</compile_context>

<pallas_src>
import numpy as np
import jax
import jax.numpy as jnp
from jax import lax
from jax.experimental import pallas as pl
from jax.experimental.pallas import tpu as pltpu

OUT_PAD = 128  # lane-dense output slab; real logits live in the first 10 lanes


# --------------------------------------------------------------------------
# Kernel: one grid step processes G images stacked along rows.
# --------------------------------------------------------------------------
def convnet2_kernel(x_ref, b1c_ref, bias1_ref, s1_ref, t1_ref,
                    b2c_ref, bias2_ref, s2_ref, t2_ref,
                    wf1_ref, bf1_ref, wf2_ref, bf2_ref, wf3_ref, bf3_ref,
                    out_ref, p1_ref):
    # x_ref:    (G*32, 96)    G images, rows = img*32 + h, lane = w*3 + c
    # b1c_ref:  (5, 96, 168)  conv1 block-banded weights (per kh)
    # bias1:    (1, 168)      conv1 bias tiled over output x positions
    # s1_ref:   (2, G*14, G*32-4) batched even/odd row selectors for pool1
    # t1_ref:   (2, 168, 84)  even/odd lane selectors for pool1
    # b2c_ref:  (5, 84, 160)  conv2 block-banded weights
    # bias2:    (1, 160)
    # s2_ref:   (2, G*5, G*14-4) pool2 row selectors (emit h-major rows h*G+g)
    # t2_ref:   (2, 160, 80)
    # wf1_ref:  (5, 80, 120)  fc1, PyTorch flatten order folded in
    # wf2_ref:  (120, 50), wf3_ref: (50, 128) (zero-padded)
    # out_ref:  (G, 128)
    # p1_ref:   (G*14, 84)    scratch: pooled conv1 maps (image-major rows)
    G = out_ref.shape[0]
    L1 = G * 32 - 4          # valid conv1 accumulator rows
    L2 = G * 14 - 4          # valid conv2 accumulator rows
    dot = lambda a, b: jnp.dot(a, b, preferred_element_type=jnp.float32)

    # ---- conv1 (3->6, k=5): 5 accumulating banded MXU matmuls, M = L1 -------
    acc1 = dot(x_ref[0:L1, :], b1c_ref[0])
    for kh in range(1, 5):
        acc1 = acc1 + dot(x_ref[kh:kh + L1, :], b1c_ref[kh])
    a1 = jnp.maximum(acc1 + bias1_ref[...], 0.0)                     # (L1, 168)
    # rows g*32 + h with h in [0,28) are valid; others are never selected.

    # ---- maxpool 2x2 via exact 0/1 selection matmuls + elementwise max ------
    rh1 = jnp.maximum(dot(s1_ref[0], a1), dot(s1_ref[1], a1))        # (G*14, 168)
    p1_ref[...] = jnp.maximum(dot(rh1, t1_ref[0]), dot(rh1, t1_ref[1]))  # (G*14, 84)

    # ---- conv2 (6->16, k=5): M = L2 ----------------------------------------
    acc2 = dot(p1_ref[0:L2, :], b2c_ref[0])
    for kh in range(1, 5):
        acc2 = acc2 + dot(p1_ref[kh:kh + L2, :], b2c_ref[kh])
    a2 = jnp.maximum(acc2 + bias2_ref[...], 0.0)                     # (L2, 160)

    # ---- maxpool 2x2; row selectors emit h-major rows (h*G + g) -------------
    rh2 = jnp.maximum(dot(s2_ref[0], a2), dot(s2_ref[1], a2))        # (G*5, 160)
    p2 = jnp.maximum(dot(rh2, t2_ref[0]), dot(rh2, t2_ref[1]))       # (G*5, 80)

    # ---- fc1 (400->120), batched over G images ------------------------------
    # p2[h*G:(h+1)*G] is the (G, 80) slab of pooled row h (aligned slices).
    accf = dot(p2[0:G, :], wf1_ref[0])
    for h in range(1, 5):
        accf = accf + dot(p2[h * G:(h + 1) * G, :], wf1_ref[h])
    h1 = jnp.maximum(accf + bf1_ref[...], 0.0)                       # (G, 120)

    # ---- fc2 (120->50) + ReLU, fc3 (50->10, lane-padded to 128) --------------
    h2 = jnp.maximum(dot(h1, wf2_ref[...]) + bf2_ref[...], 0.0)      # (G, 50)
    out_ref[...] = dot(h2, wf3_ref[...]) + bf3_ref[...]              # (G, 128)


# --------------------------------------------------------------------------
# Wrapper-side parameter preparation (pure layout work, done once)
# --------------------------------------------------------------------------
def banded_conv_weight(w, w_out):
    """w: (O, I, K, K) PyTorch OIHW.  Returns (K, I*w_in, O*w_out) block-banded
    matrices B[kh] such that for an input row laid out as lane = pos*I + c:
      (row @ B[kh])[x*O + o] = sum_{kw,c} in[x+kw, c] * w[o, c, kh, kw]."""
    O, I, K, _ = w.shape
    w_in = w_out + K - 1
    wt = jnp.transpose(w, (2, 3, 1, 0)).reshape(K, K * I, O)   # [kh, kw*I + c, o]
    b = jnp.zeros((K, I * w_in, O * w_out), jnp.float32)
    for x in range(w_out):
        b = b.at[:, I * x:I * (x + K), O * x:O * (x + 1)].set(wt)
    return b


def lane_pool_selectors(n, c):
    """0/1 matrices (2, n*c, (n//2)*c) implementing even/odd lane selection
    for 2x2 pooling along the lane layout pos*c + ch."""
    eye_n = np.eye(n, dtype=np.float32)
    eye_c = np.eye(c, dtype=np.float32)
    t = np.stack([np.kron(eye_n[:, 0::2], eye_c),
                  np.kron(eye_n[:, 1::2], eye_c)])
    return jnp.asarray(t)


def row_pool_selectors(G):
    """Batched even/odd row selectors for both pool stages.
    s1: (2, G*14, G*32-4)  rows g*14+h  pick conv1-acc rows g*32+2h (+1).
    s2: (2, G*5,  G*14-4)  rows h*G+g   pick conv2-acc rows g*14+2h (+1)
        (h-major ordering so the FC tail gets contiguous (G, 80) slabs)."""
    L1, L2 = G * 32 - 4, G * 14 - 4
    s1 = np.zeros((2, G * 14, L1), np.float32)
    s2 = np.zeros((2, G * 5, L2), np.float32)
    for g in range(G):
        for h in range(14):
            s1[0, g * 14 + h, g * 32 + 2 * h] = 1.0
            s1[1, g * 14 + h, g * 32 + 2 * h + 1] = 1.0
        for h in range(5):
            q = h * G + g
            s2[0, q, g * 14 + 2 * h] = 1.0
            s2[1, q, g * 14 + 2 * h + 1] = 1.0
    return jnp.asarray(s1), jnp.asarray(s2)


def prepare_params(params, group=8):
    w1, b1, w2, b2, fw1, fb1, fw2, fb2, fw3, fb3 = params
    b1c = banded_conv_weight(w1, 28)                       # (5, 96, 168)
    b2c = banded_conv_weight(w2, 10)                       # (5, 84, 160)
    bias1 = jnp.tile(b1, 28)[None, :]                      # (1, 168)
    bias2 = jnp.tile(b2, 10)[None, :]                      # (1, 160)
    s1, s2 = row_pool_selectors(group)
    t1 = lane_pool_selectors(28, 6)                        # (2, 168, 84)
    t2 = lane_pool_selectors(10, 16)                       # (2, 160, 80)
    # fc1: fold PyTorch's NCHW flatten order (c*25 + h*5 + w) into (h, w*16+c, n)
    wf1 = jnp.transpose(fw1.reshape(120, 16, 5, 5), (2, 3, 1, 0)).reshape(5, 80, 120)
    bf1 = fb1[None, :]                                     # (1, 120)
    wf2 = fw2.T                                            # (120, 50)
    bf2 = fb2[None, :]                                     # (1, 50)
    out_dim = fw3.shape[0]
    wf3 = jnp.zeros((50, OUT_PAD), jnp.float32).at[:, :out_dim].set(fw3.T)
    bf3 = jnp.zeros((1, OUT_PAD), jnp.float32).at[:, :out_dim].set(fb3[None, :])
    return (group, b1c, bias1, s1, t1, b2c, bias2, s2, t2,
            wf1, bf1, wf2, bf2, wf3, bf3, out_dim)


# --------------------------------------------------------------------------
# Forward wrapper
# --------------------------------------------------------------------------
def convnet2_forward(x_nchw, kparams):
    (G, b1c, bias1, s1, t1, b2c, bias2, s2, t2,
     wf1, bf1, wf2, bf2, wf3, bf3, out_dim) = kparams
    B = x_nchw.shape[0]
    n_steps = pl.cdiv(B, G)
    Bp = n_steps * G
    x = x_nchw
    if Bp != B:
        x = jnp.pad(x, ((0, Bp - B), (0, 0), (0, 0), (0, 0)))
    # layout plumbing only: NCHW -> rows = img*32 + h, lane = w*3 + c
    x_rows = jnp.transpose(x, (0, 2, 3, 1)).reshape(Bp * 32, 32 * 3)

    def full(a):
        return pl.BlockSpec(a.shape, lambda b, n=a.ndim: (0,) * n)

    grid_spec = pltpu.PrefetchScalarGridSpec(
        num_scalar_prefetch=0,
        grid=(n_steps,),
        in_specs=[
            pl.BlockSpec((G * 32, 96), lambda b: (b, 0)),
            full(b1c), full(bias1), full(s1), full(t1),
            full(b2c), full(bias2), full(s2), full(t2),
            full(wf1), full(bf1), full(wf2), full(bf2), full(wf3), full(bf3),
        ],
        out_specs=pl.BlockSpec((G, OUT_PAD), lambda b: (b, 0)),
        scratch_shapes=[
            pltpu.VMEM((G * 14, 84), jnp.float32),   # pooled conv1 maps
        ],
    )
    out = pl.pallas_call(
        convnet2_kernel,
        out_shape=jax.ShapeDtypeStruct((Bp, OUT_PAD), jnp.float32),
        grid_spec=grid_spec,
        compiler_params=pltpu.CompilerParams(
            dimension_semantics=("parallel",)),
    )(x_rows, b1c, bias1, s1, t1, b2c, bias2, s2, t2,
      wf1, bf1, wf2, bf2, wf3, bf3)
    return out[:B, :out_dim]


# --------------------------------------------------------------------------
# Reference + params
# --------------------------------------------------------------------------
def init_params(key):
    ks = jax.random.split(key, 10)
    g = lambda k, shape, s: s * jax.random.normal(k, shape, jnp.float32)
    w1 = g(ks[0], (6, 3, 5, 5), 0.2)     # Conv2d(3, 6, 5).weight
    b1 = g(ks[1], (6,), 0.1)
    w2 = g(ks[2], (16, 6, 5, 5), 0.1)    # Conv2d(6, 16, 5).weight
    b2 = g(ks[3], (16,), 0.1)
    fw1 = g(ks[4], (120, 400), 0.05)     # Linear(400, 120).weight
    fb1 = g(ks[5], (120,), 0.1)
    fw2 = g(ks[6], (50, 120), 0.1)       # Linear(120, 50).weight
    fb2 = g(ks[7], (50,), 0.1)
    fw3 = g(ks[8], (10, 50), 0.1)        # Linear(50, 10).weight
    fb3 = g(ks[9], (10,), 0.1)
    return (w1, b1, w2, b2, fw1, fb1, fw2, fb2, fw3, fb3)


def reference_forward(x, params):
    """Pure-JAX mirror of the PyTorch ConvNet2 forward (NCHW)."""
    w1, b1, w2, b2, fw1, fb1, fw2, fb2, fw3, fb3 = params
    dn = ("NCHW", "OIHW", "NCHW")
    hp = lax.Precision.HIGHEST
    a = lax.conv_general_dilated(x, w1, (1, 1), "VALID",
                                 dimension_numbers=dn, precision=hp)
    a = jnp.maximum(a + b1[None, :, None, None], 0.0)
    a = lax.reduce_window(a, -jnp.inf, lax.max, (1, 1, 2, 2), (1, 1, 2, 2), "VALID")
    a = lax.conv_general_dilated(a, w2, (1, 1), "VALID",
                                 dimension_numbers=dn, precision=hp)
    a = jnp.maximum(a + b2[None, :, None, None], 0.0)
    a = lax.reduce_window(a, -jnp.inf, lax.max, (1, 1, 2, 2), (1, 1, 2, 2), "VALID")
    flat = a.reshape(a.shape[0], -1)                 # (B, 400) in c*25+h*5+w order
    h = jnp.maximum(jnp.dot(flat, fw1.T, precision=hp) + fb1, 0.0)
    h = jnp.maximum(jnp.dot(h, fw2.T, precision=hp) + fb2, 0.0)
    return jnp.dot(h, fw3.T, precision=hp) + fb3


if __name__ == "__main__":
    G = 8                                 # images per grid step
    B = 16                                # -> grid of 2 steps (both v7x TCs busy)
    key = jax.random.PRNGKey(0)
    k_x, k_p = jax.random.split(key)
    x = jax.random.normal(k_x, (B, 3, 32, 32), jnp.float32)   # NCHW like PyTorch
    params = init_params(k_p)
    kparams = prepare_params(params, group=G)

    out = jax.block_until_ready(convnet2_forward(x, kparams))
    ref = reference_forward(x, params)
    assert out.shape == (B, 10), out.shape
    max_err = float(jnp.max(jnp.abs(out - ref)))
    assert jnp.allclose(out, ref, atol=2e-4, rtol=2e-4), max_err

    # Also exercise the ragged-batch path (B not a multiple of G, padded).
    x2 = x[:3]
    out2 = jax.block_until_ready(convnet2_forward(x2, kparams))
    max_err2 = float(jnp.max(jnp.abs(out2 - ref[:3])))
    assert jnp.allclose(out2, ref[:3], atol=2e-4, rtol=2e-4), max_err2

    print("KERNEL_OK")
</pallas_src>

<mosaic_0001>
module attributes {stable_mosaic.version = 11 : i64} {
  func.func @convnet2_kernel(%arg0: i32, %arg1: memref<256x96xf32, #tpu.memory_space<vmem>>, %arg2: memref<5x96x168xf32, #tpu.memory_space<vmem>>, %arg3: memref<1x168xf32, #tpu.memory_space<vmem>>, %arg4: memref<2x112x252xf32, #tpu.memory_space<vmem>>, %arg5: memref<2x168x84xf32, #tpu.memory_space<vmem>>, %arg6: memref<5x84x160xf32, #tpu.memory_space<vmem>>, %arg7: memref<1x160xf32, #tpu.memory_space<vmem>>, %arg8: memref<2x40x108xf32, #tpu.memory_space<vmem>>, %arg9: memref<2x160x80xf32, #tpu.memory_space<vmem>>, %arg10: memref<5x80x120xf32, #tpu.memory_space<vmem>>, %arg11: memref<1x120xf32, #tpu.memory_space<vmem>>, %arg12: memref<120x50xf32, #tpu.memory_space<vmem>>, %arg13: memref<1x50xf32, #tpu.memory_space<vmem>>, %arg14: memref<50x128xf32, #tpu.memory_space<vmem>>, %arg15: memref<1x128xf32, #tpu.memory_space<vmem>>, %arg16: memref<8x128xf32, #tpu.memory_space<vmem>>, %arg17: memref<112x84xf32, #tpu.memory_space<vmem>>) attributes {dimension_semantics = [#tpu.dimension_semantics<parallel>], iteration_bounds = array<i64: 2>, scalar_prefetch = 0 : i64, scratch_operands = 1 : i64, tpu.core_type = #tpu.core_type<tc>, window_params = [{transform_indices = @transform_0, window_bounds = array<i64: 256, 96>}, {pipeline_mode = #tpu.pipeline_mode<synchronous>, transform_indices = @transform_1, window_bounds = array<i64: 5, 96, 168>}, {pipeline_mode = #tpu.pipeline_mode<synchronous>, transform_indices = @transform_2, window_bounds = array<i64: 1, 168>}, {pipeline_mode = #tpu.pipeline_mode<synchronous>, transform_indices = @transform_3, window_bounds = array<i64: 2, 112, 252>}, {pipeline_mode = #tpu.pipeline_mode<synchronous>, transform_indices = @transform_4, window_bounds = array<i64: 2, 168, 84>}, {pipeline_mode = #tpu.pipeline_mode<synchronous>, transform_indices = @transform_5, window_bounds = array<i64: 5, 84, 160>}, {pipeline_mode = #tpu.pipeline_mode<synchronous>, transform_indices = @transform_6, window_bounds = array<i64: 1, 160>}, {pipeline_mode = #tpu.pipeline_mode<synchronous>, transform_indices = @transform_7, window_bounds = array<i64: 2, 40, 108>}, {pipeline_mode = #tpu.pipeline_mode<synchronous>, transform_indices = @transform_8, window_bounds = array<i64: 2, 160, 80>}, {pipeline_mode = #tpu.pipeline_mode<synchronous>, transform_indices = @transform_9, window_bounds = array<i64: 5, 80, 120>}, {pipeline_mode = #tpu.pipeline_mode<synchronous>, transform_indices = @transform_10, window_bounds = array<i64: 1, 120>}, {pipeline_mode = #tpu.pipeline_mode<synchronous>, transform_indices = @transform_11, window_bounds = array<i64: 120, 50>}, {pipeline_mode = #tpu.pipeline_mode<synchronous>, transform_indices = @transform_12, window_bounds = array<i64: 1, 50>}, {pipeline_mode = #tpu.pipeline_mode<synchronous>, transform_indices = @transform_13, window_bounds = array<i64: 50, 128>}, {pipeline_mode = #tpu.pipeline_mode<synchronous>, transform_indices = @transform_14, window_bounds = array<i64: 1, 128>}, {transform_indices = @transform_15, window_bounds = array<i64: 8, 128>}]} {
    %c0 = arith.constant 0 : index
    %c0_0 = arith.constant 0 : index
    %0 = vector.load %arg1[%c0, %c0_0] : memref<256x96xf32, #tpu.memory_space<vmem>>, vector<252x96xf32>
    %c0_1 = arith.constant 0 : index
    %c0_2 = arith.constant 0 : index
    %c0_3 = arith.constant 0 : index
    %1 = vector.load %arg2[%c0_1, %c0_2, %c0_3] : memref<5x96x168xf32, #tpu.memory_space<vmem>>, vector<1x96x168xf32>
    %2 = vector.shape_cast %1 : vector<1x96x168xf32> to vector<96x168xf32>
    %cst = arith.constant dense<0.000000e+00> : vector<252x168xf32>
    %3 = tpu.matmul %0, %2, %cst {dimension_numbers = #tpu.dot_dimension_numbers<[1], [0], [0], [1], [0, 0, 1, 1], [], []>} : vector<252x96xf32>, vector<96x168xf32>, vector<252x168xf32> -> vector<252x168xf32>
    %c1 = arith.constant 1 : index
    %c0_4 = arith.constant 0 : index
    %4 = vector.load %arg1[%c1, %c0_4] : memref<256x96xf32, #tpu.memory_space<vmem>>, vector<252x96xf32>
    %c1_5 = arith.constant 1 : index
    %c0_6 = arith.constant 0 : index
    %c0_7 = arith.constant 0 : index
    %5 = vector.load %arg2[%c1_5, %c0_6, %c0_7] : memref<5x96x168xf32, #tpu.memory_space<vmem>>, vector<1x96x168xf32>
    %6 = vector.shape_cast %5 : vector<1x96x168xf32> to vector<96x168xf32>
    %cst_8 = arith.constant dense<0.000000e+00> : vector<252x168xf32>
    %7 = tpu.matmul %4, %6, %cst_8 {dimension_numbers = #tpu.dot_dimension_numbers<[1], [0], [0], [1], [0, 0, 1, 1], [], []>} : vector<252x96xf32>, vector<96x168xf32>, vector<252x168xf32> -> vector<252x168xf32>
    %8 = arith.addf %3, %7 : vector<252x168xf32>
    %c2 = arith.constant 2 : index
    %c0_9 = arith.constant 0 : index
    %9 = vector.load %arg1[%c2, %c0_9] : memref<256x96xf32, #tpu.memory_space<vmem>>, vector<252x96xf32>
    %c2_10 = arith.constant 2 : index
    %c0_11 = arith.constant 0 : index
    %c0_12 = arith.constant 0 : index
    %10 = vector.load %arg2[%c2_10, %c0_11, %c0_12] : memref<5x96x168xf32, #tpu.memory_space<vmem>>, vector<1x96x168xf32>
    %11 = vector.shape_cast %10 : vector<1x96x168xf32> to vector<96x168xf32>
    %cst_13 = arith.constant dense<0.000000e+00> : vector<252x168xf32>
    %12 = tpu.matmul %9, %11, %cst_13 {dimension_numbers = #tpu.dot_dimension_numbers<[1], [0], [0], [1], [0, 0, 1, 1], [], []>} : vector<252x96xf32>, vector<96x168xf32>, vector<252x168xf32> -> vector<252x168xf32>
    %13 = arith.addf %8, %12 : vector<252x168xf32>
    %c3 = arith.constant 3 : index
    %c0_14 = arith.constant 0 : index
    %14 = vector.load %arg1[%c3, %c0_14] : memref<256x96xf32, #tpu.memory_space<vmem>>, vector<252x96xf32>
    %c3_15 = arith.constant 3 : index
    %c0_16 = arith.constant 0 : index
    %c0_17 = arith.constant 0 : index
    %15 = vector.load %arg2[%c3_15, %c0_16, %c0_17] : memref<5x96x168xf32, #tpu.memory_space<vmem>>, vector<1x96x168xf32>
    %16 = vector.shape_cast %15 : vector<1x96x168xf32> to vector<96x168xf32>
    %cst_18 = arith.constant dense<0.000000e+00> : vector<252x168xf32>
    %17 = tpu.matmul %14, %16, %cst_18 {dimension_numbers = #tpu.dot_dimension_numbers<[1], [0], [0], [1], [0, 0, 1, 1], [], []>} : vector<252x96xf32>, vector<96x168xf32>, vector<252x168xf32> -> vector<252x168xf32>
    %18 = arith.addf %13, %17 : vector<252x168xf32>
    %c4 = arith.constant 4 : index
    %c0_19 = arith.constant 0 : index
    %19 = vector.load %arg1[%c4, %c0_19] : memref<256x96xf32, #tpu.memory_space<vmem>>, vector<252x96xf32>
    %c4_20 = arith.constant 4 : index
    %c0_21 = arith.constant 0 : index
    %c0_22 = arith.constant 0 : index
    %20 = vector.load %arg2[%c4_20, %c0_21, %c0_22] : memref<5x96x168xf32, #tpu.memory_space<vmem>>, vector<1x96x168xf32>
    %21 = vector.shape_cast %20 : vector<1x96x168xf32> to vector<96x168xf32>
    %cst_23 = arith.constant dense<0.000000e+00> : vector<252x168xf32>
    %22 = tpu.matmul %19, %21, %cst_23 {dimension_numbers = #tpu.dot_dimension_numbers<[1], [0], [0], [1], [0, 0, 1, 1], [], []>} : vector<252x96xf32>, vector<96x168xf32>, vector<252x168xf32> -> vector<252x168xf32>
    %23 = arith.addf %18, %22 : vector<252x168xf32>
    %c0_24 = arith.constant 0 : index
    %c0_25 = arith.constant 0 : index
    %24 = vector.load %arg3[%c0_24, %c0_25] : memref<1x168xf32, #tpu.memory_space<vmem>>, vector<1x168xf32>
    %25 = vector.broadcast %24 : vector<1x168xf32> to vector<252x168xf32>
    %26 = arith.addf %23, %25 : vector<252x168xf32>
    %cst_26 = arith.constant 0.000000e+00 : f32
    %27 = vector.broadcast %cst_26 : f32 to vector<252x168xf32>
    %28 = arith.maximumf %26, %27 : vector<252x168xf32>
    %c0_27 = arith.constant 0 : index
    %c0_28 = arith.constant 0 : index
    %c0_29 = arith.constant 0 : index
    %29 = vector.load %arg4[%c0_27, %c0_28, %c0_29] : memref<2x112x252xf32, #tpu.memory_space<vmem>>, vector<1x112x252xf32>
    %30 = vector.shape_cast %29 : vector<1x112x252xf32> to vector<112x252xf32>
    %cst_30 = arith.constant dense<0.000000e+00> : vector<112x168xf32>
    %31 = tpu.matmul %30, %28, %cst_30 {dimension_numbers = #tpu.dot_dimension_numbers<[1], [0], [0], [1], [0, 0, 1, 1], [], []>} : vector<112x252xf32>, vector<252x168xf32>, vector<112x168xf32> -> vector<112x168xf32>
    %c1_31 = arith.constant 1 : index
    %c0_32 = arith.constant 0 : index
    %c0_33 = arith.constant 0 : index
    %32 = vector.load %arg4[%c1_31, %c0_32, %c0_33] : memref<2x112x252xf32, #tpu.memory_space<vmem>>, vector<1x112x252xf32>
    %33 = vector.shape_cast %32 : vector<1x112x252xf32> to vector<112x252xf32>
    %cst_34 = arith.constant dense<0.000000e+00> : vector<112x168xf32>
    %34 = tpu.matmul %33, %28, %cst_34 {dimension_numbers = #tpu.dot_dimension_numbers<[1], [0], [0], [1], [0, 0, 1, 1], [], []>} : vector<112x252xf32>, vector<252x168xf32>, vector<112x168xf32> -> vector<112x168xf32>
    %35 = arith.maximumf %31, %34 : vector<112x168xf32>
    %c0_35 = arith.constant 0 : index
    %c0_36 = arith.constant 0 : index
    %c0_37 = arith.constant 0 : index
    %36 = vector.load %arg5[%c0_35, %c0_36, %c0_37] : memref<2x168x84xf32, #tpu.memory_space<vmem>>, vector<1x168x84xf32>
    %37 = vector.shape_cast %36 : vector<1x168x84xf32> to vector<168x84xf32>
    %cst_38 = arith.constant dense<0.000000e+00> : vector<112x84xf32>
    %38 = tpu.matmul %35, %37, %cst_38 {dimension_numbers = #tpu.dot_dimension_numbers<[1], [0], [0], [1], [0, 0, 1, 1], [], []>} : vector<112x168xf32>, vector<168x84xf32>, vector<112x84xf32> -> vector<112x84xf32>
    %c1_39 = arith.constant 1 : index
    %c0_40 = arith.constant 0 : index
    %c0_41 = arith.constant 0 : index
    %39 = vector.load %arg5[%c1_39, %c0_40, %c0_41] : memref<2x168x84xf32, #tpu.memory_space<vmem>>, vector<1x168x84xf32>
    %40 = vector.shape_cast %39 : vector<1x168x84xf32> to vector<168x84xf32>
    %cst_42 = arith.constant dense<0.000000e+00> : vector<112x84xf32>
    %41 = tpu.matmul %35, %40, %cst_42 {dimension_numbers = #tpu.dot_dimension_numbers<[1], [0], [0], [1], [0, 0, 1, 1], [], []>} : vector<112x168xf32>, vector<168x84xf32>, vector<112x84xf32> -> vector<112x84xf32>
    %42 = arith.maximumf %38, %41 : vector<112x84xf32>
    %c0_43 = arith.constant 0 : index
    %c0_44 = arith.constant 0 : index
    %43 = vector.load %arg17[%c0_43, %c0_44] : memref<112x84xf32, #tpu.memory_space<vmem>>, vector<112x84xf32>
    tpu.vector_store %arg17[%c0_43, %c0_44], %42 {strides = array<i32>} : memref<112x84xf32, #tpu.memory_space<vmem>>, vector<112x84xf32>,
    %c0_45 = arith.constant 0 : index
    %c0_46 = arith.constant 0 : index
    %44 = vector.load %arg17[%c0_45, %c0_46] : memref<112x84xf32, #tpu.memory_space<vmem>>, vector<108x84xf32>
    %c0_47 = arith.constant 0 : index
    %c0_48 = arith.constant 0 : index
    %c0_49 = arith.constant 0 : index
    %45 = vector.load %arg6[%c0_47, %c0_48, %c0_49] : memref<5x84x160xf32, #tpu.memory_space<vmem>>, vector<1x84x160xf32>
    %46 = vector.shape_cast %45 : vector<1x84x160xf32> to vector<84x160xf32>
    %cst_50 = arith.constant dense<0.000000e+00> : vector<108x160xf32>
    %47 = tpu.matmul %44, %46, %cst_50 {dimension_numbers = #tpu.dot_dimension_numbers<[1], [0], [0], [1], [0, 0, 1, 1], [], []>} : vector<108x84xf32>, vector<84x160xf32>, vector<108x160xf32> -> vector<108x160xf32>
    %c1_51 = arith.constant 1 : index
    %c0_52 = arith.constant 0 : index
    %48 = vector.load %arg17[%c1_51, %c0_52] : memref<112x84xf32, #tpu.memory_space<vmem>>, vector<108x84xf32>
    %c1_53 = arith.constant 1 : index
    %c0_54 = arith.constant 0 : index
    %c0_55 = arith.constant 0 : index
    %49 = vector.load %arg6[%c1_53, %c0_54, %c0_55] : memref<5x84x160xf32, #tpu.memory_space<vmem>>, vector<1x84x160xf32>
    %50 = vector.shape_cast %49 : vector<1x84x160xf32> to vector<84x160xf32>
    %cst_56 = arith.constant dense<0.000000e+00> : vector<108x160xf32>
    %51 = tpu.matmul %48, %50, %cst_56 {dimension_numbers = #tpu.dot_dimension_numbers<[1], [0], [0], [1], [0, 0, 1, 1], [], []>} : vector<108x84xf32>, vector<84x160xf32>, vector<108x160xf32> -> vector<108x160xf32>
    %52 = arith.addf %47, %51 : vector<108x160xf32>
    %c2_57 = arith.constant 2 : index
    %c0_58 = arith.constant 0 : index
    %53 = vector.load %arg17[%c2_57, %c0_58] : memref<112x84xf32, #tpu.memory_space<vmem>>, vector<108x84xf32>
    %c2_59 = arith.constant 2 : index
    %c0_60 = arith.constant 0 : index
    %c0_61 = arith.constant 0 : index
    %54 = vector.load %arg6[%c2_59, %c0_60, %c0_61] : memref<5x84x160xf32, #tpu.memory_space<vmem>>, vector<1x84x160xf32>
    %55 = vector.shape_cast %54 : vector<1x84x160xf32> to vector<84x160xf32>
    %cst_62 = arith.constant dense<0.000000e+00> : vector<108x160xf32>
    %56 = tpu.matmul %53, %55, %cst_62 {dimension_numbers = #tpu.dot_dimension_numbers<[1], [0], [0], [1], [0, 0, 1, 1], [], []>} : vector<108x84xf32>, vector<84x160xf32>, vector<108x160xf32> -> vector<108x160xf32>
    %57 = arith.addf %52, %56 : vector<108x160xf32>
    %c3_63 = arith.constant 3 : index
    %c0_64 = arith.constant 0 : index
    %58 = vector.load %arg17[%c3_63, %c0_64] : memref<112x84xf32, #tpu.memory_space<vmem>>, vector<108x84xf32>
    %c3_65 = arith.constant 3 : index
    %c0_66 = arith.constant 0 : index
    %c0_67 = arith.constant 0 : index
    %59 = vector.load %arg6[%c3_65, %c0_66, %c0_67] : memref<5x84x160xf32, #tpu.memory_space<vmem>>, vector<1x84x160xf32>
    %60 = vector.shape_cast %59 : vector<1x84x160xf32> to vector<84x160xf32>
    %cst_68 = arith.constant dense<0.000000e+00> : vector<108x160xf32>
    %61 = tpu.matmul %58, %60, %cst_68 {dimension_numbers = #tpu.dot_dimension_numbers<[1], [0], [0], [1], [0, 0, 1, 1], [], []>} : vector<108x84xf32>, vector<84x160xf32>, vector<108x160xf32> -> vector<108x160xf32>
    %62 = arith.addf %57, %61 : vector<108x160xf32>
    %c4_69 = arith.constant 4 : index
    %c0_70 = arith.constant 0 : index
    %63 = vector.load %arg17[%c4_69, %c0_70] : memref<112x84xf32, #tpu.memory_space<vmem>>, vector<108x84xf32>
    %c4_71 = arith.constant 4 : index
    %c0_72 = arith.constant 0 : index
    %c0_73 = arith.constant 0 : index
    %64 = vector.load %arg6[%c4_71, %c0_72, %c0_73] : memref<5x84x160xf32, #tpu.memory_space<vmem>>, vector<1x84x160xf32>
    %65 = vector.shape_cast %64 : vector<1x84x160xf32> to vector<84x160xf32>
    %cst_74 = arith.constant dense<0.000000e+00> : vector<108x160xf32>
    %66 = tpu.matmul %63, %65, %cst_74 {dimension_numbers = #tpu.dot_dimension_numbers<[1], [0], [0], [1], [0, 0, 1, 1], [], []>} : vector<108x84xf32>, vector<84x160xf32>, vector<108x160xf32> -> vector<108x160xf32>
    %67 = arith.addf %62, %66 : vector<108x160xf32>
    %c0_75 = arith.constant 0 : index
    %c0_76 = arith.constant 0 : index
    %68 = vector.load %arg7[%c0_75, %c0_76] : memref<1x160xf32, #tpu.memory_space<vmem>>, vector<1x160xf32>
    %69 = vector.broadcast %68 : vector<1x160xf32> to vector<108x160xf32>
    %70 = arith.addf %67, %69 : vector<108x160xf32>
    %cst_77 = arith.constant 0.000000e+00 : f32
    %71 = vector.broadcast %cst_77 : f32 to vector<108x160xf32>
    %72 = arith.maximumf %70, %71 : vector<108x160xf32>
    %c0_78 = arith.constant 0 : index
    %c0_79 = arith.constant 0 : index
    %c0_80 = arith.constant 0 : index
    %73 = vector.load %arg8[%c0_78, %c0_79, %c0_80] : memref<2x40x108xf32, #tpu.memory_space<vmem>>, vector<1x40x108xf32>
    %74 = vector.shape_cast %73 : vector<1x40x108xf32> to vector<40x108xf32>
    %cst_81 = arith.constant dense<0.000000e+00> : vector<40x160xf32>
    %75 = tpu.matmul %74, %72, %cst_81 {dimension_numbers = #tpu.dot_dimension_numbers<[1], [0], [0], [1], [0, 0, 1, 1], [], []>} : vector<40x108xf32>, vector<108x160xf32>, vector<40x160xf32> -> vector<40x160xf32>
    %c1_82 = arith.constant 1 : index
    %c0_83 = arith.constant 0 : index
    %c0_84 = arith.constant 0 : index
    %76 = vector.load %arg8[%c1_82, %c0_83, %c0_84] : memref<2x40x108xf32, #tpu.memory_space<vmem>>, vector<1x40x108xf32>
    %77 = vector.shape_cast %76 : vector<1x40x108xf32> to vector<40x108xf32>
    %cst_85 = arith.constant dense<0.000000e+00> : vector<40x160xf32>
    %78 = tpu.matmul %77, %72, %cst_85 {dimension_numbers = #tpu.dot_dimension_numbers<[1], [0], [0], [1], [0, 0, 1, 1], [], []>} : vector<40x108xf32>, vector<108x160xf32>, vector<40x160xf32> -> vector<40x160xf32>
    %79 = arith.maximumf %75, %78 : vector<40x160xf32>
    %c0_86 = arith.constant 0 : index
    %c0_87 = arith.constant 0 : index
    %c0_88 = arith.constant 0 : index
    %80 = vector.load %arg9[%c0_86, %c0_87, %c0_88] : memref<2x160x80xf32, #tpu.memory_space<vmem>>, vector<1x160x80xf32>
    %81 = vector.shape_cast %80 : vector<1x160x80xf32> to vector<160x80xf32>
    %cst_89 = arith.constant dense<0.000000e+00> : vector<40x80xf32>
    %82 = tpu.matmul %79, %81, %cst_89 {dimension_numbers = #tpu.dot_dimension_numbers<[1], [0], [0], [1], [0, 0, 1, 1], [], []>} : vector<40x160xf32>, vector<160x80xf32>, vector<40x80xf32> -> vector<40x80xf32>
    %c1_90 = arith.constant 1 : index
    %c0_91 = arith.constant 0 : index
    %c0_92 = arith.constant 0 : index
    %83 = vector.load %arg9[%c1_90, %c0_91, %c0_92] : memref<2x160x80xf32, #tpu.memory_space<vmem>>, vector<1x160x80xf32>
    %84 = vector.shape_cast %83 : vector<1x160x80xf32> to vector<160x80xf32>
    %cst_93 = arith.constant dense<0.000000e+00> : vector<40x80xf32>
    %85 = tpu.matmul %79, %84, %cst_93 {dimension_numbers = #tpu.dot_dimension_numbers<[1], [0], [0], [1], [0, 0, 1, 1], [], []>} : vector<40x160xf32>, vector<160x80xf32>, vector<40x80xf32> -> vector<40x80xf32>
    %86 = arith.maximumf %82, %85 : vector<40x80xf32>
    %87 = vector.extract_strided_slice %86 {offsets = [0, 0], sizes = [8, 80], strides = [1, 1]} : vector<40x80xf32> to vector<8x80xf32>
    %c0_94 = arith.constant 0 : index
    %c0_95 = arith.constant 0 : index
    %c0_96 = arith.constant 0 : index
    %88 = vector.load %arg10[%c0_94, %c0_95, %c0_96] : memref<5x80x120xf32, #tpu.memory_space<vmem>>, vector<1x80x120xf32>
    %89 = vector.shape_cast %88 : vector<1x80x120xf32> to vector<80x120xf32>
    %cst_97 = arith.constant dense<0.000000e+00> : vector<8x120xf32>
    %90 = tpu.matmul %87, %89, %cst_97 {dimension_numbers = #tpu.dot_dimension_numbers<[1], [0], [0], [1], [0, 0, 1, 1], [], []>} : vector<8x80xf32>, vector<80x120xf32>, vector<8x120xf32> -> vector<8x120xf32>
    %91 = vector.extract_strided_slice %86 {offsets = [8, 0], sizes = [8, 80], strides = [1, 1]} : vector<40x80xf32> to vector<8x80xf32>
    %c1_98 = arith.constant 1 : index
    %c0_99 = arith.constant 0 : index
    %c0_100 = arith.constant 0 : index
    %92 = vector.load %arg10[%c1_98, %c0_99, %c0_100] : memref<5x80x120xf32, #tpu.memory_space<vmem>>, vector<1x80x120xf32>
    %93 = vector.shape_cast %92 : vector<1x80x120xf32> to vector<80x120xf32>
    %cst_101 = arith.constant dense<0.000000e+00> : vector<8x120xf32>
    %94 = tpu.matmul %91, %93, %cst_101 {dimension_numbers = #tpu.dot_dimension_numbers<[1], [0], [0], [1], [0, 0, 1, 1], [], []>} : vector<8x80xf32>, vector<80x120xf32>, vector<8x120xf32> -> vector<8x120xf32>
    %95 = arith.addf %90, %94 : vector<8x120xf32>
    %96 = vector.extract_strided_slice %86 {offsets = [16, 0], sizes = [8, 80], strides = [1, 1]} : vector<40x80xf32> to vector<8x80xf32>
    %c2_102 = arith.constant 2 : index
    %c0_103 = arith.constant 0 : index
    %c0_104 = arith.constant 0 : index
    %97 = vector.load %arg10[%c2_102, %c0_103, %c0_104] : memref<5x80x120xf32, #tpu.memory_space<vmem>>, vector<1x80x120xf32>
    %98 = vector.shape_cast %97 : vector<1x80x120xf32> to vector<80x120xf32>
    %cst_105 = arith.constant dense<0.000000e+00> : vector<8x120xf32>
    %99 = tpu.matmul %96, %98, %cst_105 {dimension_numbers = #tpu.dot_dimension_numbers<[1], [0], [0], [1], [0, 0, 1, 1], [], []>} : vector<8x80xf32>, vector<80x120xf32>, vector<8x120xf32> -> vector<8x120xf32>
    %100 = arith.addf %95, %99 : vector<8x120xf32>
    %101 = vector.extract_strided_slice %86 {offsets = [24, 0], sizes = [8, 80], strides = [1, 1]} : vector<40x80xf32> to vector<8x80xf32>
    %c3_106 = arith.constant 3 : index
    %c0_107 = arith.constant 0 : index
    %c0_108 = arith.constant 0 : index
    %102 = vector.load %arg10[%c3_106, %c0_107, %c0_108] : memref<5x80x120xf32, #tpu.memory_space<vmem>>, vector<1x80x120xf32>
    %103 = vector.shape_cast %102 : vector<1x80x120xf32> to vector<80x120xf32>
    %cst_109 = arith.constant dense<0.000000e+00> : vector<8x120xf32>
    %104 = tpu.matmul %101, %103, %cst_109 {dimension_numbers = #tpu.dot_dimension_numbers<[1], [0], [0], [1], [0, 0, 1, 1], [], []>} : vector<8x80xf32>, vector<80x120xf32>, vector<8x120xf32> -> vector<8x120xf32>
    %105 = arith.addf %100, %104 : vector<8x120xf32>
    %106 = vector.extract_strided_slice %86 {offsets = [32, 0], sizes = [8, 80], strides = [1, 1]} : vector<40x80xf32> to vector<8x80xf32>
    %c4_110 = arith.constant 4 : index
    %c0_111 = arith.constant 0 : index
    %c0_112 = arith.constant 0 : index
    %107 = vector.load %arg10[%c4_110, %c0_111, %c0_112] : memref<5x80x120xf32, #tpu.memory_space<vmem>>, vector<1x80x120xf32>
    %108 = vector.shape_cast %107 : vector<1x80x120xf32> to vector<80x120xf32>
    %cst_113 = arith.constant dense<0.000000e+00> : vector<8x120xf32>
    %109 = tpu.matmul %106, %108, %cst_113 {dimension_numbers = #tpu.dot_dimension_numbers<[1], [0], [0], [1], [0, 0, 1, 1], [], []>} : vector<8x80xf32>, vector<80x120xf32>, vector<8x120xf32> -> vector<8x120xf32>
    %110 = arith.addf %105, %109 : vector<8x120xf32>
    %c0_114 = arith.constant 0 : index
    %c0_115 = arith.constant 0 : index
    %111 = vector.load %arg11[%c0_114, %c0_115] : memref<1x120xf32, #tpu.memory_space<vmem>>, vector<1x120xf32>
    %112 = vector.broadcast %111 : vector<1x120xf32> to vector<8x120xf32>
    %113 = arith.addf %110, %112 : vector<8x120xf32>
    %cst_116 = arith.constant 0.000000e+00 : f32
    %114 = vector.broadcast %cst_116 : f32 to vector<8x120xf32>
    %115 = arith.maximumf %113, %114 : vector<8x120xf32>
    %c0_117 = arith.constant 0 : index
    %c0_118 = arith.constant 0 : index
    %116 = vector.load %arg12[%c0_117, %c0_118] : memref<120x50xf32, #tpu.memory_space<vmem>>, vector<120x50xf32>
    %cst_119 = arith.constant dense<0.000000e+00> : vector<8x50xf32>
    %117 = tpu.matmul %115, %116, %cst_119 {dimension_numbers = #tpu.dot_dimension_numbers<[1], [0], [0], [1], [0, 0, 1, 1], [], []>} : vector<8x120xf32>, vector<120x50xf32>, vector<8x50xf32> -> vector<8x50xf32>
    %c0_120 = arith.constant 0 : index
    %c0_121 = arith.constant 0 : index
    %118 = vector.load %arg13[%c0_120, %c0_121] : memref<1x50xf32, #tpu.memory_space<vmem>>, vector<1x50xf32>
    %119 = vector.broadcast %118 : vector<1x50xf32> to vector<8x50xf32>
    %120 = arith.addf %117, %119 : vector<8x50xf32>
    %cst_122 = arith.constant 0.000000e+00 : f32
    %121 = vector.broadcast %cst_122 : f32 to vector<8x50xf32>
    %122 = arith.maximumf %120, %121 : vector<8x50xf32>
    %c0_123 = arith.constant 0 : index
    %c0_124 = arith.constant 0 : index
    %123 = vector.load %arg14[%c0_123, %c0_124] : memref<50x128xf32, #tpu.memory_space<vmem>>, vector<50x128xf32>
    %cst_125 = arith.constant dense<0.000000e+00> : vector<8x128xf32>
    %124 = tpu.matmul %122, %123, %cst_125 {dimension_numbers = #tpu.dot_dimension_numbers<[1], [0], [0], [1], [0, 0, 1, 1], [], []>} : vector<8x50xf32>, vector<50x128xf32>, vector<8x128xf32> -> vector<8x128xf32>
    %c0_126 = arith.constant 0 : index
    %c0_127 = arith.constant 0 : index
    %125 = vector.load %arg15[%c0_126, %c0_127] : memref<1x128xf32, #tpu.memory_space<vmem>>, vector<1x128xf32>
    %126 = vector.broadcast %125 : vector<1x128xf32> to vector<8x128xf32>
    %127 = arith.addf %124, %126 : vector<8x128xf32>
    %c0_128 = arith.constant 0 : index
    %c0_129 = arith.constant 0 : index
    %128 = vector.load %arg16[%c0_128, %c0_129] : memref<8x128xf32, #tpu.memory_space<vmem>>, vector<8x128xf32>
    tpu.vector_store %arg16[%c0_128, %c0_129], %127 {strides = array<i32>} : memref<8x128xf32, #tpu.memory_space<vmem>>, vector<8x128xf32>,
    return
  }
  func.func @transform_0(%arg0: i32) -> (i32, i32) {
    %c0_i32 = arith.constant 0 : i32
    %c0_i32_0 = arith.constant 0 : i32
    return %arg0, %c0_i32 : i32, i32
  }
  func.func @transform_1(%arg0: i32) -> (i32, i32, i32) {
    %c0_i32 = arith.constant 0 : i32
    %c0_i32_0 = arith.constant 0 : i32
    %c0_i32_1 = arith.constant 0 : i32
    %c0_i32_2 = arith.constant 0 : i32
    return %c0_i32, %c0_i32_0, %c0_i32_1 : i32, i32, i32
  }
  func.func @transform_2(%arg0: i32) -> (i32, i32) {
    %c0_i32 = arith.constant 0 : i32
    %c0_i32_0 = arith.constant 0 : i32
    %c0_i32_1 = arith.constant 0 : i32
    return %c0_i32, %c0_i32_0 : i32, i32
  }
  func.func @transform_3(%arg0: i32) -> (i32, i32, i32) {
    %c0_i32 = arith.constant 0 : i32
    %c0_i32_0 = arith.constant 0 : i32
    %c0_i32_1 = arith.constant 0 : i32
    %c0_i32_2 = arith.constant 0 : i32
    return %c0_i32, %c0_i32_0, %c0_i32_1 : i32, i32, i32
  }
  func.func @transform_4(%arg0: i32) -> (i32, i32, i32) {
    %c0_i32 = arith.constant 0 : i32
    %c0_i32_0 = arith.constant 0 : i32
    %c0_i32_1 = arith.constant 0 : i32
    %c0_i32_2 = arith.constant 0 : i32
    return %c0_i32, %c0_i32_0, %c0_i32_1 : i32, i32, i32
  }
  func.func @transform_5(%arg0: i32) -> (i32, i32, i32) {
    %c0_i32 = arith.constant 0 : i32
    %c0_i32_0 = arith.constant 0 : i32
    %c0_i32_1 = arith.constant 0 : i32
    %c0_i32_2 = arith.constant 0 : i32
    return %c0_i32, %c0_i32_0, %c0_i32_1 : i32, i32, i32
  }
  func.func @transform_6(%arg0: i32) -> (i32, i32) {
    %c0_i32 = arith.constant 0 : i32
    %c0_i32_0 = arith.constant 0 : i32
    %c0_i32_1 = arith.constant 0 : i32
    return %c0_i32, %c0_i32_0 : i32, i32
  }
  func.func @transform_7(%arg0: i32) -> (i32, i32, i32) {
    %c0_i32 = arith.constant 0 : i32
    %c0_i32_0 = arith.constant 0 : i32
    %c0_i32_1 = arith.constant 0 : i32
    %c0_i32_2 = arith.constant 0 : i32
    return %c0_i32, %c0_i32_0, %c0_i32_1 : i32, i32, i32
  }
  func.func @transform_8(%arg0: i32) -> (i32, i32, i32) {
    %c0_i32 = arith.constant 0 : i32
    %c0_i32_0 = arith.constant 0 : i32
    %c0_i32_1 = arith.constant 0 : i32
    %c0_i32_2 = arith.constant 0 : i32
    return %c0_i32, %c0_i32_0, %c0_i32_1 : i32, i32, i32
  }
  func.func @transform_9(%arg0: i32) -> (i32, i32, i32) {
    %c0_i32 = arith.constant 0 : i32
    %c0_i32_0 = arith.constant 0 : i32
    %c0_i32_1 = arith.constant 0 : i32
    %c0_i32_2 = arith.constant 0 : i32
    return %c0_i32, %c0_i32_0, %c0_i32_1 : i32, i32, i32
  }
  func.func @transform_10(%arg0: i32) -> (i32, i32) {
    %c0_i32 = arith.constant 0 : i32
    %c0_i32_0 = arith.constant 0 : i32
    %c0_i32_1 = arith.constant 0 : i32
    return %c0_i32, %c0_i32_0 : i32, i32
  }
  func.func @transform_11(%arg0: i32) -> (i32, i32) {
    %c0_i32 = arith.constant 0 : i32
    %c0_i32_0 = arith.constant 0 : i32
    %c0_i32_1 = arith.constant 0 : i32
    return %c0_i32, %c0_i32_0 : i32, i32
  }
  func.func @transform_12(%arg0: i32) -> (i32, i32) {
    %c0_i32 = arith.constant 0 : i32
    %c0_i32_0 = arith.constant 0 : i32
    %c0_i32_1 = arith.constant 0 : i32
    return %c0_i32, %c0_i32_0 : i32, i32
  }
  func.func @transform_13(%arg0: i32) -> (i32, i32) {
    %c0_i32 = arith.constant 0 : i32
    %c0_i32_0 = arith.constant 0 : i32
    %c0_i32_1 = arith.constant 0 : i32
    return %c0_i32, %c0_i32_0 : i32, i32
  }
  func.func @transform_14(%arg0: i32) -> (i32, i32) {
    %c0_i32 = arith.constant 0 : i32
    %c0_i32_0 = arith.constant 0 : i32
    %c0_i32_1 = arith.constant 0 : i32
    return %c0_i32, %c0_i32_0 : i32, i32
  }
  func.func @transform_15(%arg0: i32) -> (i32, i32) {
    %c0_i32 = arith.constant 0 : i32
    %c0_i32_0 = arith.constant 0 : i32
    return %arg0, %c0_i32 : i32, i32
  }
}

</mosaic_0001>

<bundles_post_ra>
// kernel: tpu_custom_call.1
= control target key start
LH: loop header
LB: loop body
LE: loop exit
PB: predicated region body
PF: predicated region fallthrough
CT: control target
= control target key end

     0   :  { %20 = vsyncpa [#allocation4], 0  ;;  %s11079_s0 = inlined_call_operand.vmem [shape: f32[512,96], index: 0, kind: input, shape index: {}]   ;;  %s11080_s1 = inlined_call_operand.vmem [shape: f32[5,96,168], index: 1, kind: input, shape index: {}]   ;;  %s11081_s2 = inlined_call_operand.vmem [shape: f32[1,168], index: 2, kind: input, shape index: {}]   ;;  %s11082_s3 = inlined_call_operand.vmem [shape: f32[2,112,252], index: 3, kind: input, shape index: {}]   ;;  %s11083_s4 = inlined_call_operand.vmem [shape: f32[2,168,84], index: 4, kind: input, shape index: {}]   ;;  %s11084_s5 = inlined_call_operand.vmem [shape: f32[5,84,160], index: 5, kind: input, shape index: {}]   ;;  %s11085_s6 = inlined_call_operand.vmem [shape: f32[1,160], index: 6, kind: input, shape index: {}]   ;;  %s11086_s7 = inlined_call_operand.vmem [shape: f32[2,40,108], index: 7, kind: input, shape index: {}]   ;;  %s11087_s8 = inlined_call_operand.vmem [shape: f32[2,160,80], index: 8, kind: input, shape index: {}]   ;;  %s11088_s9 = inlined_call_operand.vmem [shape: f32[5,80,120], index: 9, kind: input, shape index: {}]   ;;  %s11089_s10 = inlined_call_operand.vmem [shape: f32[1,120], index: 10, kind: input, shape index: {}]   ;;  %s11090_s11 = inlined_call_operand.vmem [shape: f32[120,50], index: 11, kind: input, shape index: {}]   ;;  %s11091_s12 = inlined_call_operand.vmem [shape: f32[1,50], index: 12, kind: input, shape index: {}]   ;;  %s11092_s13 = inlined_call_operand.vmem [shape: f32[50,128], index: 13, kind: input, shape index: {}]   ;;  %s11093_s14 = inlined_call_operand.vmem [shape: f32[1,128], index: 14, kind: input, shape index: {}]   ;;  %s11094_s15 = inlined_call_operand.hbm [shape: f32[16,128], index: 15, kind: output, shape index: {}]  }
   0x1   :  { %22 = vsyncpa [#allocation4 + $0x1], 0  ;;  %s8328_s18 = smov 0   ;;  %s8330_s19 = smov 0  }
   0x2   :  { %s8332_s20 = smov 0   ;;  %s8334_s21 = smov 0  }
   0x3 LB: > { %11101 = sst [smem:[#allocation6_spill]] %s8229_s18  ;;  %s8349_s22 = sadd.s32 4294967295, %s8241_s21   ;;  %s8241_s21 = sphi %s8334_s21, %s11114_s21   ;;  %s8237_s20 = sphi %s8332_s20, %s11116_s20   ;;  %s8233_s19 = sphi %s8330_s19, %s11118_s19   ;;  %s8229_s18 = sphi %s8328_s18, %s11117_s18  }
   0x4   : > { %11102 = sst [smem:[#allocation7_spill]] %s8237_s20  ;;  %s6243_s23 = sadd.s32 4294967294, %s8241_s21  }
   0x5   : > { %11103 = sst [smem:[#allocation8_spill]] %s8241_s21  ;;  %s8353_s24 = sadd.s32 1, %s8241_s21  }
   0x6   : > { %11104 = sst [smem:[#allocation9_spill]] %s8353_s24  ;;  %s355_s25 = sadd.s32 1, %s8237_s20 }
   0x7   : > { %s352_s26 = ssub.s32 %s8241_s21, %s8353_s24  ;;  %p365_p0 = scmp.ne.s32.totalorder %s8237_s20, %s8233_s19 }
   0x8   : > { %p353_p1 = scmp.eq.s32.totalorder %s352_s26, 0  ;;  %p366_p2 = scmp.eq.s32.totalorder %s8349_s22, 1 }
   0x9   : > { %p371_p3 = scmp.ne.s32.totalorder %s8233_s19, %s8229_s18  ;;  %p372_p4 = scmp.eq.s32.totalorder %s6243_s23, 1 }
   0xa   : > { %s8364_s27 = scalar_select %p353_p1, %s8237_s20, %s355_s25  }
   0xb   : > { %p8366_p5 = por %p366_p2, %p365_p0  ;;  %p8370_p6 = por %p372_p4, %p371_p3 }
   0xc   : > { %11105 = sst [smem:[#allocation10_spill]] %s8364_s27  ;;  %p6246_p7 = scmp.ge.s32.totalorder %s8241_s21, 1 }
   0xd   : > { %s11107_s29 = scalar_select %p8370_p6, 1, 0 }
   0xe   : > { %p441_p8 = scmp.lt.s32.totalorder %s8241_s21, 3 }
   0xf   : > { %11108 = sst [smem:[#allocation11_spill]] %s11107_s29 }
  0x10   : > { %p442_p9 = pnand %p6246_p7, %p441_p8 }
  0x11   : > { %v6251_v0 = vld [vmem:[%s11080_s1 + $0xc8] sm:$0xff] (!%p442_p9)  ;;  %v6253_v1 = vld [vmem:[%s11080_s1 + $0xd8] sm:$0xff] (!%p442_p9)  ;;  %v6250_v2 = vld [vmem:[%s11080_s1 + $0xc0] sm:$0xff] (!%p442_p9)  ;;  %v8243_v7 = vmov (!%p442_p9), 0.0   ;;  %s6248_s29 = sshll.u32 (!%p442_p9), %s8349_s22, 5  ;;  %vm608_vm0 = vcmask (!%p442_p9), 785408  }
  0x12   : > { %445 = sbr.rel (%p442_p9) target bundleno = 3128 (0xc38), region = 80  ;;  %v7131_v3 = vpack.c.bf16 (!%p442_p9), %v6253_v1, %v6251_v0  ;;  %v6252_v4 = vld [vmem:[%s11080_s1 + $0xd0] sm:$0xff] (!%p442_p9)  ;;  %v6255_v5 = vld [vmem:[%s11080_s1 + $0xe8] sm:$0xff] (!%p442_p9)  ;;  %v6257_v6 = vld [vmem:[%s11080_s1 + $0xf8] sm:$0xff] (!%p442_p9)  ;;  %769 = vmatprep.mubr.f32.mxu0 (!%p442_p9), %v8243_v7  ;;  %p490_p10 = scmp.lt.s32.totalorder (!%p442_p9), %s6248_s29, 63  ;;  %vm2905_vm1 = vcmask (!%p442_p9), 1014784  }
  0x13   : > { %v7133_v8 = vpack.c.bf16 (!%p442_p9), %v6252_v4, %v6250_v2  ;;  %v7135_v9 = vpack.c.bf16 (!%p442_p9), %v6257_v6, %v6255_v5  ;;  %v6254_v10 = vld [vmem:[%s11080_s1 + $0xe0] sm:$0xff] (!%p442_p9)  ;;  %v6256_v11 = vld [vmem:[%s11080_s1 + $0xf0] sm:$0xff] (!%p442_p9)  ;;  %v6259_v12 = vld [vmem:[%s11080_s1 + $0x108] sm:$0xff] (!%p442_p9)  ;;  %vm2948_vm2 = vcmask (!%p442_p9), 1043456   ;;  %vm8244_vm3 = vmmov (!%p442_p9), 1   ;;  %s486_s21 = sand.u32 (!%p442_p9), 1, %s8233_s19  }
  0x14   : > { %7132 = vmatprep.subr.bf16.mxu0 (!%p442_p9), %v7131_v3  ;;  %v6261_v13 = vld [vmem:[%s11080_s1 + $0x118] sm:$0xff] (!%p442_p9)  ;;  %v7137_v14 = vpack.c.bf16 (!%p442_p9), %v6256_v11, %v6254_v10  ;;  %v6258_v16 = vld [vmem:[%s11080_s1 + $0x100] sm:$0xff] (!%p442_p9)  ;;  %v6260_v17 = vld [vmem:[%s11080_s1 + $0x110] sm:$0xff] (!%p442_p9)  ;;  %vm3373_vm5 = vcmask (!%p442_p9), 326656   ;;  %vm3722_vm6 = vcmask (!%p442_p9), 687104   ;;  %vm5063_vm7 = vcmask (!%p442_p9), 883712  }
  0x15   : > { %7134 = vmatpush1.bf16.msra.mxu0 (!%p442_p9), %v7133_v8  ;;  %v7139_v15 = vpack.c.bf16 (!%p442_p9), %v6261_v13, %v6259_v12  ;;  %v6263_v18 = vld [vmem:[%s11080_s1 + $0x128] sm:$0xff] (!%p442_p9)  ;;  %v6265_v19 = vld [vmem:[%s11080_s1 + $0x138] sm:$0xff] (!%p442_p9)  ;;  %v7141_v20 = vpack.c.bf16 (!%p442_p9), %v6260_v17, %v6258_v16  ;;  %v6262_v22 = vld [vmem:[%s11080_s1 + $0x120] sm:$0xff] (!%p442_p9)  ;;  %vm5326_vm8 = vcmask (!%p442_p9), 261120   ;;  %vm8246_vm9 = vmmov (!%p442_p9), 0   ;;  %s6171_s26 = scalar_lea.sflag (!%p442_p9), [#allocation4], %s486_s21 }
  0x16   : > { %7136 = vmatprep.subr.bf16.mxu0 (!%p442_p9), %v7135_v9  ;;  %v7143_v21 = vpack.c.bf16 (!%p442_p9), %v6265_v19, %v6263_v18  ;;  %v6264_v23 = vld [vmem:[%s11080_s1 + $0x130] sm:$0xff] (!%p442_p9)  ;;  %v6267_v24 = vld [vmem:[%s11080_s1 + $0x148] sm:$0xff] (!%p442_p9)  ;;  %v6269_v25 = vld [vmem:[%s11080_s1 + $0x158] sm:$0xff] (!%p442_p9)  ;;  %vm5569_vm10 = vcmask (!%p442_p9), 654336   ;;  %vm6002_vm11 = vcmask (!%p442_p9), 982016   ;;  %vm6095_vm12 = vcmask (!%p442_p9), 1041408  }
  0x17   : > { %v7145_v26 = vpack.c.bf16 (!%p442_p9), %v6264_v23, %v6262_v22  ;;  %v7147_v27 = vpack.c.bf16 (!%p442_p9), %v6269_v25, %v6267_v24  ;;  %v6266_v28 = vld [vmem:[%s11080_s1 + $0x140] sm:$0xff] (!%p442_p9)  ;;  %v6268_v29 = vld [vmem:[%s11080_s1 + $0x150] sm:$0xff] (!%p442_p9)  ;;  %v6271_v30 = vld [vmem:[%s11080_s1 + $0x168] sm:$0xff] (!%p442_p9)  ;;  %vm6091_vm13 = vcmask (!%p442_p9), 408576  }
  0x18   : > { %v6273_v31 = vld [vmem:[%s11080_s1 + $0x178] sm:$0xff] (!%p442_p9)  ;;  %v7149_v32 = vpack.c.bf16 (!%p442_p9), %v6268_v29, %v6266_v28  ;;  %v6270_v34 = vld [vmem:[%s11080_s1 + $0x160] sm:$0xff] (!%p442_p9)  ;;  %v6272_v35 = vld [vmem:[%s11080_s1 + $0x170] sm:$0xff] (!%p442_p9) }
  0x19   : > { %7138 = vmatpush1.bf16.msra.mxu0 %v7137_v14  ;;  %s11120_s29 = smov (!%p490_p10, %s6248_s29), 63  ;;  %v7151_v33 = vpack.c.bf16 %v6273_v31, %v6271_v30  ;;  %v528_v36 = vld [vmem:[%s11080_s1 + $0x8] sm:$0xff]  ;;  %v530_v37 = vld [vmem:[%s11080_s1 + $0x18] sm:$0xff]  ;;  %v7153_v38 = vpack.c.bf16 %v6272_v35, %v6270_v34  ;;  %v527_v40 = vld [vmem:[%s11080_s1] sm:$0xff] }
  0x1a   : > { %7140 = vmatprep.subr.bf16.mxu0 %v7139_v15  ;;  %s6249_s18 = sshll.u32 %s11120_s29, 3  ;;  %v7155_v39 = vpack.c.bf16 %v530_v37, %v528_v36  ;;  %v529_v41 = vld [vmem:[%s11080_s1 + $0x10] sm:$0xff]  ;;  %v532_v42 = vld [vmem:[%s11080_s1 + $0x28] sm:$0xff]  ;;  %v534_v43 = vld [vmem:[%s11080_s1 + $0x38] sm:$0xff]  ;;  %s6884_s29 = sshll.u32 %s8349_s22, 7 }
  0x1b   : > { %s8459_s17 = scalar_lea.vmem %s11079_s0, %s6249_s18  ;;  %v7157_v45 = vpack.c.bf16 %v529_v41, %v527_v40  ;;  %v7159_v46 = vpack.c.bf16 %v534_v43, %v532_v42  ;;  %v531_v47 = vld [vmem:[%s11080_s1 + $0x20] sm:$0xff]  ;;  %v533_v48 = vld [vmem:[%s11080_s1 + $0x30] sm:$0xff]  ;;  %v536_v49 = vld [vmem:[%s11080_s1 + $0x48] sm:$0xff]  ;;  %s6247_s18 = sshll.u32 %s486_s21, 3 }
  0x1c   : > { %v551_v44 = vld [vmem:[%s8459_s17 + $0x1] sm:$0xff]  ;;  %v538_v50 = vld [vmem:[%s11080_s1 + $0x58] sm:$0xff]  ;;  %v552_v51 = vld [vmem:[%s8459_s17 + $0x9] sm:$0xff]  ;;  %v7161_v52 = vpack.c.bf16 %v533_v48, %v531_v47  ;;  %s488_s27 = scalar_lea.vmem [#allocation3], %s6247_s18  ;;  %s11037_s25 = scalar_lea.hbm %s11094_s15, %s6884_s29 }
  0x1d   : > { %7142 = vmatpush1.bf16.msra.mxu0 %v7141_v20  ;;  %v7163_v53 = vpack.c.bf16 %v538_v50, %v536_v49  ;;  %v535_v54 = vld [vmem:[%s11080_s1 + $0x40] sm:$0xff]  ;;  %v537_v55 = vld [vmem:[%s11080_s1 + $0x50] sm:$0xff]  ;;  %v540_v56 = vld [vmem:[%s11080_s1 + $0x68] sm:$0xff]  ;;  %s8247_s22 = smov [#allocation3]  }
  0x1e   : > { %7144 = vmatprep.subr.bf16.mxu0 %v7143_v21  ;;  %v542_v57 = vld [vmem:[%s11080_s1 + $0x78] sm:$0xff]  ;;  %v7165_v59 = vpack.c.bf16 %v537_v55, %v535_v54  ;;  %v539_v61 = vld [vmem:[%s11080_s1 + $0x60] sm:$0xff]  ;;  %v541_v62 = vld [vmem:[%s11080_s1 + $0x70] sm:$0xff]  ;;  %s8183_s18 = sshll.u32 %s8247_s22, 4  ;;  %s8184_s18 = int_to_ptr.vmem [resolvable:$false] %s8183_s18 }
  0x1f   : > { %v553_v58 = vld [vmem:[%s8459_s17 + $0x11] sm:$0xff]  ;;  %v7167_v60 = vpack.c.bf16 %v542_v57, %v540_v56  ;;  %v544_v63 = vld [vmem:[%s11080_s1 + $0x88] sm:$0xff]  ;;  %v554_v1 = vld [vmem:[%s8459_s17 + $0x19] sm:$0xff]  ;;  %v7169_v2 = vpack.c.bf16 %v541_v62, %v539_v61  ;;  %s8185_s16 = scalar_lea.vmem %s8184_s18, 256 }
  0x20   : > { %v546_v0 = vld [vmem:[%s11080_s1 + $0x98] sm:$0xff]  ;;  %v543_v4 = vld [vmem:[%s11080_s1 + $0x80] sm:$0xff]  ;;  %v545_v5 = vld [vmem:[%s11080_s1 + $0x90] sm:$0xff] }
  0x21   : > { %7146 = vmatpush1.bf16.msra.mxu0 %v7145_v26  ;;  %v7171_v3 = vpack.c.bf16 %v546_v0, %v544_v63  ;;  %v548_v6 = vld [vmem:[%s11080_s1 + $0xa8] sm:$0xff]  ;;  %v550_v8 = vld [vmem:[%s11080_s1 + $0xb8] sm:$0xff]  ;;  %v7173_v10 = vpack.c.bf16 %v545_v5, %v543_v4  ;;  %v547_v12 = vld [vmem:[%s11080_s1 + $0xa0] sm:$0xff] }
  0x22   : > { %7148 = vmatprep.subr.bf16.mxu0 %v7147_v27  ;;  %v555_v9 = vld [vmem:[%s8459_s17 + $0x21] sm:$0xff]  ;;  %v7175_v11 = vpack.c.bf16 %v550_v8, %v548_v6  ;;  %v549_v13 = vld [vmem:[%s11080_s1 + $0xb0] sm:$0xff]  ;;  %v6341_v15 = vld [vmem:[%s11080_s1 + $0x198] sm:$0xff] }
  0x23   : > { %v6339_v14 = vld [vmem:[%s11080_s1 + $0x188] sm:$0xff]  ;;  %v7177_v17 = vpack.c.bf16 %v549_v13, %v547_v12  ;;  %v557_v19 = vld [vmem:[%s8459_s17 + $0x31] sm:$0xff]  ;;  %v558_v20 = vld [vmem:[%s8459_s17 + $0x39] sm:$0xff] }
  0x24   : > { %v556_v16 = vld [vmem:[%s8459_s17 + $0x29] sm:$0xff]  ;;  %v7179_v18 = vpack.c.bf16 %v6341_v15, %v6339_v14  ;;  %v559_v21 = vld [vmem:[%s8459_s17 + $0x41] sm:$0xff]  ;;  %v561_v23 = vld [vmem:[%s8459_s17 + $0x51] sm:$0xff] }
  0x25   : > { %7150 = vmatpush1.bf16.msra.mxu0 %v7149_v32  ;;  %v560_v22 = vld [vmem:[%s8459_s17 + $0x49] sm:$0xff]  ;;  %v562_v24 = vld [vmem:[%s8459_s17 + $0x59] sm:$0xff]  ;;  %v563_v25 = vld [vmem:[%s8459_s17 + $0x61] sm:$0xff] }
  0x26   : > { %7152 = vmatprep.subr.bf16.mxu0 %v7151_v33  ;;  %v564_v26 = vld [vmem:[%s8459_s17 + $0x69] sm:$0xff]  ;;  %v565_v27 = vld [vmem:[%s8459_s17 + $0x71] sm:$0xff]  ;;  %v566_v28 = vld [vmem:[%s8459_s17 + $0x79] sm:$0xff] }
  0x27   : > { %v567_v29 = vld [vmem:[%s8459_s17 + $0x81] sm:$0xff]  ;;  %v568_v30 = vld [vmem:[%s8459_s17 + $0x89] sm:$0xff]  ;;  %v569_v31 = vld [vmem:[%s8459_s17 + $0x91] sm:$0xff] }
  0x28   : > { %v570_v32 = vld [vmem:[%s8459_s17 + $0x99] sm:$0xff]  ;;  %v571_v33 = vld [vmem:[%s8459_s17 + $0xa1] sm:$0xff]  ;;  %v572_v34 = vld [vmem:[%s8459_s17 + $0xa9] sm:$0xff] }
  0x29   : > { %7154 = vmatpush1.bf16.msra.mxu0 %v7153_v38  ;;  %v573_v35 = vld [vmem:[%s8459_s17 + $0xb1] sm:$0xff]  ;;  %v574_v36 = vld [vmem:[%s8459_s17 + $0xb9] sm:$0xff]  ;;  %v575_v37 = vld [vmem:[%s8459_s17 + $0xc1] sm:$0xff] }
  0x2a   : > { %7156 = vmatprep.subr.bf16.mxu0 %v7155_v39  ;;  %v576_v38 = vld [vmem:[%s8459_s17 + $0xc9] sm:$0xff]  ;;  %v577_v39 = vld [vmem:[%s8459_s17 + $0xd1] sm:$0xff]  ;;  %v578_v40 = vld [vmem:[%s8459_s17 + $0xd9] sm:$0xff] }
  0x2b   : > { %v579_v41 = vld [vmem:[%s8459_s17 + $0xe1] sm:$0xff]  ;;  %v580_v42 = vld [vmem:[%s8459_s17 + $0xe9] sm:$0xff]  ;;  %v581_v43 = vld [vmem:[%s8459_s17 + $0xf1] sm:$0xff] }
  0x2c   : > { %6274 = vmatmul.mubr.msk.f32.vlgmr.msra.gmra.mrb[0].mxu0 %vm608_vm0, %v551_v44  ;;  %v582_v44 = vld [vmem:[%s8459_s17 + $0xf9] sm:$0xf]  ;;  %v6343_v47 = vld [vmem:[%s11080_s1 + $0x1a8] sm:$0xff]  ;;  %v495_v49 = vld [vmem:[%s8459_s17] sm:$0xff] }
  0x2d   : > { %775 = vmatprep.mubr.f32.mxu0 %v8243_v7  ;;  %7158 = vmatpush1.bf16.msra.mxu0 %v7157_v45  ;;  %v6338_v45 = vld [vmem:[%s11080_s1 + $0x180] sm:$0xff]  ;;  %v6345_v48 = vld [vmem:[%s11080_s1 + $0x1b8] sm:$0xff]  ;;  %v6347_v54 = vld [vmem:[%s11080_s1 + $0x1c8] sm:$0xff] }
  0x2e   : > { %7160 = vmatprep.subr.bf16.mxu0 %v7159_v46  ;;  %v6340_v46 = vld [vmem:[%s11080_s1 + $0x190] sm:$0xff]  ;;  %v6349_v55 = vld [vmem:[%s11080_s1 + $0x1d8] sm:$0xff]  ;;  %v496_v56 = vld [vmem:[%s8459_s17 + $0x8] sm:$0xff] }
  0x2f   : > { %v7181_v50 = vpack.c.bf16 %v6340_v46, %v6338_v45  ;;  %v6351_v61 = vld [vmem:[%s11080_s1 + $0x1e8] sm:$0xff]  ;;  %v6353_v62 = vld [vmem:[%s11080_s1 + $0x1f8] sm:$0xff]  ;;  %v497_v63 = vld [vmem:[%s8459_s17 + $0x10] sm:$0xff] }
  0x30   : > { %6275 = vmatmul.mubr.msk.f32.gmra.mrb[2].mxu0 %vm608_vm0, %v552_v51  ;;  %v7183_v51 = vpack.c.bf16 %v6345_v48, %v6343_v47  ;;  %v6355_v4 = vld [vmem:[%s11080_s1 + $0x208] sm:$0xff]  ;;  %v6357_v5 = vld [vmem:[%s11080_s1 + $0x218] sm:$0xff]  ;;  %v499_v14 = vld [vmem:[%s8459_s17 + $0x20] sm:$0xff] }
  0x31   : > { %781 = vmatprep.mubr.f32.mxu0 %v8243_v7  ;;  %7162 = vmatpush1.bf16.msra.mxu0 %v7161_v52  ;;  %v6342_v52 = vld [vmem:[%s11080_s1 + $0x1a0] sm:$0xff]  ;;  %v498_v6 = vld [vmem:[%s8459_s17 + $0x18] sm:$0xff]  ;;  %v6359_v12 = vld [vmem:[%s11080_s1 + $0x228] sm:$0xff] }
  0x32   : > { %7164 = vmatprep.subr.bf16.mxu0 %v7163_v53  ;;  %v6344_v53 = vld [vmem:[%s11080_s1 + $0x1b0] sm:$0xff]  ;;  %v6361_v13 = vld [vmem:[%s11080_s1 + $0x238] sm:$0xff]  ;;  %v523_v46 = vld [vmem:[%s8459_s17 + $0xe0] sm:$0xff] }
  0x33   : > { %v7185_v57 = vpack.c.bf16 %v6344_v53, %v6342_v52  ;;  %v522_v45 = vld [vmem:[%s8459_s17 + $0xd8] sm:$0xff]  ;;  %v524_v47 = vld [vmem:[%s8459_s17 + $0xe8] sm:$0xff]  ;;  %v525_v48 = vld [vmem:[%s8459_s17 + $0xf0] sm:$0xff] }
  0x34   : > { %6276 = vmatmul.mubr.msk.f32.gmra.mrb[4].mxu0 %vm608_vm0, %v553_v58  ;;  %v7187_v58 = vpack.c.bf16 %v6349_v55, %v6347_v54  ;;  %v6399_v52 = vld [vmem:[%s11080_s1 + $0x268] sm:$0xff]  ;;  %v6401_v53 = vld [vmem:[%s11080_s1 + $0x278] sm:$0xff]  ;;  %vm9398_vm4 = vmpackc.low %vm2948_vm2, %vm8244_vm3 }
  0x35   : > { %787 = vmatprep.mubr.f32.mxu0 %v8243_v7  ;;  %7166 = vmatpush1.bf16.msra.mxu0 %v7165_v59  ;;  %v6346_v59 = vld [vmem:[%s11080_s1 + $0x1c0] sm:$0xff] }
  0x36   : > { %7168 = vmatprep.subr.bf16.mxu0 %v7167_v60  ;;  %v6348_v60 = vld [vmem:[%s11080_s1 + $0x1d0] sm:$0xff]  ;;  %v1315_v54 = vld [vmem:[%s8459_s17 + $0x2] sm:$0xff] }
  0x37   : > { %v7189_v0 = vpack.c.bf16 %v6348_v60, %v6346_v59  ;;  %v6403_v59 = vld [vmem:[%s11080_s1 + $0x288] sm:$0xff]  ;;  %v6405_v60 = vld [vmem:[%s11080_s1 + $0x298] sm:$0xff] }
  0x38   : > { %6277 = vmatmul.mubr.msk.f32.gmra.mrb[6].mxu0 %vm608_vm0, %v554_v1  ;;  %v7191_v1 = vpack.c.bf16 %v6353_v62, %v6351_v61  ;;  %v1316_v61 = vld [vmem:[%s8459_s17 + $0xa] sm:$0xff] }
  0x39   : > { %793 = vmatprep.mubr.f32.mxu0 %v8243_v7  ;;  %7170 = vmatpush1.bf16.msra.mxu0 %v7169_v2  ;;  %v6350_v2 = vld [vmem:[%s11080_s1 + $0x1e0] sm:$0xff] }
  0x3a   : > { %7172 = vmatprep.subr.bf16.mxu0 %v7171_v3  ;;  %v6352_v3 = vld [vmem:[%s11080_s1 + $0x1f0] sm:$0xff] }
  0x3b   : > { %v7193_v8 = vpack.c.bf16 %v6352_v3, %v6350_v2  ;;  %v6407_v2 = vld [vmem:[%s11080_s1 + $0x2a8] sm:$0xff]  ;;  %v6409_v3 = vld [vmem:[%s11080_s1 + $0x2b8] sm:$0xff] }
  0x3c   : > { %6278 = vmatmul.mubr.msk.f32.gmra.mrb[8].mxu0 %vm608_vm0, %v555_v9  ;;  %v7195_v9 = vpack.c.bf16 %v6357_v5, %v6355_v4  ;;  %v1317_v4 = vld [vmem:[%s8459_s17 + $0x12] sm:$0xff] }
  0x3d   : > { %799 = vmatprep.mubr.f32.mxu0 %v8243_v7  ;;  %7174 = vmatpush1.bf16.msra.mxu0 %v7173_v10  ;;  %v6354_v10 = vld [vmem:[%s11080_s1 + $0x200] sm:$0xff] }
  0x3e   : > { %7176 = vmatprep.subr.bf16.mxu0 %v7175_v11  ;;  %v6356_v11 = vld [vmem:[%s11080_s1 + $0x210] sm:$0xff] }
  0x3f   : > { %v7197_v15 = vpack.c.bf16 %v6356_v11, %v6354_v10  ;;  %v6411_v10 = vld [vmem:[%s11080_s1 + $0x2c8] sm:$0xff]  ;;  %v6413_v11 = vld [vmem:[%s11080_s1 + $0x2d8] sm:$0xff] }
  0x40   : > { %6279 = vmatmul.mubr.msk.f32.gmra.mrb[10].mxu0 %vm608_vm0, %v556_v16  ;;  %v7199_v16 = vpack.c.bf16 %v6361_v13, %v6359_v12  ;;  %v1318_v12 = vld [vmem:[%s8459_s17 + $0x1a] sm:$0xff] }
  0x41   : > { %805 = vmatprep.mubr.f32.mxu0 %v8243_v7  ;;  %7178 = vmatpush1.bf16.msra.mxu0 %v7177_v17  ;;  %v6358_v17 = vld [vmem:[%s11080_s1 + $0x220] sm:$0xff] }
  0x42   : > { %7180 = vmatprep.subr.bf16.mxu0 %v7179_v18  ;;  %v6360_v18 = vld [vmem:[%s11080_s1 + $0x230] sm:$0xff] }
  0x44   : > { %6280 = vmatmul.mubr.msk.f32.gmra.mrb[12].mxu0 %vm608_vm0, %v557_v19  ;;  %v6395_v19 = vld [vmem:[%s11080_s1 + $0x248] sm:$0xff] }
  0x45   : > { %811 = vmatprep.mubr.f32.mxu0 %v8243_v7 }
  0x48   : > { %6281 = vmatmul.mubr.msk.f32.gmra.mrb[14].mxu0 %vm608_vm0, %v558_v20  ;;  %v6397_v20 = vld [vmem:[%s11080_s1 + $0x258] sm:$0xff] }
  0x49   : > { %817 = vmatprep.mubr.f32.mxu0 %v8243_v7 }
  0x4c   : > { %6282 = vmatmul.mubr.msk.f32.gmra.mrb[16].mxu0 %vm608_vm0, %v559_v21  ;;  %v500_v21 = vld [vmem:[%s8459_s17 + $0x28] sm:$0xff] }
  0x4d   : > { %823 = vmatprep.mubr.f32.mxu0 %v8243_v7 }
  0x50   : > { %6283 = vmatmul.mubr.msk.f32.gmra.mrb[18].mxu0 %vm608_vm0, %v560_v22  ;;  %v7201_v22 = vpack.c.bf16 %v6360_v18, %v6358_v17  ;;  %v6415_v17 = vld [vmem:[%s11080_s1 + $0x2e8] sm:$0xff]  ;;  %v6417_v18 = vld [vmem:[%s11080_s1 + $0x2f8] sm:$0xff] }
  0x51   : > { %829 = vmatprep.mubr.f32.mxu0 %v8243_v7 }
  0x54   : > { %6284 = vmatmul.mubr.msk.f32.gmra.mrb[20].mxu0 %vm608_vm0, %v561_v23  ;;  %v7203_v23 = vpack.c.bf16 %v6397_v20, %v6395_v19  ;;  %v1319_v19 = vld [vmem:[%s8459_s17 + $0x22] sm:$0xff] }
  0x55   : > { %835 = vmatprep.mubr.f32.mxu0 %v8243_v7 }
  0x58   : > { %6285 = vmatmul.mubr.msk.f32.gmra.mrb[22].mxu0 %vm608_vm0, %v562_v24  ;;  %v501_v24 = vld [vmem:[%s8459_s17 + $0x30] sm:$0xff] }
  0x59   : > { %841 = vmatprep.mubr.f32.mxu0 %v8243_v7 }
  0x5c   : > { %6286 = vmatmul.mubr.msk.f32.gmra.mrb[24].mxu0 %vm608_vm0, %v563_v25  ;;  %v502_v25 = vld [vmem:[%s8459_s17 + $0x38] sm:$0xff] }
  0x5d   : > { %847 = vmatprep.mubr.f32.mxu0 %v8243_v7 }
  0x60   : > { %6287 = vmatmul.mubr.msk.f32.gmra.mrb[26].mxu0 %vm608_vm0, %v564_v26  ;;  %v503_v26 = vld [vmem:[%s8459_s17 + $0x40] sm:$0xff] }
  0x61   : > { %853 = vmatprep.mubr.f32.mxu0 %v8243_v7 }
  0x64   : > { %6288 = vmatmul.mubr.msk.f32.gmra.mrb[28].mxu0 %vm608_vm0, %v565_v27  ;;  %v504_v27 = vld [vmem:[%s8459_s17 + $0x48] sm:$0xff] }
  0x65   : > { %859 = vmatprep.mubr.f32.mxu0 %v8243_v7 }
  0x68   : > { %6289 = vmatmul.mubr.msk.f32.gmra.mrb[30].mxu0 %vm608_vm0, %v566_v28  ;;  %v505_v28 = vld [vmem:[%s8459_s17 + $0x50] sm:$0xff] }
  0x69   : > { %865 = vmatprep.mubr.f32.mxu0 %v8243_v7 }
  0x6c   : > { %6290 = vmatmul.mubr.msk.f32.gmra.mrb[32].mxu0 %vm608_vm0, %v567_v29  ;;  %v506_v29 = vld [vmem:[%s8459_s17 + $0x58] sm:$0xff] }
  0x6d   : > { %871 = vmatprep.mubr.f32.mxu0 %v8243_v7 }
  0x70   : > { %6291 = vmatmul.mubr.msk.f32.gmra.mrb[34].mxu0 %vm608_vm0, %v568_v30  ;;  %v507_v30 = vld [vmem:[%s8459_s17 + $0x60] sm:$0xff] }
  0x71   : > { %877 = vmatprep.mubr.f32.mxu0 %v8243_v7 }
  0x74   : > { %6292 = vmatmul.mubr.msk.f32.gmra.mrb[36].mxu0 %vm608_vm0, %v569_v31  ;;  %v508_v31 = vld [vmem:[%s8459_s17 + $0x68] sm:$0xff] }
  0x75   : > { %883 = vmatprep.mubr.f32.mxu0 %v8243_v7 }
  0x78   : > { %6293 = vmatmul.mubr.msk.f32.gmra.mrb[38].mxu0 %vm608_vm0, %v570_v32  ;;  %v509_v32 = vld [vmem:[%s8459_s17 + $0x70] sm:$0xff] }
  0x79   : > { %889 = vmatprep.mubr.f32.mxu0 %v8243_v7 }
  0x7c   : > { %6294 = vmatmul.mubr.msk.f32.gmra.mrb[40].mxu0 %vm608_vm0, %v571_v33  ;;  %v510_v33 = vld [vmem:[%s8459_s17 + $0x78] sm:$0xff] }
  0x7d   : > { %895 = vmatprep.mubr.f32.mxu0 %v8243_v7 }
  0x80   : > { %6295 = vmatmul.mubr.msk.f32.gmra.mrb[42].mxu0 %vm608_vm0, %v572_v34  ;;  %v511_v34 = vld [vmem:[%s8459_s17 + $0x80] sm:$0xff] }
  0x81   : > { %901 = vmatprep.mubr.f32.mxu0 %v8243_v7 }
  0x84   : > { %6296 = vmatmul.mubr.msk.f32.gmra.mrb[44].mxu0 %vm608_vm0, %v573_v35  ;;  %v512_v35 = vld [vmem:[%s8459_s17 + $0x88] sm:$0xff] }
  0x85   : > { %907 = vmatprep.mubr.f32.mxu0 %v8243_v7 }
  0x88   : > { %6297 = vmatmul.mubr.msk.f32.gmra.mrb[46].mxu0 %vm608_vm0, %v574_v36  ;;  %v513_v36 = vld [vmem:[%s8459_s17 + $0x90] sm:$0xff] }
  0x89   : > { %913 = vmatprep.mubr.f32.mxu0 %v8243_v7 }
  0x8c   : > { %6298 = vmatmul.mubr.msk.f32.gmra.mrb[48].mxu0 %vm608_vm0, %v575_v37  ;;  %v514_v37 = vld [vmem:[%s8459_s17 + $0x98] sm:$0xff] }
  0x8d   : > { %919 = vmatprep.mubr.f32.mxu0 %v8243_v7 }
  0x90   : > { %6299 = vmatmul.mubr.msk.f32.gmra.mrb[50].mxu0 %vm608_vm0, %v576_v38  ;;  %v515_v38 = vld [vmem:[%s8459_s17 + $0xa0] sm:$0xff] }
  0x91   : > { %925 = vmatprep.mubr.f32.mxu0 %v8243_v7 }
  0x94   : > { %6300 = vmatmul.mubr.msk.f32.gmra.mrb[52].mxu0 %vm608_vm0, %v577_v39  ;;  %v516_v39 = vld [vmem:[%s8459_s17 + $0xa8] sm:$0xff] }
  0x95   : > { %931 = vmatprep.mubr.f32.mxu0 %v8243_v7 }
  0x98   : > { %6301 = vmatmul.mubr.msk.f32.gmra.mrb[54].mxu0 %vm608_vm0, %v578_v40  ;;  %v517_v40 = vld [vmem:[%s8459_s17 + $0xb0] sm:$0xff] }
  0x99   : > { %937 = vmatprep.mubr.f32.mxu0 %v8243_v7 }
  0x9c   : > { %6302 = vmatmul.mubr.msk.f32.gmra.mrb[56].mxu0 %vm608_vm0, %v579_v41  ;;  %v518_v41 = vld [vmem:[%s8459_s17 + $0xb8] sm:$0xff] }
  0x9d   : > { %943 = vmatprep.mubr.f32.mxu0 %v8243_v7 }
  0xa0   : > { %6303 = vmatmul.mubr.msk.f32.gmra.mrb[58].mxu0 %vm608_vm0, %v580_v42  ;;  %v519_v42 = vld [vmem:[%s8459_s17 + $0xc0] sm:$0xff] }
  0xa1   : > { %949 = vmatprep.mubr.f32.mxu0 %v8243_v7 }
  0xa4   : > { %6304 = vmatmul.mubr.msk.f32.gmra.mrb[60].mxu0 %vm608_vm0, %v581_v43  ;;  %v520_v43 = vld [vmem:[%s8459_s17 + $0xc8] sm:$0xff] }
  0xa5   : > { %955 = vmatprep.mubr.f32.mxu0 %v8243_v7 }
  0xa8   : > { %6305 = vmatmul.mubr.msk.f32.gmra.mrb[62].mxu0 %vm608_vm0, %v582_v44  ;;  %v521_v44 = vld [vmem:[%s8459_s17 + $0xd0] sm:$0xff] }
  0xa9   : > { %1122 = vmatprep.mubr.f32.mxu0 %v8243_v7 }
  0xac   : > { %6306 = vmatmul.mubr.msk.f32.vlgmr.msra.gmra.mrb[0].mxu0 %vm608_vm0, %v495_v49  ;;  %v526_v49 = vld [vmem:[%s8459_s17 + $0xf8] sm:$0xf] }
  0xad   : > { %1128 = vmatprep.mubr.f32.mxu0 %v8243_v7  ;;  %7182 = vmatpush1.bf16.msra.mxu0 %v7181_v50  ;;  %v6394_v50 = vld [vmem:[%s11080_s1 + $0x240] sm:$0xff] }
  0xae   : > { %7184 = vmatprep.subr.bf16.mxu0 %v7183_v51  ;;  %v6396_v51 = vld [vmem:[%s11080_s1 + $0x250] sm:$0xff] }
  0xaf   : > { %v7205_v55 = vpack.c.bf16 %v6396_v51, %v6394_v50  ;;  %v1342_v50 = vld [vmem:[%s8459_s17 + $0xda] sm:$0xff]  ;;  %v1343_v51 = vld [vmem:[%s8459_s17 + $0xe2] sm:$0xff] }
  0xb0   : > { %6307 = vmatmul.mubr.msk.f32.gmra.mrb[2].mxu0 %vm608_vm0, %v496_v56  ;;  %v7207_v56 = vpack.c.bf16 %v6401_v53, %v6399_v52  ;;  %v1344_v52 = vld [vmem:[%s8459_s17 + $0xea] sm:$0xff]  ;;  %v1345_v53 = vld [vmem:[%s8459_s17 + $0xf2] sm:$0xff] }
  0xb1   : > { %1134 = vmatprep.mubr.f32.mxu0 %v8243_v7  ;;  %7186 = vmatpush1.bf16.msra.mxu0 %v7185_v57  ;;  %v6398_v57 = vld [vmem:[%s11080_s1 + $0x260] sm:$0xff] }
  0xb2   : > { %7188 = vmatprep.subr.bf16.mxu0 %v7187_v58  ;;  %v6400_v58 = vld [vmem:[%s11080_s1 + $0x270] sm:$0xff] }
  0xb3   : > { %v7209_v62 = vpack.c.bf16 %v6400_v58, %v6398_v57  ;;  %v6455_v57 = vld [vmem:[%s11080_s1 + $0x328] sm:$0xff]  ;;  %v6457_v58 = vld [vmem:[%s11080_s1 + $0x338] sm:$0xff] }
  0xb4   : > { %6308 = vmatmul.mubr.msk.f32.gmra.mrb[4].mxu0 %vm608_vm0, %v497_v63  ;;  %v7211_v63 = vpack.c.bf16 %v6405_v60, %v6403_v59  ;;  %v1789_v59 = vld [vmem:[%s8459_s17 + $0x3] sm:$0xff] }
  0xb5   : > { %1140 = vmatprep.mubr.f32.mxu0 %v8243_v7  ;;  %7190 = vmatpush1.bf16.msra.mxu0 %v7189_v0  ;;  %v6402_v0 = vld [vmem:[%s11080_s1 + $0x280] sm:$0xff] }
  0xb6   : > { %7192 = vmatprep.subr.bf16.mxu0 %v7191_v1  ;;  %v6404_v1 = vld [vmem:[%s11080_s1 + $0x290] sm:$0xff] }
  0xb7   : > { %v7213_v5 = vpack.c.bf16 %v6404_v1, %v6402_v0  ;;  %v6459_v0 = vld [vmem:[%s11080_s1 + $0x348] sm:$0xff]  ;;  %v6461_v1 = vld [vmem:[%s11080_s1 + $0x358] sm:$0xff] }
  0xb8   : > { %6309 = vmatmul.mubr.msk.f32.gmra.mrb[6].mxu0 %vm608_vm0, %v498_v6  ;;  %v7215_v6 = vpack.c.bf16 %v6409_v3, %v6407_v2  ;;  %v1790_v2 = vld [vmem:[%s8459_s17 + $0xb] sm:$0xff] }
  0xb9   : > { %1146 = vmatprep.mubr.f32.mxu0 %v8243_v7  ;;  %7194 = vmatpush1.bf16.msra.mxu0 %v7193_v8  ;;  %v6406_v8 = vld [vmem:[%s11080_s1 + $0x2a0] sm:$0xff] }
  0xba   : > { %7196 = vmatprep.subr.bf16.mxu0 %v7195_v9  ;;  %v6408_v9 = vld [vmem:[%s11080_s1 + $0x2b0] sm:$0xff] }
  0xbb   : > { %v7217_v13 = vpack.c.bf16 %v6408_v9, %v6406_v8  ;;  %v6463_v8 = vld [vmem:[%s11080_s1 + $0x368] sm:$0xff]  ;;  %v6465_v9 = vld [vmem:[%s11080_s1 + $0x378] sm:$0xff] }
  0xbc   : > { %6310 = vmatmul.mubr.msk.f32.gmra.mrb[8].mxu0 %vm608_vm0, %v499_v14  ;;  %v7219_v14 = vpack.c.bf16 %v6413_v11, %v6411_v10  ;;  %v1791_v10 = vld [vmem:[%s8459_s17 + $0x13] sm:$0xff] }
  0xbd   : > { %1152 = vmatprep.mubr.f32.mxu0 %v8243_v7  ;;  %7198 = vmatpush1.bf16.msra.mxu0 %v7197_v15  ;;  %v6410_v15 = vld [vmem:[%s11080_s1 + $0x2c0] sm:$0xff] }
  0xbe   : > { %7200 = vmatprep.subr.bf16.mxu0 %v7199_v16  ;;  %v6412_v16 = vld [vmem:[%s11080_s1 + $0x2d0] sm:$0xff] }
  0xbf   : > { %v7221_v20 = vpack.c.bf16 %v6412_v16, %v6410_v15  ;;  %v6467_v15 = vld [vmem:[%s11080_s1 + $0x388] sm:$0xff]  ;;  %v6469_v16 = vld [vmem:[%s11080_s1 + $0x398] sm:$0xff] }
  0xc0   : > { %6311 = vmatmul.mubr.msk.f32.gmra.mrb[10].mxu0 %vm608_vm0, %v500_v21  ;;  %v7223_v21 = vpack.c.bf16 %v6417_v18, %v6415_v17  ;;  %v1792_v17 = vld [vmem:[%s8459_s17 + $0x1b] sm:$0xff] }
  0xc1   : > { %1158 = vmatprep.mubr.f32.mxu0 %v8243_v7  ;;  %7202 = vmatpush1.bf16.msra.mxu0 %v7201_v22  ;;  %v6414_v22 = vld [vmem:[%s11080_s1 + $0x2e0] sm:$0xff] }
  0xc2   : > { %7204 = vmatprep.subr.bf16.mxu0 %v7203_v23  ;;  %v6416_v23 = vld [vmem:[%s11080_s1 + $0x2f0] sm:$0xff] }
  0xc4   : > { %6312 = vmatmul.mubr.msk.f32.gmra.mrb[12].mxu0 %vm608_vm0, %v501_v24  ;;  %v6451_v24 = vld [vmem:[%s11080_s1 + $0x308] sm:$0xff] }
  0xc5   : > { %1164 = vmatprep.mubr.f32.mxu0 %v8243_v7 }
  0xc8   : > { %6313 = vmatmul.mubr.msk.f32.gmra.mrb[14].mxu0 %vm608_vm0, %v502_v25  ;;  %v6453_v25 = vld [vmem:[%s11080_s1 + $0x318] sm:$0xff] }
  0xc9   : > { %1170 = vmatprep.mubr.f32.mxu0 %v8243_v7 }
  0xcc   : > { %6314 = vmatmul.mubr.msk.f32.gmra.mrb[16].mxu0 %vm608_vm0, %v503_v26  ;;  %v1320_v26 = vld [vmem:[%s8459_s17 + $0x2a] sm:$0xff] }
  0xcd   : > { %1176 = vmatprep.mubr.f32.mxu0 %v8243_v7 }
  0xd0   : > { %6315 = vmatmul.mubr.msk.f32.gmra.mrb[18].mxu0 %vm608_vm0, %v504_v27  ;;  %v7225_v27 = vpack.c.bf16 %v6416_v23, %v6414_v22  ;;  %v6471_v22 = vld [vmem:[%s11080_s1 + $0x3a8] sm:$0xff]  ;;  %v6473_v23 = vld [vmem:[%s11080_s1 + $0x3b8] sm:$0xff] }
  0xd1   : > { %1182 = vmatprep.mubr.f32.mxu0 %v8243_v7 }
  0xd4   : > { %6316 = vmatmul.mubr.msk.f32.gmra.mrb[20].mxu0 %vm608_vm0, %v505_v28  ;;  %v7227_v28 = vpack.c.bf16 %v6453_v25, %v6451_v24  ;;  %v1793_v24 = vld [vmem:[%s8459_s17 + $0x23] sm:$0xff] }
  0xd5   : > { %1188 = vmatprep.mubr.f32.mxu0 %v8243_v7 }
  0xd8   : > { %6317 = vmatmul.mubr.msk.f32.gmra.mrb[22].mxu0 %vm608_vm0, %v506_v29  ;;  %v1321_v29 = vld [vmem:[%s8459_s17 + $0x32] sm:$0xff] }
  0xd9   : > { %1194 = vmatprep.mubr.f32.mxu0 %v8243_v7 }
  0xdc   : > { %6318 = vmatmul.mubr.msk.f32.gmra.mrb[24].mxu0 %vm608_vm0, %v507_v30  ;;  %v1322_v30 = vld [vmem:[%s8459_s17 + $0x3a] sm:$0xff] }
  0xdd   : > { %1200 = vmatprep.mubr.f32.mxu0 %v8243_v7 }
  0xe0   : > { %6319 = vmatmul.mubr.msk.f32.gmra.mrb[26].mxu0 %vm608_vm0, %v508_v31  ;;  %v1323_v31 = vld [vmem:[%s8459_s17 + $0x42] sm:$0xff] }
  0xe1   : > { %1206 = vmatprep.mubr.f32.mxu0 %v8243_v7 }
  0xe4   : > { %6320 = vmatmul.mubr.msk.f32.gmra.mrb[28].mxu0 %vm608_vm0, %v509_v32  ;;  %v1324_v32 = vld [vmem:[%s8459_s17 + $0x4a] sm:$0xff] }
  0xe5   : > { %1212 = vmatprep.mubr.f32.mxu0 %v8243_v7 }
  0xe8   : > { %6321 = vmatmul.mubr.msk.f32.gmra.mrb[30].mxu0 %vm608_vm0, %v510_v33  ;;  %v1325_v33 = vld [vmem:[%s8459_s17 + $0x52] sm:$0xff] }
  0xe9   : > { %1218 = vmatprep.mubr.f32.mxu0 %v8243_v7 }
  0xec   : > { %6322 = vmatmul.mubr.msk.f32.gmra.mrb[32].mxu0 %vm608_vm0, %v511_v34  ;;  %v1326_v34 = vld [vmem:[%s8459_s17 + $0x5a] sm:$0xff] }
  0xed   : > { %1224 = vmatprep.mubr.f32.mxu0 %v8243_v7 }
  0xf0   : > { %6323 = vmatmul.mubr.msk.f32.gmra.mrb[34].mxu0 %vm608_vm0, %v512_v35  ;;  %v1327_v35 = vld [vmem:[%s8459_s17 + $0x62] sm:$0xff] }
  0xf1   : > { %1230 = vmatprep.mubr.f32.mxu0 %v8243_v7 }
  0xf4   : > { %6324 = vmatmul.mubr.msk.f32.gmra.mrb[36].mxu0 %vm608_vm0, %v513_v36  ;;  %v1328_v36 = vld [vmem:[%s8459_s17 + $0x6a] sm:$0xff] }
  0xf5   : > { %1236 = vmatprep.mubr.f32.mxu0 %v8243_v7 }
  0xf8   : > { %6325 = vmatmul.mubr.msk.f32.gmra.mrb[38].mxu0 %vm608_vm0, %v514_v37  ;;  %v1329_v37 = vld [vmem:[%s8459_s17 + $0x72] sm:$0xff] }
  0xf9   : > { %1242 = vmatprep.mubr.f32.mxu0 %v8243_v7 }
  0xfc   : > { %6326 = vmatmul.mubr.msk.f32.gmra.mrb[40].mxu0 %vm608_vm0, %v515_v38  ;;  %v1330_v38 = vld [vmem:[%s8459_s17 + $0x7a] sm:$0xff] }
  0xfd   : > { %1248 = vmatprep.mubr.f32.mxu0 %v8243_v7 }
 0x100   : > { %6327 = vmatmul.mubr.msk.f32.gmra.mrb[42].mxu0 %vm608_vm0, %v516_v39  ;;  %v1331_v39 = vld [vmem:[%s8459_s17 + $0x82] sm:$0xff] }
 0x101   : > { %1254 = vmatprep.mubr.f32.mxu0 %v8243_v7 }
 0x104   : > { %6328 = vmatmul.mubr.msk.f32.gmra.mrb[44].mxu0 %vm608_vm0, %v517_v40  ;;  %v1332_v40 = vld [vmem:[%s8459_s17 + $0x8a] sm:$0xff] }
 0x105   : > { %1260 = vmatprep.mubr.f32.mxu0 %v8243_v7 }
 0x108   : > { %6329 = vmatmul.mubr.msk.f32.gmra.mrb[46].mxu0 %vm608_vm0, %v518_v41  ;;  %v1333_v41 = vld [vmem:[%s8459_s17 + $0x92] sm:$0xff] }
 0x109   : > { %1266 = vmatprep.mubr.f32.mxu0 %v8243_v7 }
 0x10c   : > { %6330 = vmatmul.mubr.msk.f32.gmra.mrb[48].mxu0 %vm608_vm0, %v519_v42  ;;  %v1334_v42 = vld [vmem:[%s8459_s17 + $0x9a] sm:$0xff] }
 0x10d   : > { %1272 = vmatprep.mubr.f32.mxu0 %v8243_v7 }
 0x110   : > { %6331 = vmatmul.mubr.msk.f32.gmra.mrb[50].mxu0 %vm608_vm0, %v520_v43  ;;  %v1335_v43 = vld [vmem:[%s8459_s17 + $0xa2] sm:$0xff] }
 0x111   : > { %1278 = vmatprep.mubr.f32.mxu0 %v8243_v7 }
 0x114   : > { %6332 = vmatmul.mubr.msk.f32.gmra.mrb[52].mxu0 %vm608_vm0, %v521_v44  ;;  %v1336_v44 = vld [vmem:[%s8459_s17 + $0xaa] sm:$0xff] }
 0x115   : > { %1284 = vmatprep.mubr.f32.mxu0 %v8243_v7 }
 0x118   : > { %6333 = vmatmul.mubr.msk.f32.gmra.mrb[54].mxu0 %vm608_vm0, %v522_v45  ;;  %v1337_v45 = vld [vmem:[%s8459_s17 + $0xb2] sm:$0xff] }
 0x119   : > { %1290 = vmatprep.mubr.f32.mxu0 %v8243_v7 }
 0x11c   : > { %6334 = vmatmul.mubr.msk.f32.gmra.mrb[56].mxu0 %vm608_vm0, %v523_v46  ;;  %v1338_v46 = vld [vmem:[%s8459_s17 + $0xba] sm:$0xff] }
 0x11d   : > { %1296 = vmatprep.mubr.f32.mxu0 %v8243_v7 }
 0x120   : > { %6335 = vmatmul.mubr.msk.f32.gmra.mrb[58].mxu0 %vm608_vm0, %v524_v47  ;;  %v1339_v47 = vld [vmem:[%s8459_s17 + $0xc2] sm:$0xff] }
 0x121   : > { %1302 = vmatprep.mubr.f32.mxu0 %v8243_v7 }
 0x124   : > { %6336 = vmatmul.mubr.msk.f32.gmra.mrb[60].mxu0 %vm608_vm0, %v525_v48  ;;  %v1340_v48 = vld [vmem:[%s8459_s17 + $0xca] sm:$0xff] }
 0x125   : > { %1308 = vmatprep.mubr.f32.mxu0 %v8243_v7 }
 0x128   : > { %6337 = vmatmul.mubr.msk.f32.gmra.mrb[62].mxu0 %vm608_vm0, %v526_v49  ;;  %v1341_v49 = vld [vmem:[%s8459_s17 + $0xd2] sm:$0xff] }
 0x129   : > { %1532 = vmatprep.mubr.f32.mxu0 %v8243_v7 }
 0x12c   : > { %6362 = vmatmul.mubr.msk.f32.vlgmr.msra.gmra.mrb[0].mxu0 %vm608_vm0, %v1315_v54  ;;  %v1346_v54 = vld [vmem:[%s8459_s17 + $0xfa] sm:$0xf] }
 0x12d   : > { %1538 = vmatprep.mubr.f32.mxu0 %v8243_v7  ;;  %7206 = vmatpush1.bf16.msra.mxu0 %v7205_v55  ;;  %v6450_v55 = vld [vmem:[%s11080_s1 + $0x300] sm:$0xff] }
 0x12e   : > { %7208 = vmatprep.subr.bf16.mxu0 %v7207_v56  ;;  %v6452_v56 = vld [vmem:[%s11080_s1 + $0x310] sm:$0xff] }
 0x12f   : > { %v7229_v60 = vpack.c.bf16 %v6452_v56, %v6450_v55  ;;  %v1819_v55 = vld [vmem:[%s8459_s17 + $0xf3] sm:$0xff]  ;;  %v1820_v56 = vld [vmem:[%s8459_s17 + $0xfb] sm:$0xf] }
 0x130   : > { %6363 = vmatmul.mubr.msk.f32.gmra.mrb[2].mxu0 %vm608_vm0, %v1316_v61  ;;  %v7231_v61 = vpack.c.bf16 %v6457_v58, %v6455_v57  ;;  %v2263_v57 = vld [vmem:[%s8459_s17 + $0x4] sm:$0xff]  ;;  %v2264_v58 = vld [vmem:[%s8459_s17 + $0xc] sm:$0xff] }
 0x131   : > { %1544 = vmatprep.mubr.f32.mxu0 %v8243_v7  ;;  %7210 = vmatpush1.bf16.msra.mxu0 %v7209_v62  ;;  %v6454_v62 = vld [vmem:[%s11080_s1 + $0x320] sm:$0xff] }
 0x132   : > { %7212 = vmatprep.subr.bf16.mxu0 %v7211_v63  ;;  %v6456_v63 = vld [vmem:[%s11080_s1 + $0x330] sm:$0xff] }
 0x133   : > { %v7233_v3 = vpack.c.bf16 %v6456_v63, %v6454_v62  ;;  %v2268_v62 = vld [vmem:[%s8459_s17 + $0x2c] sm:$0xff]  ;;  %v2269_v63 = vld [vmem:[%s8459_s17 + $0x34] sm:$0xff] }
 0x134   : > { %6364 = vmatmul.mubr.msk.f32.gmra.mrb[4].mxu0 %vm608_vm0, %v1317_v4  ;;  %v7235_v4 = vpack.c.bf16 %v6461_v1, %v6459_v0  ;;  %v2270_v0 = vld [vmem:[%s8459_s17 + $0x3c] sm:$0xff]  ;;  %v2271_v1 = vld [vmem:[%s8459_s17 + $0x44] sm:$0xff] }
 0x135   : > { %1550 = vmatprep.mubr.f32.mxu0 %v8243_v7  ;;  %7214 = vmatpush1.bf16.msra.mxu0 %v7213_v5  ;;  %v6458_v5 = vld [vmem:[%s11080_s1 + $0x340] sm:$0xff] }
 0x136   : > { %7216 = vmatprep.subr.bf16.mxu0 %v7215_v6  ;;  %v6460_v6 = vld [vmem:[%s11080_s1 + $0x350] sm:$0xff] }
 0x137   : > { %v7237_v11 = vpack.c.bf16 %v6460_v6, %v6458_v5  ;;  %v2275_v5 = vld [vmem:[%s8459_s17 + $0x64] sm:$0xff]  ;;  %v2276_v6 = vld [vmem:[%s8459_s17 + $0x6c] sm:$0xff] }
 0x138   : > { %6365 = vmatmul.mubr.msk.f32.gmra.mrb[6].mxu0 %vm608_vm0, %v1318_v12  ;;  %v7239_v12 = vpack.c.bf16 %v6465_v9, %v6463_v8  ;;  %v2277_v8 = vld [vmem:[%s8459_s17 + $0x74] sm:$0xff]  ;;  %v2278_v9 = vld [vmem:[%s8459_s17 + $0x7c] sm:$0xff] }
 0x139   : > { %1556 = vmatprep.mubr.f32.mxu0 %v8243_v7  ;;  %7218 = vmatpush1.bf16.msra.mxu0 %v7217_v13  ;;  %v6462_v13 = vld [vmem:[%s11080_s1 + $0x360] sm:$0xff] }
 0x13a   : > { %7220 = vmatprep.subr.bf16.mxu0 %v7219_v14  ;;  %v6464_v14 = vld [vmem:[%s11080_s1 + $0x370] sm:$0xff] }
 0x13b   : > { %v7241_v18 = vpack.c.bf16 %v6464_v14, %v6462_v13  ;;  %v2282_v13 = vld [vmem:[%s8459_s17 + $0x9c] sm:$0xff]  ;;  %v2283_v14 = vld [vmem:[%s8459_s17 + $0xa4] sm:$0xff] }
 0x13c   : > { %6366 = vmatmul.mubr.msk.f32.gmra.mrb[8].mxu0 %vm608_vm0, %v1319_v19  ;;  %v7243_v19 = vpack.c.bf16 %v6469_v16, %v6467_v15  ;;  %v2284_v15 = vld [vmem:[%s8459_s17 + $0xac] sm:$0xff]  ;;  %v2285_v16 = vld [vmem:[%s8459_s17 + $0xb4] sm:$0xff] }
 0x13d   : > { %1562 = vmatprep.mubr.f32.mxu0 %v8243_v7  ;;  %7222 = vmatpush1.bf16.msra.mxu0 %v7221_v20  ;;  %v6466_v20 = vld [vmem:[%s11080_s1 + $0x380] sm:$0xff] }
 0x13e   : > { %7224 = vmatprep.subr.bf16.mxu0 %v7223_v21  ;;  %v6468_v21 = vld [vmem:[%s11080_s1 + $0x390] sm:$0xff] }
 0x13f   : > { %v7245_v25 = vpack.c.bf16 %v6468_v21, %v6466_v20  ;;  %v2289_v20 = vld [vmem:[%s8459_s17 + $0xd4] sm:$0xff]  ;;  %v2290_v21 = vld [vmem:[%s8459_s17 + $0xdc] sm:$0xff] }
 0x140   : > { %6367 = vmatmul.mubr.msk.f32.gmra.mrb[10].mxu0 %vm608_vm0, %v1320_v26  ;;  %v7247_v26 = vpack.c.bf16 %v6473_v23, %v6471_v22  ;;  %v2291_v22 = vld [vmem:[%s8459_s17 + $0xe4] sm:$0xff]  ;;  %v2292_v23 = vld [vmem:[%s8459_s17 + $0xec] sm:$0xff] }
 0x141   : > { %1568 = vmatprep.mubr.f32.mxu0 %v8243_v7  ;;  %7226 = vmatpush1.bf16.msra.mxu0 %v7225_v27  ;;  %v6470_v27 = vld [vmem:[%s11080_s1 + $0x3a0] sm:$0xff] }
 0x142   : > { %7228 = vmatprep.subr.bf16.mxu0 %v7227_v28  ;;  %v6472_v28 = vld [vmem:[%s11080_s1 + $0x3b0] sm:$0xff] }
 0x144   : > { %6368 = vmatmul.mubr.msk.f32.gmra.mrb[12].mxu0 %vm608_vm0, %v1321_v29  ;;  %v1794_v29 = vld [vmem:[%s8459_s17 + $0x2b] sm:$0xff] }
 0x145   : > { %1574 = vmatprep.mubr.f32.mxu0 %v8243_v7 }
 0x148   : > { %6369 = vmatmul.mubr.msk.f32.gmra.mrb[14].mxu0 %vm608_vm0, %v1322_v30  ;;  %v7249_v30 = vpack.c.bf16 %v6472_v28, %v6470_v27 }
 0x149   : > { %1580 = vmatprep.mubr.f32.mxu0 %v8243_v7 }
 0x14c   : > { %6370 = vmatmul.mubr.msk.f32.gmra.mrb[16].mxu0 %vm608_vm0, %v1323_v31  ;;  %v1795_v31 = vld [vmem:[%s8459_s17 + $0x33] sm:$0xff] }
 0x14d   : > { %1586 = vmatprep.mubr.f32.mxu0 %v8243_v7 }
 0x150   : > { %6371 = vmatmul.mubr.msk.f32.gmra.mrb[18].mxu0 %vm608_vm0, %v1324_v32  ;;  %v1796_v32 = vld [vmem:[%s8459_s17 + $0x3b] sm:$0xff] }
 0x151   : > { %1592 = vmatprep.mubr.f32.mxu0 %v8243_v7 }
 0x154   : > { %6372 = vmatmul.mubr.msk.f32.gmra.mrb[20].mxu0 %vm608_vm0, %v1325_v33  ;;  %v1797_v33 = vld [vmem:[%s8459_s17 + $0x43] sm:$0xff] }
 0x155   : > { %1598 = vmatprep.mubr.f32.mxu0 %v8243_v7 }
 0x158   : > { %6373 = vmatmul.mubr.msk.f32.gmra.mrb[22].mxu0 %vm608_vm0, %v1326_v34  ;;  %v1798_v34 = vld [vmem:[%s8459_s17 + $0x4b] sm:$0xff] }
 0x159   : > { %1604 = vmatprep.mubr.f32.mxu0 %v8243_v7 }
 0x15c   : > { %6374 = vmatmul.mubr.msk.f32.gmra.mrb[24].mxu0 %vm608_vm0, %v1327_v35  ;;  %v1799_v35 = vld [vmem:[%s8459_s17 + $0x53] sm:$0xff] }
 0x15d   : > { %1610 = vmatprep.mubr.f32.mxu0 %v8243_v7 }
 0x160   : > { %6375 = vmatmul.mubr.msk.f32.gmra.mrb[26].mxu0 %vm608_vm0, %v1328_v36  ;;  %v1800_v36 = vld [vmem:[%s8459_s17 + $0x5b] sm:$0xff] }
 0x161   : > { %1616 = vmatprep.mubr.f32.mxu0 %v8243_v7 }
 0x164   : > { %6376 = vmatmul.mubr.msk.f32.gmra.mrb[28].mxu0 %vm608_vm0, %v1329_v37  ;;  %v1801_v37 = vld [vmem:[%s8459_s17 + $0x63] sm:$0xff] }
 0x165   : > { %1622 = vmatprep.mubr.f32.mxu0 %v8243_v7 }
 0x168   : > { %6377 = vmatmul.mubr.msk.f32.gmra.mrb[30].mxu0 %vm608_vm0, %v1330_v38  ;;  %v1802_v38 = vld [vmem:[%s8459_s17 + $0x6b] sm:$0xff] }
 0x169   : > { %1628 = vmatprep.mubr.f32.mxu0 %v8243_v7 }
 0x16c   : > { %6378 = vmatmul.mubr.msk.f32.gmra.mrb[32].mxu0 %vm608_vm0, %v1331_v39  ;;  %v1803_v39 = vld [vmem:[%s8459_s17 + $0x73] sm:$0xff] }
 0x16d   : > { %1634 = vmatprep.mubr.f32.mxu0 %v8243_v7 }
 0x170   : > { %6379 = vmatmul.mubr.msk.f32.gmra.mrb[34].mxu0 %vm608_vm0, %v1332_v40  ;;  %v1804_v40 = vld [vmem:[%s8459_s17 + $0x7b] sm:$0xff] }
 0x171   : > { %1640 = vmatprep.mubr.f32.mxu0 %v8243_v7 }
 0x174   : > { %6380 = vmatmul.mubr.msk.f32.gmra.mrb[36].mxu0 %vm608_vm0, %v1333_v41  ;;  %v1805_v41 = vld [vmem:[%s8459_s17 + $0x83] sm:$0xff] }
 0x175   : > { %1646 = vmatprep.mubr.f32.mxu0 %v8243_v7 }
 0x178   : > { %6381 = vmatmul.mubr.msk.f32.gmra.mrb[38].mxu0 %vm608_vm0, %v1334_v42  ;;  %v1806_v42 = vld [vmem:[%s8459_s17 + $0x8b] sm:$0xff] }
 0x179   : > { %1652 = vmatprep.mubr.f32.mxu0 %v8243_v7 }
 0x17c   : > { %6382 = vmatmul.mubr.msk.f32.gmra.mrb[40].mxu0 %vm608_vm0, %v1335_v43  ;;  %v1807_v43 = vld [vmem:[%s8459_s17 + $0x93] sm:$0xff] }
 0x17d   : > { %1658 = vmatprep.mubr.f32.mxu0 %v8243_v7 }
 0x180   : > { %6383 = vmatmul.mubr.msk.f32.gmra.mrb[42].mxu0 %vm608_vm0, %v1336_v44  ;;  %v1808_v44 = vld [vmem:[%s8459_s17 + $0x9b] sm:$0xff] }
 0x181   : > { %1664 = vmatprep.mubr.f32.mxu0 %v8243_v7 }
 0x184   : > { %6384 = vmatmul.mubr.msk.f32.gmra.mrb[44].mxu0 %vm608_vm0, %v1337_v45  ;;  %v1809_v45 = vld [vmem:[%s8459_s17 + $0xa3] sm:$0xff] }
 0x185   : > { %1670 = vmatprep.mubr.f32.mxu0 %v8243_v7 }
 0x188   : > { %6385 = vmatmul.mubr.msk.f32.gmra.mrb[46].mxu0 %vm608_vm0, %v1338_v46  ;;  %v1810_v46 = vld [vmem:[%s8459_s17 + $0xab] sm:$0xff] }
 0x189   : > { %1676 = vmatprep.mubr.f32.mxu0 %v8243_v7 }
 0x18c   : > { %6386 = vmatmul.mubr.msk.f32.gmra.mrb[48].mxu0 %vm608_vm0, %v1339_v47  ;;  %v1811_v47 = vld [vmem:[%s8459_s17 + $0xb3] sm:$0xff] }
 0x18d   : > { %1682 = vmatprep.mubr.f32.mxu0 %v8243_v7 }
 0x190   : > { %6387 = vmatmul.mubr.msk.f32.gmra.mrb[50].mxu0 %vm608_vm0, %v1340_v48  ;;  %v1812_v48 = vld [vmem:[%s8459_s17 + $0xbb] sm:$0xff] }
 0x191   : > { %1688 = vmatprep.mubr.f32.mxu0 %v8243_v7 }
 0x194   : > { %6388 = vmatmul.mubr.msk.f32.gmra.mrb[52].mxu0 %vm608_vm0, %v1341_v49  ;;  %v1813_v49 = vld [vmem:[%s8459_s17 + $0xc3] sm:$0xff] }
 0x195   : > { %1694 = vmatprep.mubr.f32.mxu0 %v8243_v7 }
 0x198   : > { %6389 = vmatmul.mubr.msk.f32.gmra.mrb[54].mxu0 %vm608_vm0, %v1342_v50  ;;  %v1814_v50 = vld [vmem:[%s8459_s17 + $0xcb] sm:$0xff] }
 0x199   : > { %1700 = vmatprep.mubr.f32.mxu0 %v8243_v7 }
 0x19c   : > { %6390 = vmatmul.mubr.msk.f32.gmra.mrb[56].mxu0 %vm608_vm0, %v1343_v51  ;;  %v1815_v51 = vld [vmem:[%s8459_s17 + $0xd3] sm:$0xff] }
 0x19d   : > { %1706 = vmatprep.mubr.f32.mxu0 %v8243_v7 }
 0x1a0   : > { %6391 = vmatmul.mubr.msk.f32.gmra.mrb[58].mxu0 %vm608_vm0, %v1344_v52  ;;  %v1816_v52 = vld [vmem:[%s8459_s17 + $0xdb] sm:$0xff] }
 0x1a1   : > { %1712 = vmatprep.mubr.f32.mxu0 %v8243_v7 }
 0x1a4   : > { %6392 = vmatmul.mubr.msk.f32.gmra.mrb[60].mxu0 %vm608_vm0, %v1345_v53  ;;  %v1817_v53 = vld [vmem:[%s8459_s17 + $0xe3] sm:$0xff] }
 0x1a5   : > { %1718 = vmatprep.mubr.f32.mxu0 %v8243_v7 }
 0x1a8   : > { %6393 = vmatmul.mubr.msk.f32.gmra.mrb[62].mxu0 %vm608_vm0, %v1346_v54  ;;  %v1818_v54 = vld [vmem:[%s8459_s17 + $0xeb] sm:$0xff] }
 0x1a9   : > { %2006 = vmatprep.mubr.f32.mxu0 %v8243_v7 }
 0x1ac   : > { %6418 = vmatmul.mubr.msk.f32.vlgmr.msra.gmra.mrb[0].mxu0 %vm608_vm0, %v1789_v59  ;;  %v2265_v59 = vld [vmem:[%s8459_s17 + $0x14] sm:$0xff] }
 0x1ad   : > { %2012 = vmatprep.mubr.f32.mxu0 %v8243_v7  ;;  %7230 = vmatpush1.bf16.msra.mxu0 %v7229_v60  ;;  %v2266_v60 = vld [vmem:[%s8459_s17 + $0x1c] sm:$0xff] }
 0x1ae   : > { %7232 = vmatprep.subr.bf16.mxu0 %v7231_v61  ;;  %v2267_v61 = vld [vmem:[%s8459_s17 + $0x24] sm:$0xff] }
 0x1b0   : > { %6419 = vmatmul.mubr.msk.f32.gmra.mrb[2].mxu0 %vm608_vm0, %v1790_v2  ;;  %v2272_v2 = vld [vmem:[%s8459_s17 + $0x4c] sm:$0xff] }
 0x1b1   : > { %2018 = vmatprep.mubr.f32.mxu0 %v8243_v7  ;;  %7234 = vmatpush1.bf16.msra.mxu0 %v7233_v3  ;;  %v2273_v3 = vld [vmem:[%s8459_s17 + $0x54] sm:$0xff] }
 0x1b2   : > { %7236 = vmatprep.subr.bf16.mxu0 %v7235_v4  ;;  %v2274_v4 = vld [vmem:[%s8459_s17 + $0x5c] sm:$0xff] }
 0x1b4   : > { %6420 = vmatmul.mubr.msk.f32.gmra.mrb[4].mxu0 %vm608_vm0, %v1791_v10  ;;  %v2279_v10 = vld [vmem:[%s8459_s17 + $0x84] sm:$0xff] }
 0x1b5   : > { %2024 = vmatprep.mubr.f32.mxu0 %v8243_v7  ;;  %7238 = vmatpush1.bf16.msra.mxu0 %v7237_v11  ;;  %v2280_v11 = vld [vmem:[%s8459_s17 + $0x8c] sm:$0xff] }
 0x1b6   : > { %7240 = vmatprep.subr.bf16.mxu0 %v7239_v12  ;;  %v2281_v12 = vld [vmem:[%s8459_s17 + $0x94] sm:$0xff] }
 0x1b8   : > { %6421 = vmatmul.mubr.msk.f32.gmra.mrb[6].mxu0 %vm608_vm0, %v1792_v17  ;;  %v2286_v17 = vld [vmem:[%s8459_s17 + $0xbc] sm:$0xff] }
 0x1b9   : > { %2030 = vmatprep.mubr.f32.mxu0 %v8243_v7  ;;  %7242 = vmatpush1.bf16.msra.mxu0 %v7241_v18  ;;  %v2287_v18 = vld [vmem:[%s8459_s17 + $0xc4] sm:$0xff] }
 0x1ba   : > { %7244 = vmatprep.subr.bf16.mxu0 %v7243_v19  ;;  %v2288_v19 = vld [vmem:[%s8459_s17 + $0xcc] sm:$0xff] }
 0x1bc   : > { %6422 = vmatmul.mubr.msk.f32.gmra.mrb[8].mxu0 %vm608_vm0, %v1793_v24  ;;  %v2293_v24 = vld [vmem:[%s8459_s17 + $0xf4] sm:$0xff] }
 0x1bd   : > { %2036 = vmatprep.mubr.f32.mxu0 %v8243_v7  ;;  %7246 = vmatpush1.bf16.msra.mxu0 %v7245_v25  ;;  %v2294_v25 = vld [vmem:[%s8459_s17 + $0xfc] sm:$0xf]  ;;  %s6184_s17 = sshll.u32 %s488_s27, 4  ;;  %s11039_s17 = int_to_ptr.vmem [resolvable:$true] %s6184_s17 }
 0x1be   : > { %7248 = vmatprep.subr.bf16.mxu0 %v7247_v26  ;;  %v2739_v26 = vlaneseq  ;;  %s8179_s30 = scalar_lea.vmem %s11039_s17, 128  ;;  %p8186_p0 = scmp.lt.s32.totalorder %s11039_s17, %s8184_s18 }
 0x1bf   : > { %p8180_p11 = scmp.ne.s32.totalorder %s11039_s17, %s8179_s30  ;;  %p8187_p1 = scmp.lt.s32.totalorder %s8185_s16, %s8179_s30 }
 0x1c0   : > { %6423 = vmatmul.mubr.msk.f32.gmra.mrb[10].mxu0 %vm608_vm0, %v1794_v29  ;;  %v9222_v27 = vshrl.u32 %v2739_v26, 7  ;;  %v2737_v29 = vld [vmem:[%s11081_s2] sm:$0x3] }
 0x1c1   : > { %2042 = vmatprep.mubr.f32.mxu0 %v8243_v7  ;;  %7250 = vmatpush1.bf16.msra.mxu0 %v7249_v30  ;;  %p8181_p12 = pnand %p8180_p11, %p8366_p5  ;;  %p8188_p2 = por %p8187_p1, %p8186_p0 }
 0x1c2   : > { %v2741_v28 = vsub.s32 0, %v9222_v27  ;;  %v2745_v30 = vsub.s32 1, %v9222_v27 }
 0x1c3   : > { %p8182_p13 = pneg %p8181_p12 }
 0x1c4   : > { %6424 = vmatmul.mubr.msk.f32.gmra.mrb[12].mxu0 %vm608_vm0, %v1795_v31  ;;  %v9231_v31 = vrot.slane %v2737_v29, %v2741_v28 }
 0x1c5   : > { %2048 = vmatprep.mubr.f32.mxu0 %v8243_v7  ;;  %p8189_p3 = pnand %p8188_p2, %p8182_p13 }
 0x1c8   : > { %6425 = vmatmul.mubr.msk.f32.gmra.mrb[14].mxu0 %vm608_vm0, %v1796_v32 }
 0x1c9   : > { %2054 = vmatprep.mubr.f32.mxu0 %v8243_v7 }
 0x1cc   : > { %6426 = vmatmul.mubr.msk.f32.gmra.mrb[16].mxu0 %vm608_vm0, %v1797_v33  ;;  %v9235_v33 = vrot.slane %v2737_v29, %v2745_v30 }
 0x1cd   : > { %2060 = vmatprep.mubr.f32.mxu0 %v8243_v7 }
 0x1d0   : > { %6427 = vmatmul.mubr.msk.f32.gmra.mrb[18].mxu0 %vm608_vm0, %v1798_v34 }
 0x1d1   : > { %2066 = vmatprep.mubr.f32.mxu0 %v8243_v7 }
 0x1d4   : > { %6428 = vmatmul.mubr.msk.f32.gmra.mrb[20].mxu0 %vm608_vm0, %v1799_v35 }
 0x1d5   : > { %2072 = vmatprep.mubr.f32.mxu0 %v8243_v7 }
 0x1d8   : > { %6429 = vmatmul.mubr.msk.f32.gmra.mrb[22].mxu0 %vm608_vm0, %v1800_v36 }
 0x1d9   : > { %2078 = vmatprep.mubr.f32.mxu0 %v8243_v7 }
 0x1dc   : > { %6430 = vmatmul.mubr.msk.f32.gmra.mrb[24].mxu0 %vm608_vm0, %v1801_v37 }
 0x1dd   : > { %2084 = vmatprep.mubr.f32.mxu0 %v8243_v7 }
 0x1e0   : > { %6431 = vmatmul.mubr.msk.f32.gmra.mrb[26].mxu0 %vm608_vm0, %v1802_v38 }
 0x1e1   : > { %2090 = vmatprep.mubr.f32.mxu0 %v8243_v7 }
 0x1e4   : > { %6432 = vmatmul.mubr.msk.f32.gmra.mrb[28].mxu0 %vm608_vm0, %v1803_v39 }
 0x1e5   : > { %2096 = vmatprep.mubr.f32.mxu0 %v8243_v7 }
 0x1e8   : > { %6433 = vmatmul.mubr.msk.f32.gmra.mrb[30].mxu0 %vm608_vm0, %v1804_v40 }
 0x1e9   : > { %2102 = vmatprep.mubr.f32.mxu0 %v8243_v7 }
 0x1ec   : > { %6434 = vmatmul.mubr.msk.f32.gmra.mrb[32].mxu0 %vm608_vm0, %v1805_v41  ;;  %v2878_v41 = vld [vmem:[%s11082_s3 + $0x8] sm:$0xff] }
 0x1ed   : > { %2108 = vmatprep.mubr.f32.mxu0 %v8243_v7  ;;  %6508 = vmatprep.mubr.msk.f32.mxu1 %vm2905_vm1, %v2878_v41 }
 0x1f0   : > { %6435 = vmatmul.mubr.msk.f32.gmra.mrb[34].mxu0 %vm608_vm0, %v1806_v42 }
 0x1f1   : > { %2114 = vmatprep.mubr.f32.mxu0 %v8243_v7 }
 0x1f4   : > { %6436 = vmatmul.mubr.msk.f32.gmra.mrb[36].mxu0 %vm608_vm0, %v1807_v43 }
 0x1f5   : > { %2120 = vmatprep.mubr.f32.mxu0 %v8243_v7 }
 0x1f8   : > { %6437 = vmatmul.mubr.msk.f32.gmra.mrb[38].mxu0 %vm608_vm0, %v1808_v44 }
 0x1f9   : > { %2126 = vmatprep.mubr.f32.mxu0 %v8243_v7 }
 0x1fc   : > { %6438 = vmatmul.mubr.msk.f32.gmra.mrb[40].mxu0 %vm608_vm0, %v1809_v45 }
 0x1fd   : > { %2132 = vmatprep.mubr.f32.mxu0 %v8243_v7 }
 0x200   : > { %6439 = vmatmul.mubr.msk.f32.gmra.mrb[42].mxu0 %vm608_vm0, %v1810_v46 }
 0x201   : > { %2138 = vmatprep.mubr.f32.mxu0 %v8243_v7 }
 0x204   : > { %6440 = vmatmul.mubr.msk.f32.gmra.mrb[44].mxu0 %vm608_vm0, %v1811_v47 }
 0x205   : > { %2144 = vmatprep.mubr.f32.mxu0 %v8243_v7 }
 0x208   : > { %6441 = vmatmul.mubr.msk.f32.gmra.mrb[46].mxu0 %vm608_vm0, %v1812_v48 }
 0x209   : > { %2150 = vmatprep.mubr.f32.mxu0 %v8243_v7 }
 0x20c   : > { %6442 = vmatmul.mubr.msk.f32.gmra.mrb[48].mxu0 %vm608_vm0, %v1813_v49 }
 0x20d   : > { %2156 = vmatprep.mubr.f32.mxu0 %v8243_v7 }
 0x210   : > { %6443 = vmatmul.mubr.msk.f32.gmra.mrb[50].mxu0 %vm608_vm0, %v1814_v50 }
 0x211   : > { %2162 = vmatprep.mubr.f32.mxu0 %v8243_v7 }
 0x214   : > { %6444 = vmatmul.mubr.msk.f32.gmra.mrb[52].mxu0 %vm608_vm0, %v1815_v51 }
 0x215   : > { %2168 = vmatprep.mubr.f32.mxu0 %v8243_v7 }
 0x218   : > { %6445 = vmatmul.mubr.msk.f32.gmra.mrb[54].mxu0 %vm608_vm0, %v1816_v52 }
 0x219   : > { %2174 = vmatprep.mubr.f32.mxu0 %v8243_v7 }
 0x21c   : > { %6446 = vmatmul.mubr.msk.f32.gmra.mrb[56].mxu0 %vm608_vm0, %v1817_v53 }
 0x21d   : > { %2180 = vmatprep.mubr.f32.mxu0 %v8243_v7 }
 0x220   : > { %6447 = vmatmul.mubr.msk.f32.gmra.mrb[58].mxu0 %vm608_vm0, %v1818_v54 }
 0x221   : > { %2186 = vmatprep.mubr.f32.mxu0 %v8243_v7 }
 0x224   : > { %6448 = vmatmul.mubr.msk.f32.gmra.mrb[60].mxu0 %vm608_vm0, %v1819_v55 }
 0x225   : > { %2192 = vmatprep.mubr.f32.mxu0 %v8243_v7 }
 0x228   : > { %6449 = vmatmul.mubr.msk.f32.gmra.mrb[62].mxu0 %vm608_vm0, %v1820_v56 }
 0x229   : > { %2480 = vmatprep.mubr.f32.mxu0 %v8243_v7 }
 0x22c   : > { %6474 = vmatmul.mubr.msk.f32.vlgmr.msra.gmra.mrb[0].mxu0 %vm608_vm0, %v2263_v57 }
 0x22d   : > { %2486 = vmatprep.mubr.f32.mxu0 %v8243_v7 }
 0x230   : > { %6475 = vmatmul.mubr.msk.f32.gmra.mrb[2].mxu0 %vm608_vm0, %v2264_v58 }
 0x231   : > { %2492 = vmatprep.mubr.f32.mxu0 %v8243_v7 }
 0x234   : > { %6476 = vmatmul.mubr.msk.f32.gmra.mrb[4].mxu0 %vm608_vm0, %v2265_v59 }
 0x235   : > { %2498 = vmatprep.mubr.f32.mxu0 %v8243_v7 }
 0x238   : > { %6477 = vmatmul.mubr.msk.f32.gmra.mrb[6].mxu0 %vm608_vm0, %v2266_v60 }
 0x239   : > { %2504 = vmatprep.mubr.f32.mxu0 %v8243_v7 }
 0x23c   : > { %6478 = vmatmul.mubr.msk.f32.gmra.mrb[8].mxu0 %vm608_vm0, %v2267_v61 }
 0x23d   : > { %2510 = vmatprep.mubr.f32.mxu0 %v8243_v7 }
 0x240   : > { %6479 = vmatmul.mubr.msk.f32.gmra.mrb[10].mxu0 %vm608_vm0, %v2268_v62 }
 0x241   : > { %2516 = vmatprep.mubr.f32.mxu0 %v8243_v7 }
 0x244   : > { %6480 = vmatmul.mubr.msk.f32.gmra.mrb[12].mxu0 %vm608_vm0, %v2269_v63 }
 0x245   : > { %2522 = vmatprep.mubr.f32.mxu0 %v8243_v7 }
 0x248   : > { %6481 = vmatmul.mubr.msk.f32.gmra.mrb[14].mxu0 %vm608_vm0, %v2270_v0 }
 0x249   : > { %2528 = vmatprep.mubr.f32.mxu0 %v8243_v7 }
 0x24c   : > { %6482 = vmatmul.mubr.msk.f32.gmra.mrb[16].mxu0 %vm608_vm0, %v2271_v1 }
 0x24d   : > { %2534 = vmatprep.mubr.f32.mxu0 %v8243_v7 }
 0x250   : > { %6483 = vmatmul.mubr.msk.f32.gmra.mrb[18].mxu0 %vm608_vm0, %v2272_v2 }
 0x251   : > { %2540 = vmatprep.mubr.f32.mxu0 %v8243_v7 }
 0x254   : > { %6484 = vmatmul.mubr.msk.f32.gmra.mrb[20].mxu0 %vm608_vm0, %v2273_v3 }
 0x255   : > { %2546 = vmatprep.mubr.f32.mxu0 %v8243_v7 }
 0x258   : > { %6485 = vmatmul.mubr.msk.f32.gmra.mrb[22].mxu0 %vm608_vm0, %v2274_v4 }
 0x259   : > { %2552 = vmatprep.mubr.f32.mxu0 %v8243_v7 }
 0x25c   : > { %6486 = vmatmul.mubr.msk.f32.gmra.mrb[24].mxu0 %vm608_vm0, %v2275_v5 }
 0x25d   : > { %2558 = vmatprep.mubr.f32.mxu0 %v8243_v7 }
 0x260   : > { %6487 = vmatmul.mubr.msk.f32.gmra.mrb[26].mxu0 %vm608_vm0, %v2276_v6 }
 0x261   : > { %2564 = vmatprep.mubr.f32.mxu0 %v8243_v7 }
 0x264   : > { %6488 = vmatmul.mubr.msk.f32.gmra.mrb[28].mxu0 %vm608_vm0, %v2277_v8 }
 0x265   : > { %2570 = vmatprep.mubr.f32.mxu0 %v8243_v7 }
 0x268   : > { %6489 = vmatmul.mubr.msk.f32.gmra.mrb[30].mxu0 %vm608_vm0, %v2278_v9 }
 0x269   : > { %2576 = vmatprep.mubr.f32.mxu0 %v8243_v7 }
 0x26c   : > { %6490 = vmatmul.mubr.msk.f32.gmra.mrb[32].mxu0 %vm608_vm0, %v2279_v10 }
 0x26d   : > { %2582 = vmatprep.mubr.f32.mxu0 %v8243_v7 }
 0x270   : > { %6491 = vmatmul.mubr.msk.f32.gmra.mrb[34].mxu0 %vm608_vm0, %v2280_v11 }
 0x271   : > { %2588 = vmatprep.mubr.f32.mxu0 %v8243_v7 }
 0x274   : > { %6492 = vmatmul.mubr.msk.f32.gmra.mrb[36].mxu0 %vm608_vm0, %v2281_v12 }
 0x275   : > { %2594 = vmatprep.mubr.f32.mxu0 %v8243_v7 }
 0x278   : > { %6493 = vmatmul.mubr.msk.f32.gmra.mrb[38].mxu0 %vm608_vm0, %v2282_v13 }
 0x279   : > { %2600 = vmatprep.mubr.f32.mxu0 %v8243_v7 }
 0x27c   : > { %6494 = vmatmul.mubr.msk.f32.gmra.mrb[40].mxu0 %vm608_vm0, %v2283_v14 }
 0x27d   : > { %2606 = vmatprep.mubr.f32.mxu0 %v8243_v7 }
 0x280   : > { %6495 = vmatmul.mubr.msk.f32.gmra.mrb[42].mxu0 %vm608_vm0, %v2284_v15 }
 0x281   : > { %2612 = vmatprep.mubr.f32.mxu0 %v8243_v7 }
 0x284   : > { %6496 = vmatmul.mubr.msk.f32.gmra.mrb[44].mxu0 %vm608_vm0, %v2285_v16 }
 0x285   : > { %2618 = vmatprep.mubr.f32.mxu0 %v8243_v7 }
 0x288   : > { %6497 = vmatmul.mubr.msk.f32.gmra.mrb[46].mxu0 %vm608_vm0, %v2286_v17 }
 0x289   : > { %2624 = vmatprep.mubr.f32.mxu0 %v8243_v7 }
 0x28c   : > { %6498 = vmatmul.mubr.msk.f32.gmra.mrb[48].mxu0 %vm608_vm0, %v2287_v18 }
 0x28d   : > { %2630 = vmatprep.mubr.f32.mxu0 %v8243_v7 }
 0x290   : > { %6499 = vmatmul.mubr.msk.f32.gmra.mrb[50].mxu0 %vm608_vm0, %v2288_v19 }
 0x291   : > { %2636 = vmatprep.mubr.f32.mxu0 %v8243_v7 }
 0x294   : > { %6500 = vmatmul.mubr.msk.f32.gmra.mrb[52].mxu0 %vm608_vm0, %v2289_v20 }
 0x295   : > { %2642 = vmatprep.mubr.f32.mxu0 %v8243_v7 }
 0x298   : > { %6501 = vmatmul.mubr.msk.f32.gmra.mrb[54].mxu0 %vm608_vm0, %v2290_v21 }
 0x299   : > { %2648 = vmatprep.mubr.f32.mxu0 %v8243_v7 }
 0x29c   : > { %6502 = vmatmul.mubr.msk.f32.gmra.mrb[56].mxu0 %vm608_vm0, %v2291_v22 }
 0x29d   : > { %2654 = vmatprep.mubr.f32.mxu0 %v8243_v7 }
 0x2a0   : > { %6503 = vmatmul.mubr.msk.f32.gmra.mrb[58].mxu0 %vm608_vm0, %v2292_v23 }
 0x2a1   : > { %2660 = vmatprep.mubr.f32.mxu0 %v8243_v7 }
 0x2a4   : > { %6504 = vmatmul.mubr.msk.f32.gmra.mrb[60].mxu0 %vm608_vm0, %v2293_v24 }
 0x2a5   : > { %2666 = vmatprep.mubr.f32.mxu0 %v8243_v7 }
 0x2a8   : > { %6505 = vmatmul.mubr.msk.f32.gmra.mrb[62].mxu0 %vm608_vm0, %v2294_v25 }
 0x2ff   : > { %v2482_v32 = vpop.f32.mrb[0].mxu0 }
 0x300   : > { %v2484_v34 = vpop.f32.mrb[1].mxu0  ;;  %v2749_v35 = vadd.f32 %v9231_v31, %v2482_v32 }
 0x301   : > { %v2750_v36 = vadd.f32 %v9235_v33, %v2484_v34 }
 0x302   : > { %v2813_v42 = vmax.f32 %v2749_v35, 0.0 }
 0x303   : > { %v2488_v37 = vpop.f32.mrb[2].mxu0  ;;  %v2814_v44 = vmax.f32 %v2750_v36, 0.0 }
 0x304   : > { %v2751_v38 = vadd.f32 %v9231_v31, %v2488_v37  ;;  %v2490_v39 = vpop.f32.mrb[3].mxu0 }
 0x305   : > { %v2752_v40 = vadd.f32 %v9235_v33, %v2490_v39 }
 0x306   : > { %v2815_v43 = vmax.f32 %v2751_v38, 0.0 }
 0x307   : > { %v2816_v45 = vmax.f32 %v2752_v40, 0.0  ;;  %v2494_v46 = vpop.f32.mrb[4].mxu0 }
 0x308   : > { %v2496_v47 = vpop.f32.mrb[5].mxu0  ;;  %v9245_v48 = vpack.c.bf16 %v2815_v43, %v2813_v42  ;;  %v2753_v50 = vadd.f32 %v9231_v31, %v2494_v46 }
 0x309   : > { %v9247_v49 = vpack.c.bf16 %v2816_v45, %v2814_v44  ;;  %v2754_v51 = vadd.f32 %v9235_v33, %v2496_v47 }
 0x30a   : > { %v2817_v56 = vmax.f32 %v2753_v50, 0.0 }
 0x30b   : > { %v2500_v52 = vpop.f32.mrb[6].mxu0  ;;  %7252 = vmatprep.subr.bf16.mxu1 %v9247_v49  ;;  %v2818_v58 = vmax.f32 %v2754_v51, 0.0 }
 0x30c   : > { %v2755_v53 = vadd.f32 %v9231_v31, %v2500_v52  ;;  %v2502_v54 = vpop.f32.mrb[7].mxu0  ;;  %7254 = vmatpush1.bf16.msra.mxu1 %v9245_v48 }
 0x30d   : > { %v2756_v55 = vadd.f32 %v9235_v33, %v2502_v54 }
 0x30e   : > { %v2819_v57 = vmax.f32 %v2755_v53, 0.0 }
 0x30f   : > { %v2820_v59 = vmax.f32 %v2756_v55, 0.0  ;;  %v2506_v60 = vpop.f32.mrb[8].mxu0 }
 0x310   : > { %v9255_v61 = vpack.c.bf16 %v2819_v57, %v2817_v56  ;;  %v2508_v62 = vpop.f32.mrb[9].mxu0  ;;  %v2757_v0 = vadd.f32 %v9231_v31, %v2506_v60 }
 0x311   : > { %v9257_v63 = vpack.c.bf16 %v2820_v59, %v2818_v58  ;;  %v2758_v1 = vadd.f32 %v9235_v33, %v2508_v62 }
 0x312   : > { %v2821_v6 = vmax.f32 %v2757_v0, 0.0 }
 0x313   : > { %v2512_v2 = vpop.f32.mrb[10].mxu0  ;;  %7256 = vmatprep.subr.bf16.mxu1 %v9257_v63  ;;  %v2822_v9 = vmax.f32 %v2758_v1, 0.0 }
 0x314   : > { %v2759_v3 = vadd.f32 %v9231_v31, %v2512_v2  ;;  %v2514_v4 = vpop.f32.mrb[11].mxu0  ;;  %7258 = vmatpush1.bf16.msra.mxu1 %v9255_v61 }
 0x315   : > { %v2760_v5 = vadd.f32 %v9235_v33, %v2514_v4 }
 0x316   : > { %v2823_v8 = vmax.f32 %v2759_v3, 0.0 }
 0x317   : > { %v2824_v10 = vmax.f32 %v2760_v5, 0.0  ;;  %v2518_v11 = vpop.f32.mrb[12].mxu0 }
 0x318   : > { %v9265_v12 = vpack.c.bf16 %v2823_v8, %v2821_v6  ;;  %v2520_v13 = vpop.f32.mrb[13].mxu0  ;;  %v2761_v15 = vadd.f32 %v9231_v31, %v2518_v11 }
 0x319   : > { %v9267_v14 = vpack.c.bf16 %v2824_v10, %v2822_v9  ;;  %v2762_v16 = vadd.f32 %v9235_v33, %v2520_v13 }
 0x31a   : > { %v2825_v21 = vmax.f32 %v2761_v15, 0.0 }
 0x31b   : > { %v2524_v17 = vpop.f32.mrb[14].mxu0  ;;  %7260 = vmatprep.subr.bf16.mxu1 %v9267_v14  ;;  %v2826_v23 = vmax.f32 %v2762_v16, 0.0 }
 0x31c   : > { %v2763_v18 = vadd.f32 %v9231_v31, %v2524_v17  ;;  %v2526_v19 = vpop.f32.mrb[15].mxu0  ;;  %7262 = vmatpush1.bf16.msra.mxu1 %v9265_v12 }
 0x31d   : > { %v2764_v20 = vadd.f32 %v9235_v33, %v2526_v19 }
 0x31e   : > { %v2827_v22 = vmax.f32 %v2763_v18, 0.0 }
 0x31f   : > { %v2828_v24 = vmax.f32 %v2764_v20, 0.0  ;;  %v2530_v25 = vpop.f32.mrb[16].mxu0 }
 0x320   : > { %v9275_v26 = vpack.c.bf16 %v2827_v22, %v2825_v21  ;;  %v2532_v29 = vpop.f32.mrb[17].mxu0  ;;  %v2765_v34 = vadd.f32 %v9231_v31, %v2530_v25 }
 0x321   : > { %v9277_v32 = vpack.c.bf16 %v2828_v24, %v2826_v23  ;;  %v2766_v35 = vadd.f32 %v9235_v33, %v2532_v29 }
 0x322   : > { %v2829_v40 = vmax.f32 %v2765_v34, 0.0 }
 0x323   : > { %v2536_v36 = vpop.f32.mrb[18].mxu0  ;;  %7264 = vmatprep.subr.bf16.mxu1 %v9277_v32  ;;  %v2830_v42 = vmax.f32 %v2766_v35, 0.0 }
 0x324   : > { %v2767_v37 = vadd.f32 %v9231_v31, %v2536_v36  ;;  %v2538_v38 = vpop.f32.mrb[19].mxu0  ;;  %7266 = vmatpush1.bf16.msra.mxu1 %v9275_v26 }
 0x325   : > { %v2768_v39 = vadd.f32 %v9235_v33, %v2538_v38 }
 0x326   : > { %v2831_v41 = vmax.f32 %v2767_v37, 0.0 }
 0x327   : > { %v2832_v43 = vmax.f32 %v2768_v39, 0.0  ;;  %v2542_v44 = vpop.f32.mrb[20].mxu0 }
 0x328   : > { %v9285_v45 = vpack.c.bf16 %v2831_v41, %v2829_v40  ;;  %v2544_v46 = vpop.f32.mrb[21].mxu0  ;;  %v2769_v50 = vadd.f32 %v9231_v31, %v2542_v44 }
 0x329   : > { %v9287_v47 = vpack.c.bf16 %v2832_v43, %v2830_v42  ;;  %v2770_v51 = vadd.f32 %v9235_v33, %v2544_v46 }
 0x32a   : > { %v2833_v56 = vmax.f32 %v2769_v50, 0.0 }
 0x32b   : > { %v2548_v52 = vpop.f32.mrb[22].mxu0  ;;  %7268 = vmatprep.subr.bf16.mxu1 %v9287_v47  ;;  %v2834_v58 = vmax.f32 %v2770_v51, 0.0 }
 0x32c   : > { %v2771_v53 = vadd.f32 %v9231_v31, %v2548_v52  ;;  %v2550_v54 = vpop.f32.mrb[23].mxu0  ;;  %7270 = vmatpush1.bf16.msra.mxu1 %v9285_v45 }
 0x32d   : > { %v2772_v55 = vadd.f32 %v9235_v33, %v2550_v54 }
 0x32e   : > { %v2835_v57 = vmax.f32 %v2771_v53, 0.0 }
 0x32f   : > { %v2836_v59 = vmax.f32 %v2772_v55, 0.0  ;;  %v2554_v60 = vpop.f32.mrb[24].mxu0 }
 0x330   : > { %v9295_v62 = vpack.c.bf16 %v2835_v57, %v2833_v56  ;;  %v2556_v0 = vpop.f32.mrb[25].mxu0  ;;  %v2773_v2 = vadd.f32 %v9231_v31, %v2554_v60 }
 0x331   : > { %v9297_v1 = vpack.c.bf16 %v2836_v59, %v2834_v58  ;;  %v2774_v3 = vadd.f32 %v9235_v33, %v2556_v0 }
 0x332   : > { %v2837_v9 = vmax.f32 %v2773_v2, 0.0 }
 0x333   : > { %v2560_v4 = vpop.f32.mrb[26].mxu0  ;;  %7272 = vmatprep.subr.bf16.mxu1 %v9297_v1  ;;  %v2838_v11 = vmax.f32 %v2774_v3, 0.0 }
 0x334   : > { %v2775_v5 = vadd.f32 %v9231_v31, %v2560_v4  ;;  %v2562_v6 = vpop.f32.mrb[27].mxu0  ;;  %7274 = vmatpush1.bf16.msra.mxu1 %v9295_v62 }
 0x335   : > { %v2776_v8 = vadd.f32 %v9235_v33, %v2562_v6 }
 0x336   : > { %v2839_v10 = vmax.f32 %v2775_v5, 0.0 }
 0x337   : > { %v2840_v13 = vmax.f32 %v2776_v8, 0.0  ;;  %v2566_v15 = vpop.f32.mrb[28].mxu0 }
 0x338   : > { %v9305_v16 = vpack.c.bf16 %v2839_v10, %v2837_v9  ;;  %v2568_v17 = vpop.f32.mrb[29].mxu0  ;;  %v2777_v19 = vadd.f32 %v9231_v31, %v2566_v15 }
 0x339   : > { %v9307_v18 = vpack.c.bf16 %v2840_v13, %v2838_v11  ;;  %v2778_v20 = vadd.f32 %v9235_v33, %v2568_v17 }
 0x33a   : > { %v2841_v25 = vmax.f32 %v2777_v19, 0.0 }
 0x33b   : > { %v2572_v21 = vpop.f32.mrb[30].mxu0  ;;  %7276 = vmatprep.subr.bf16.mxu1 %v9307_v18  ;;  %v2842_v34 = vmax.f32 %v2778_v20, 0.0 }
 0x33c   : > { %v2779_v22 = vadd.f32 %v9231_v31, %v2572_v21  ;;  %v2574_v23 = vpop.f32.mrb[31].mxu0  ;;  %7278 = vmatpush1.bf16.msra.mxu1 %v9305_v16 }
 0x33d   : > { %v2780_v24 = vadd.f32 %v9235_v33, %v2574_v23 }
 0x33e   : > { %v2843_v29 = vmax.f32 %v2779_v22, 0.0 }
 0x33f   : > { %v2844_v35 = vmax.f32 %v2780_v24, 0.0  ;;  %v2578_v36 = vpop.f32.mrb[32].mxu0 }
 0x340   : > { %v9315_v37 = vpack.c.bf16 %v2843_v29, %v2841_v25  ;;  %v2580_v38 = vpop.f32.mrb[33].mxu0  ;;  %v2781_v40 = vadd.f32 %v9231_v31, %v2578_v36 }
 0x341   : > { %v9317_v39 = vpack.c.bf16 %v2844_v35, %v2842_v34  ;;  %v2782_v41 = vadd.f32 %v9235_v33, %v2580_v38 }
 0x342   : > { %v2845_v50 = vmax.f32 %v2781_v40, 0.0 }
 0x343   : > { %v2584_v42 = vpop.f32.mrb[34].mxu0  ;;  %7280 = vmatprep.subr.bf16.mxu1 %v9317_v39  ;;  %v2846_v52 = vmax.f32 %v2782_v41, 0.0 }
 0x344   : > { %v2783_v43 = vadd.f32 %v9231_v31, %v2584_v42  ;;  %v2586_v44 = vpop.f32.mrb[35].mxu0  ;;  %7282 = vmatpush1.bf16.msra.mxu1 %v9315_v37 }
 0x345   : > { %v2784_v46 = vadd.f32 %v9235_v33, %v2586_v44 }
 0x346   : > { %v2847_v51 = vmax.f32 %v2783_v43, 0.0 }
 0x347   : > { %v2848_v53 = vmax.f32 %v2784_v46, 0.0  ;;  %v2590_v54 = vpop.f32.mrb[36].mxu0 }
 0x348   : > { %v9325_v55 = vpack.c.bf16 %v2847_v51, %v2845_v50  ;;  %v2592_v56 = vpop.f32.mrb[37].mxu0  ;;  %v2785_v58 = vadd.f32 %v9231_v31, %v2590_v54 }
 0x349   : > { %v9327_v57 = vpack.c.bf16 %v2848_v53, %v2846_v52  ;;  %v2786_v59 = vadd.f32 %v9235_v33, %v2592_v56 }
 0x34a   : > { %v2849_v4 = vmax.f32 %v2785_v58, 0.0 }
 0x34b   : > { %v2596_v60 = vpop.f32.mrb[38].mxu0  ;;  %7284 = vmatprep.subr.bf16.mxu1 %v9327_v57  ;;  %v2850_v6 = vmax.f32 %v2786_v59, 0.0 }
 0x34c   : > { %v2787_v0 = vadd.f32 %v9231_v31, %v2596_v60  ;;  %v2598_v2 = vpop.f32.mrb[39].mxu0  ;;  %7286 = vmatpush1.bf16.msra.mxu1 %v9325_v55 }
 0x34d   : > { %v2788_v3 = vadd.f32 %v9235_v33, %v2598_v2 }
 0x34e   : > { %v2851_v5 = vmax.f32 %v2787_v0, 0.0 }
 0x34f   : > { %v2852_v8 = vmax.f32 %v2788_v3, 0.0  ;;  %v2602_v9 = vpop.f32.mrb[40].mxu0 }
 0x350   : > { %v9335_v10 = vpack.c.bf16 %v2851_v5, %v2849_v4  ;;  %v2604_v11 = vpop.f32.mrb[41].mxu0  ;;  %v2789_v15 = vadd.f32 %v9231_v31, %v2602_v9 }
 0x351   : > { %v9337_v13 = vpack.c.bf16 %v2852_v8, %v2850_v6  ;;  %v2790_v17 = vadd.f32 %v9235_v33, %v2604_v11 }
 0x352   : > { %v2853_v23 = vmax.f32 %v2789_v15, 0.0 }
 0x353   : > { %v2608_v19 = vpop.f32.mrb[42].mxu0  ;;  %7288 = vmatprep.subr.bf16.mxu1 %v9337_v13  ;;  %v2854_v25 = vmax.f32 %v2790_v17, 0.0 }
 0x354   : > { %v2791_v20 = vadd.f32 %v9231_v31, %v2608_v19  ;;  %v2610_v21 = vpop.f32.mrb[43].mxu0  ;;  %7290 = vmatpush1.bf16.msra.mxu1 %v9335_v10 }
 0x355   : > { %v2792_v22 = vadd.f32 %v9235_v33, %v2610_v21 }
 0x356   : > { %v2855_v24 = vmax.f32 %v2791_v20, 0.0 }
 0x357   : > { %v2856_v29 = vmax.f32 %v2792_v22, 0.0  ;;  %v2614_v34 = vpop.f32.mrb[44].mxu0 }
 0x358   : > { %v9345_v35 = vpack.c.bf16 %v2855_v24, %v2853_v23  ;;  %v2616_v36 = vpop.f32.mrb[45].mxu0  ;;  %v2793_v40 = vadd.f32 %v9231_v31, %v2614_v34 }
 0x359   : > { %v9347_v38 = vpack.c.bf16 %v2856_v29, %v2854_v25  ;;  %v2794_v41 = vadd.f32 %v9235_v33, %v2616_v36 }
 0x35a   : > { %v2857_v50 = vmax.f32 %v2793_v40, 0.0 }
 0x35b   : > { %v2620_v42 = vpop.f32.mrb[46].mxu0  ;;  %7292 = vmatprep.subr.bf16.mxu1 %v9347_v38  ;;  %v2858_v52 = vmax.f32 %v2794_v41, 0.0 }
 0x35c   : > { %v2795_v43 = vadd.f32 %v9231_v31, %v2620_v42  ;;  %v2622_v44 = vpop.f32.mrb[47].mxu0  ;;  %7294 = vmatpush1.bf16.msra.mxu1 %v9345_v35 }
 0x35d   : > { %v2796_v46 = vadd.f32 %v9235_v33, %v2622_v44 }
 0x35e   : > { %v2859_v51 = vmax.f32 %v2795_v43, 0.0 }
 0x35f   : > { %v2860_v53 = vmax.f32 %v2796_v46, 0.0  ;;  %v2626_v54 = vpop.f32.mrb[48].mxu0 }
 0x360   : > { %v9355_v56 = vpack.c.bf16 %v2859_v51, %v2857_v50  ;;  %v2628_v58 = vpop.f32.mrb[49].mxu0  ;;  %v2797_v60 = vadd.f32 %v9231_v31, %v2626_v54 }
 0x361   : > { %v9357_v59 = vpack.c.bf16 %v2860_v53, %v2858_v52  ;;  %v2798_v0 = vadd.f32 %v9235_v33, %v2628_v58 }
 0x362   : > { %v2861_v6 = vmax.f32 %v2797_v60, 0.0 }
 0x363   : > { %v2632_v2 = vpop.f32.mrb[50].mxu0  ;;  %7296 = vmatprep.subr.bf16.mxu1 %v9357_v59  ;;  %v2862_v9 = vmax.f32 %v2798_v0, 0.0 }
 0x364   : > { %v2799_v3 = vadd.f32 %v9231_v31, %v2632_v2  ;;  %v2634_v4 = vpop.f32.mrb[51].mxu0  ;;  %7298 = vmatpush1.bf16.msra.mxu1 %v9355_v56 }
 0x365   : > { %v2800_v5 = vadd.f32 %v9235_v33, %v2634_v4 }
 0x366   : > { %v2863_v8 = vmax.f32 %v2799_v3, 0.0 }
 0x367   : > { %v2864_v11 = vmax.f32 %v2800_v5, 0.0  ;;  %v2638_v15 = vpop.f32.mrb[52].mxu0 }
 0x368   : > { %v9365_v17 = vpack.c.bf16 %v2863_v8, %v2861_v6  ;;  %v2640_v19 = vpop.f32.mrb[53].mxu0  ;;  %v2801_v21 = vadd.f32 %v9231_v31, %v2638_v15 }
 0x369   : > { %v9367_v20 = vpack.c.bf16 %v2864_v11, %v2862_v9  ;;  %v2802_v22 = vadd.f32 %v9235_v33, %v2640_v19 }
 0x36a   : > { %v2865_v34 = vmax.f32 %v2801_v21, 0.0 }
 0x36b   : > { %v2644_v23 = vpop.f32.mrb[54].mxu0  ;;  %7300 = vmatprep.subr.bf16.mxu1 %v9367_v20  ;;  %v2866_v40 = vmax.f32 %v2802_v22, 0.0 }
 0x36c   : > { %v2803_v24 = vadd.f32 %v9231_v31, %v2644_v23  ;;  %v2646_v25 = vpop.f32.mrb[55].mxu0  ;;  %7302 = vmatpush1.bf16.msra.mxu1 %v9365_v17 }
 0x36d   : > { %v2804_v29 = vadd.f32 %v9235_v33, %v2646_v25 }
 0x36e   : > { %v2867_v36 = vmax.f32 %v2803_v24, 0.0 }
 0x36f   : > { %v2868_v41 = vmax.f32 %v2804_v29, 0.0  ;;  %v2650_v42 = vpop.f32.mrb[56].mxu0 }
 0x370   : > { %v9375_v43 = vpack.c.bf16 %v2867_v36, %v2865_v34  ;;  %v2652_v44 = vpop.f32.mrb[57].mxu0  ;;  %v2805_v50 = vadd.f32 %v9231_v31, %v2650_v42  ;;  %v2882_v42 = vld [vmem:[%s11082_s3 + $0x28] sm:$0xff]  ;;  %v6791_v36 = vld [vmem:[%s11086_s7 + $0x30] sm:$0xff] }
 0x371   : > { %v9377_v46 = vpack.c.bf16 %v2868_v41, %v2866_v40  ;;  %v2806_v51 = vadd.f32 %v9235_v33, %v2652_v44  ;;  %v2879_v41 = vld [vmem:[%s11082_s3 + $0x10] sm:$0xff]  ;;  %v6527_v44 = vld [vmem:[%s11082_s3 + $0x108] sm:$0xff] }
 0x372   : > { %v2869_v60 = vmax.f32 %v2805_v50, 0.0  ;;  %v6529_v50 = vld [vmem:[%s11082_s3 + $0x118] sm:$0xff] }
 0x373   : > { %v2656_v52 = vpop.f32.mrb[58].mxu0  ;;  %7304 = vmatprep.subr.bf16.mxu1 %v9377_v46  ;;  %v2870_v2 = vmax.f32 %v2806_v51, 0.0  ;;  %v6528_v51 = vld [vmem:[%s11082_s3 + $0x110] sm:$0xff] }
 0x374   : > { %v2807_v53 = vadd.f32 %v9231_v31, %v2656_v52  ;;  %v2658_v54 = vpop.f32.mrb[59].mxu0  ;;  %7306 = vmatpush1.bf16.msra.mxu1 %v9375_v43  ;;  %v6531_v52 = vld [vmem:[%s11082_s3 + $0x128] sm:$0xff] }
 0x375   : > { %v2808_v58 = vadd.f32 %v9235_v33, %v2658_v54  ;;  %v6533_v54 = vld [vmem:[%s11082_s3 + $0x138] sm:$0xff] }
 0x376   : > { %v2871_v0 = vmax.f32 %v2807_v53, 0.0  ;;  %v6530_v53 = vld [vmem:[%s11082_s3 + $0x120] sm:$0xff] }
 0x377   : > { %v2872_v3 = vmax.f32 %v2808_v58, 0.0  ;;  %v2662_v4 = vpop.f32.mrb[60].mxu0  ;;  %v6532_v58 = vld [vmem:[%s11082_s3 + $0x130] sm:$0xff] }
 0x378   : > { %v9385_v5 = vpack.c.bf16 %v2871_v0, %v2869_v60  ;;  %v2664_v6 = vpop.f32.mrb[61].mxu0  ;;  %v2809_v9 = vadd.f32 %v9231_v31, %v2662_v4  ;;  %v6535_v60 = vld [vmem:[%s11082_s3 + $0x148] sm:$0xff]  ;;  %v6534_v0 = vld [vmem:[%s11082_s3 + $0x140] sm:$0xff] }
 0x379   : > { %v9387_v8 = vpack.c.bf16 %v2872_v3, %v2870_v2  ;;  %v2810_v11 = vadd.f32 %v9235_v33, %v2664_v6  ;;  %v6537_v2 = vld [vmem:[%s11082_s3 + $0x158] sm:$0xff]  ;;  %v6536_v3 = vld [vmem:[%s11082_s3 + $0x150] sm:$0xff]  ;;  %v6539_v4 = vld [vmem:[%s11082_s3 + $0x168] sm:$0xff] }
 0x37a   : > { %v2873_v23 = vmax.f32 %v2809_v9, 0.0  ;;  %v3353_v6 = vld [vmem:[%s11083_s4 + $0x8] sm:$0xff]  ;;  %v8245_v9 = vmov 0.0|0.0  }
 0x37b   : > { %v2668_v15 = vpop.f32.mrb[62].mxu0  ;;  %7308 = vmatprep.subr.bf16.mxu1 %v9387_v8  ;;  %v2874_v25 = vmax.f32 %v2810_v11, 0.0  ;;  %7633 = vmatprep.subr.bf16.mxu0 %v8245_v9 }
 0x37c   : > { %v2811_v19 = vadd.f32 %v9231_v31, %v2668_v15  ;;  %v2670_v21 = vpop.f32.mrb[63].mxu0  ;;  %7310 = vmatpush1.bf16.msra.mxu1 %v9385_v5  ;;  %v2877_v31 = vld [vmem:[%s11082_s3] sm:$0xff]  ;;  %v6541_v15 = vld [vmem:[%s11082_s3 + $0x178] sm:$0xff] }
 0x37d   : > { %v2812_v22 = vadd.f32 %v9235_v33, %v2670_v21  ;;  %v2880_v33 = vld [vmem:[%s11082_s3 + $0x18] sm:$0xff]  ;;  %v6543_v21 = vld [vmem:[%s11082_s3 + $0x188] sm:$0xff] }
 0x37e   : > { %v2875_v24 = vmax.f32 %v2811_v19, 0.0  ;;  %v6540_v19 = vld [vmem:[%s11082_s3 + $0x170] sm:$0xff] }
 0x37f   : > { %v2876_v29 = vmax.f32 %v2812_v22, 0.0  ;;  %v3354_v22 = vld [vmem:[%s11083_s4 + $0x10] sm:$0xff] }
 0x380   : > { %v9395_v34 = vpack.c.bf16 %v2875_v24, %v2873_v23  ;;  %v3355_v23 = vld [vmem:[%s11083_s4 + $0x18] sm:$0xff] }
 0x381   : > { %v9402_v40 = vpack.c.bf16 %v2876_v29, %v2874_v25  ;;  %v7387_v24 = vpack.c.bf16 %v3355_v23, %v3354_v22  ;;  %v6542_v25 = vld [vmem:[%s11082_s3 + $0x180] sm:$0xff]  ;;  %v6545_v29 = vld [vmem:[%s11082_s3 + $0x198] sm:$0xff] }
 0x383   : > { %7313 = vmatprep.subr.msk.bf16.mxu1 %vm9398_vm4, %v9402_v40 }
 0x384   : > { %7316 = vmatpush1.bf16.msk.msra.mxu1 %vm9398_vm4, %v9395_v34 }
 0x385   : > { %7318 = vmatprep.subr.bf16.mxu1 %v9247_v49  ;;  %v2884_v49 = vld [vmem:[%s11082_s3 + $0x38] sm:$0xff] }
 0x387   : > { %3020 = vmatmul.mubr.f32.vlgmr.msra.gmra.mrb[0].mxu1 %v2877_v31  ;;  %v6544_v31 = vld [vmem:[%s11082_s3 + $0x190] sm:$0xff] }
 0x388   : > { %7320 = vmatpush1.bf16.msra.mxu1 %v9245_v48  ;;  %6509 = vmatprep.mubr.msk.f32.mxu1 %vm2905_vm1, %v2880_v33  ;;  %v2881_v48 = vld [vmem:[%s11082_s3 + $0x20] sm:$0xff] }
 0x389   : > { %7322 = vmatprep.subr.bf16.mxu1 %v9257_v63  ;;  %v2886_v63 = vld [vmem:[%s11082_s3 + $0x48] sm:$0xff] }
 0x38b   : > { %3026 = vmatmul.mubr.f32.gmra.mrb[2].mxu1 %v2879_v41  ;;  %v6547_v41 = vld [vmem:[%s11082_s3 + $0x1a8] sm:$0xff] }
 0x38c   : > { %7324 = vmatpush1.bf16.msra.mxu1 %v9255_v61  ;;  %6510 = vmatprep.mubr.msk.f32.mxu1 %vm2905_vm1, %v2882_v42  ;;  %v2883_v61 = vld [vmem:[%s11082_s3 + $0x30] sm:$0xff] }
 0x38d   : > { %7326 = vmatprep.subr.bf16.mxu1 %v9267_v14  ;;  %v2888_v14 = vld [vmem:[%s11082_s3 + $0x58] sm:$0xff]  ;;  %v3358_v42 = vld [vmem:[%s11083_s4 + $0x30] sm:$0xff] }
 0x38f   : > { %3032 = vmatmul.mubr.f32.gmra.mrb[4].mxu1 %v2881_v48  ;;  %v3359_v48 = vld [vmem:[%s11083_s4 + $0x38] sm:$0xff] }
 0x390   : > { %7328 = vmatpush1.bf16.msra.mxu1 %v9265_v12  ;;  %6511 = vmatprep.mubr.msk.f32.mxu1 %vm2905_vm1, %v2884_v49  ;;  %v2885_v12 = vld [vmem:[%s11082_s3 + $0x40] sm:$0xff] }
 0x391   : > { %7330 = vmatprep.subr.bf16.mxu1 %v9277_v32  ;;  %v2890_v32 = vld [vmem:[%s11082_s3 + $0x68] sm:$0xff]  ;;  %v6546_v49 = vld [vmem:[%s11082_s3 + $0x1a0] sm:$0xff] }
 0x393   : > { %3038 = vmatmul.mubr.f32.gmra.mrb[6].mxu1 %v2883_v61  ;;  %v7393_v61 = vpack.c.bf16 %v3359_v48, %v3358_v42 }
 0x394   : > { %7332 = vmatpush1.bf16.msra.mxu1 %v9275_v26  ;;  %6512 = vmatprep.mubr.msk.f32.mxu1 %vm2905_vm1, %v2886_v63  ;;  %v2887_v26 = vld [vmem:[%s11082_s3 + $0x50] sm:$0xff]  ;;  %v6549_v63 = vld [vmem:[%s11082_s3 + $0x1b8] sm:$0xff] }
 0x395   : > { %7334 = vmatprep.subr.bf16.mxu1 %v9287_v47  ;;  %v2892_v47 = vld [vmem:[%s11082_s3 + $0x78] sm:$0xff] }
 0x397   : > { %3044 = vmatmul.mubr.f32.gmra.mrb[8].mxu1 %v2885_v12  ;;  %v3360_v12 = vld [vmem:[%s11083_s4 + $0x40] sm:$0xff] }
 0x398   : > { %7336 = vmatpush1.bf16.msra.mxu1 %v9285_v45  ;;  %6513 = vmatprep.mubr.msk.f32.mxu1 %vm2905_vm1, %v2888_v14  ;;  %v2889_v45 = vld [vmem:[%s11082_s3 + $0x60] sm:$0xff]  ;;  %v3361_v14 = vld [vmem:[%s11083_s4 + $0x48] sm:$0xff] }
 0x399   : > { %7338 = vmatprep.subr.bf16.mxu1 %v9297_v1  ;;  %v2894_v1 = vld [vmem:[%s11082_s3 + $0x88] sm:$0xff] }
 0x39b   : > { %3050 = vmatmul.mubr.f32.gmra.mrb[10].mxu1 %v2887_v26  ;;  %v6548_v26 = vld [vmem:[%s11082_s3 + $0x1b0] sm:$0xff] }
 0x39c   : > { %7340 = vmatpush1.bf16.msra.mxu1 %v9295_v62  ;;  %6514 = vmatprep.mubr.msk.f32.mxu1 %vm2905_vm1, %v2890_v32  ;;  %v2891_v62 = vld [vmem:[%s11082_s3 + $0x70] sm:$0xff]  ;;  %v7396_v32 = vpack.c.bf16 %v3361_v14, %v3360_v12 }
 0x39d   : > { %7342 = vmatprep.subr.bf16.mxu1 %v9307_v18  ;;  %v2896_v18 = vld [vmem:[%s11082_s3 + $0x98] sm:$0xff] }
 0x39f   : > { %3056 = vmatmul.mubr.f32.gmra.mrb[12].mxu1 %v2889_v45  ;;  %v3362_v45 = vld [vmem:[%s11083_s4 + $0x50] sm:$0xff] }
 0x3a0   : > { %7344 = vmatpush1.bf16.msra.mxu1 %v9305_v16  ;;  %6515 = vmatprep.mubr.msk.f32.mxu1 %vm2905_vm1, %v2892_v47  ;;  %v2893_v16 = vld [vmem:[%s11082_s3 + $0x80] sm:$0xff]  ;;  %v3363_v47 = vld [vmem:[%s11083_s4 + $0x58] sm:$0xff] }
 0x3a1   : > { %7346 = vmatprep.subr.bf16.mxu1 %v9317_v39  ;;  %v2898_v39 = vld [vmem:[%s11082_s3 + $0xa8] sm:$0xff] }
 0x3a3   : > { %3062 = vmatmul.mubr.f32.gmra.mrb[14].mxu1 %v2891_v62  ;;  %v7399_v62 = vpack.c.bf16 %v3363_v47, %v3362_v45  ;;  %v6584_v45 = vld [vmem:[%s11083_s4 + $0xc8] sm:$0xff]  ;;  %v6585_v47 = vld [vmem:[%s11083_s4 + $0xd0] sm:$0xff] }
 0x3a4   : > { %7348 = vmatpush1.bf16.msra.mxu1 %v9315_v37  ;;  %6516 = vmatprep.mubr.msk.f32.mxu1 %vm2905_vm1, %v2894_v1  ;;  %v2895_v37 = vld [vmem:[%s11082_s3 + $0x90] sm:$0xff]  ;;  %v3364_v1 = vld [vmem:[%s11083_s4 + $0x60] sm:$0xff] }
 0x3a5   : > { %7350 = vmatprep.subr.bf16.mxu1 %v9327_v57  ;;  %v2900_v57 = vld [vmem:[%s11082_s3 + $0xb8] sm:$0xff] }
 0x3a7   : > { %3068 = vmatmul.mubr.f32.gmra.mrb[16].mxu1 %v2893_v16  ;;  %v3365_v16 = vld [vmem:[%s11083_s4 + $0x68] sm:$0xff] }
 0x3a8   : > { %7352 = vmatpush1.bf16.msra.mxu1 %v9325_v55  ;;  %6517 = vmatprep.mubr.msk.f32.mxu1 %vm2905_vm1, %v2896_v18  ;;  %v2897_v55 = vld [vmem:[%s11082_s3 + $0xa0] sm:$0xff]  ;;  %v7402_v18 = vpack.c.bf16 %v3365_v16, %v3364_v1 }
 0x3a9   : > { %7354 = vmatprep.subr.bf16.mxu1 %v9337_v13  ;;  %v2902_v13 = vld [vmem:[%s11082_s3 + $0xc8] sm:$0xff] }
 0x3ab   : > { %3074 = vmatmul.mubr.f32.gmra.mrb[18].mxu1 %v2895_v37  ;;  %v3366_v37 = vld [vmem:[%s11083_s4 + $0x70] sm:$0xff] }
 0x3ac   : > { %7356 = vmatpush1.bf16.msra.mxu1 %v9335_v10  ;;  %6518 = vmatprep.mubr.msk.f32.mxu1 %vm2905_vm1, %v2898_v39  ;;  %v2899_v10 = vld [vmem:[%s11082_s3 + $0xb0] sm:$0xff]  ;;  %v3367_v39 = vld [vmem:[%s11083_s4 + $0x78] sm:$0xff] }
 0x3ad   : > { %7358 = vmatprep.subr.bf16.mxu1 %v9347_v38  ;;  %v2904_v38 = vld [vmem:[%s11082_s3 + $0xd8] sm:$0xff] }
 0x3af   : > { %3080 = vmatmul.mubr.f32.gmra.mrb[20].mxu1 %v2897_v55  ;;  %v7405_v55 = vpack.c.bf16 %v3367_v39, %v3366_v37  ;;  %v7420_v37 = vpack.c.bf16 %v6585_v47, %v6584_v45  ;;  %v6586_v39 = vld [vmem:[%s11083_s4 + $0xd8] sm:$0xff] }
 0x3b0   : > { %7360 = vmatpush1.bf16.msra.mxu1 %v9345_v35  ;;  %6519 = vmatprep.mubr.msk.f32.mxu1 %vm2905_vm1, %v2900_v57  ;;  %v2901_v35 = vld [vmem:[%s11082_s3 + $0xc0] sm:$0xff] }
 0x3b1   : > { %7362 = vmatprep.subr.bf16.mxu1 %v9357_v59  ;;  %v6523_v59 = vld [vmem:[%s11082_s3 + $0xe8] sm:$0xff]  ;;  %v3368_v57 = vld [vmem:[%s11083_s4 + $0x80] sm:$0xff] }
 0x3b3   : > { %3086 = vmatmul.mubr.f32.gmra.mrb[22].mxu1 %v2899_v10  ;;  %v3369_v10 = vld [vmem:[%s11083_s4 + $0x88] sm:$0xff] }
 0x3b4   : > { %7364 = vmatpush1.bf16.msra.mxu1 %v9355_v56  ;;  %6520 = vmatprep.mubr.msk.f32.mxu1 %vm2905_vm1, %v2902_v13  ;;  %v2903_v56 = vld [vmem:[%s11082_s3 + $0xd0] sm:$0xff]  ;;  %v7408_v13 = vpack.c.bf16 %v3369_v10, %v3368_v57 }
 0x3b5   : > { %7366 = vmatprep.subr.bf16.mxu1 %v9367_v20  ;;  %v6525_v20 = vld [vmem:[%s11082_s3 + $0xf8] sm:$0xff] }
 0x3b7   : > { %3092 = vmatmul.mubr.f32.gmra.mrb[24].mxu1 %v2901_v35  ;;  %v3370_v35 = vld [vmem:[%s11083_s4 + $0x90] sm:$0xff] }
 0x3b8   : > { %7368 = vmatpush1.bf16.msra.mxu1 %v9365_v17  ;;  %6521 = vmatprep.mubr.msk.f32.mxu1 %vm2905_vm1, %v2904_v38  ;;  %v6522_v17 = vld [vmem:[%s11082_s3 + $0xe0] sm:$0xff]  ;;  %v3371_v38 = vld [vmem:[%s11083_s4 + $0x98] sm:$0xff] }
 0x3b9   : > { %7370 = vmatprep.subr.bf16.mxu1 %v9377_v46  ;;  %v6526_v46 = vld [vmem:[%s11082_s3 + $0x100] sm:$0xff] }
 0x3bb   : > { %3098 = vmatmul.mubr.f32.gmra.mrb[26].mxu1 %v2903_v56  ;;  %v7411_v56 = vpack.c.bf16 %v3371_v38, %v3370_v35 }
 0x3bc   : > { %7372 = vmatpush1.bf16.msra.mxu1 %v9375_v43  ;;  %6552 = vmatprep.mubr.msk.f32.mxu1 %vm2905_vm1, %v6523_v59  ;;  %v6524_v43 = vld [vmem:[%s11082_s3 + $0xf0] sm:$0xff]  ;;  %v3372_v59 = vld [vmem:[%s11083_s4 + $0xa0] sm:$0xff] }
 0x3bd   : > { %7374 = vmatprep.subr.bf16.mxu1 %v9387_v8  ;;  %v6538_v8 = vld [vmem:[%s11082_s3 + $0x160] sm:$0xff] }
 0x3c0   : > { %7376 = vmatpush1.bf16.msra.mxu1 %v9385_v5  ;;  %v3352_v5 = vld [vmem:[%s11083_s4] sm:$0xff] }
 0x3c1   : > { %7379 = vmatprep.subr.msk.bf16.mxu1 %vm9398_vm4, %v9402_v40  ;;  %v7384_v11 = vpack.c.bf16 %v3353_v6, %v3352_v5  ;;  %v3357_v40 = vld [vmem:[%s11083_s4 + $0x28] sm:$0xff] }
 0x3c4   : > { %7382 = vmatpush1.bf16.msk.msra.mxu1 %vm9398_vm4, %v9395_v34  ;;  %v3356_v34 = vld [vmem:[%s11083_s4 + $0x20] sm:$0xff] }
 0x3c5   : > { %7383 = vmatprep.subr.bf16.mxu1 %v8245_v9  ;;  %v7390_v33 = vpack.c.bf16 %v3357_v40, %v3356_v34  ;;  %v6580_v34 = vld [vmem:[%s11083_s4 + $0xa8] sm:$0xff]  ;;  %v6581_v40 = vld [vmem:[%s11083_s4 + $0xb0] sm:$0xff] }
 0x3c6   : > { %v7414_v48 = vpack.c.bf16 %v6581_v40, %v6580_v34 }
 0x3c7   : > { %3240 = vmatmul.mubr.f32.vlgmr.msra.gmra.mrb[28].mxu1 %v6522_v17 }
 0x3c8   : > { %6553 = vmatprep.mubr.msk.f32.mxu1 %vm2905_vm1, %v6525_v20  ;;  %7385 = vmatpush1.bf16.msra.mxu1 %v7384_v11 }
 0x3c9   : > { %7386 = vmatprep.subr.bf16.mxu1 %v8245_v9 }
 0x3cb   : > { %3246 = vmatmul.mubr.f32.gmra.mrb[30].mxu1 %v6524_v43 }
 0x3cc   : > { %6554 = vmatprep.mubr.msk.f32.mxu1 %vm2905_vm1, %v6527_v44  ;;  %7388 = vmatpush1.bf16.msra.mxu1 %v7387_v24 }
 0x3cd   : > { %7389 = vmatprep.subr.bf16.mxu1 %v8245_v9 }
 0x3cf   : > { %3252 = vmatmul.mubr.f32.gmra.mrb[32].mxu1 %v6526_v46 }
 0x3d0   : > { %6555 = vmatprep.mubr.msk.f32.mxu1 %vm2905_vm1, %v6529_v50  ;;  %7391 = vmatpush1.bf16.msra.mxu1 %v7390_v33 }
 0x3d1   : > { %7392 = vmatprep.subr.bf16.mxu1 %v8245_v9 }
 0x3d3   : > { %3258 = vmatmul.mubr.f32.gmra.mrb[34].mxu1 %v6528_v51 }
 0x3d4   : > { %6556 = vmatprep.mubr.msk.f32.mxu1 %vm2905_vm1, %v6531_v52  ;;  %7394 = vmatpush1.bf16.msra.mxu1 %v7393_v61  ;;  %v6583_v61 = vld [vmem:[%s11083_s4 + $0xc0] sm:$0xff] }
 0x3d5   : > { %7395 = vmatprep.subr.bf16.mxu1 %v8245_v9 }
 0x3d7   : > { %3264 = vmatmul.mubr.f32.gmra.mrb[36].mxu1 %v6530_v53 }
 0x3d8   : > { %6557 = vmatprep.mubr.msk.f32.mxu1 %vm2905_vm1, %v6533_v54  ;;  %7397 = vmatpush1.bf16.msra.mxu1 %v7396_v32 }
 0x3d9   : > { %7398 = vmatprep.subr.bf16.mxu1 %v8245_v9 }
 0x3db   : > { %3270 = vmatmul.mubr.f32.gmra.mrb[38].mxu1 %v6532_v58 }
 0x3dc   : > { %6558 = vmatprep.mubr.msk.f32.mxu1 %vm2905_vm1, %v6535_v60  ;;  %7400 = vmatpush1.bf16.msra.mxu1 %v7399_v62 }
 0x3dd   : > { %7401 = vmatprep.subr.bf16.mxu1 %v8245_v9 }
 0x3df   : > { %3276 = vmatmul.mubr.f32.gmra.mrb[40].mxu1 %v6534_v0 }
 0x3e0   : > { %6559 = vmatprep.mubr.msk.f32.mxu1 %vm2905_vm1, %v6537_v2  ;;  %7403 = vmatpush1.bf16.msra.mxu1 %v7402_v18 }
 0x3e1   : > { %7404 = vmatprep.subr.bf16.mxu1 %v8245_v9 }
 0x3e3   : > { %3282 = vmatmul.mubr.f32.gmra.mrb[42].mxu1 %v6536_v3 }
 0x3e4   : > { %6560 = vmatprep.mubr.msk.f32.mxu1 %vm2905_vm1, %v6539_v4  ;;  %7406 = vmatpush1.bf16.msra.mxu1 %v7405_v55  ;;  %v6587_v55 = vld [vmem:[%s11083_s4 + $0xe0] sm:$0xff] }
 0x3e5   : > { %7407 = vmatprep.subr.bf16.mxu1 %v8245_v9  ;;  %v7423_v38 = vpack.c.bf16 %v6587_v55, %v6586_v39 }
 0x3e7   : > { %3288 = vmatmul.mubr.f32.gmra.mrb[44].mxu1 %v6538_v8 }
 0x3e8   : > { %6561 = vmatprep.mubr.msk.f32.mxu1 %vm2905_vm1, %v6541_v15  ;;  %7409 = vmatpush1.bf16.msra.mxu1 %v7408_v13 }
 0x3e9   : > { %7410 = vmatprep.subr.bf16.mxu1 %v8245_v9 }
 0x3eb   : > { %3294 = vmatmul.mubr.f32.gmra.mrb[46].mxu1 %v6540_v19 }
 0x3ec   : > { %6562 = vmatprep.mubr.msk.f32.mxu1 %vm2905_vm1, %v6543_v21  ;;  %7412 = vmatpush1.bf16.msra.mxu1 %v7411_v56  ;;  %v6588_v56 = vld [vmem:[%s11083_s4 + $0xe8] sm:$0xff] }
 0x3ed   : > { %3456 = vmatprep.subr.mxu1 %v8243_v7 }
 0x3ef   : > { %3300 = vmatmul.mubr.f32.gmra.mrb[48].mxu1 %v6542_v25 }
 0x3f0   : > { %6563 = vmatprep.mubr.msk.f32.mxu1 %vm2905_vm1, %v6545_v29  ;;  %3457 = vmatpush1.msra.mxu1 %v3372_v59  ;;  %v6589_v59 = vld [vmem:[%s11083_s4 + $0xf0] sm:$0xff] }
 0x3f1   : > { %7413 = vmatprep.subr.bf16.mxu1 %v8245_v9 }
 0x3f3   : > { %3306 = vmatmul.mubr.f32.gmra.mrb[50].mxu1 %v6544_v31 }
 0x3f4   : > { %6564 = vmatprep.mubr.msk.f32.mxu1 %vm2905_vm1, %v6547_v41 }
 0x3f7   : > { %3312 = vmatmul.mubr.f32.gmra.mrb[52].mxu1 %v6546_v49  ;;  %v6582_v49 = vld [vmem:[%s11083_s4 + $0xb8] sm:$0xff] }
 0x3f8   : > { %6565 = vmatprep.mubr.msk.f32.mxu1 %vm2905_vm1, %v6549_v63  ;;  %v7417_v32 = vpack.c.bf16 %v6583_v61, %v6582_v49 }
 0x3fb   : > { %3318 = vmatmul.mubr.f32.gmra.mrb[54].mxu1 %v6548_v26 }
 0x45a   : > { %v3021_v17 = vpop.f32.mrb[0].mxu1 }
 0x45b   : > { %v3023_v20 = vpop.f32.mrb[1].mxu1 }
 0x45e   : > { %v3027_v43 = vpop.f32.mrb[2].mxu1 }
 0x45f   : > { %v3029_v44 = vpop.f32.mrb[3].mxu1 }
 0x462   : > { %v3033_v46 = vpop.f32.mrb[4].mxu1 }
 0x463   : > { %v3035_v50 = vpop.f32.mrb[5].mxu1 }
 0x466   : > { %v3039_v51 = vpop.f32.mrb[6].mxu1 }
 0x467   : > { %v3041_v52 = vpop.f32.mrb[7].mxu1 }
 0x46a   : > { %v9714_v53 = vpop.f32.mrb[8].mxu1 }
 0x46b   : > { %v9716_v54 = vpop.f32.mrb[9].mxu1 }
 0x46e   : > { %v9718_v58 = vpop.f32.mrb[10].mxu1 }
 0x46f   : > { %v9720_v60 = vpop.f32.mrb[11].mxu1 }
 0x472   : > { %v9722_v0 = vpop.f32.mrb[12].mxu1 }
 0x473   : > { %v9724_v2 = vpop.f32.mrb[13].mxu1 }
 0x476   : > { %v9726_v3 = vpop.f32.mrb[14].mxu1 }
 0x477   : > { %v9728_v4 = vpop.f32.mrb[15].mxu1 }
 0x47a   : > { %v9730_v5 = vpop.f32.mrb[16].mxu1 }
 0x47b   : > { %v9732_v6 = vpop.f32.mrb[17].mxu1 }
 0x47e   : > { %v9734_v8 = vpop.f32.mrb[18].mxu1 }
 0x47f   : > { %v9736_v11 = vpop.f32.mrb[19].mxu1 }
 0x482   : > { %v9738_v15 = vpop.f32.mrb[20].mxu1 }
 0x483   : > { %v9740_v19 = vpop.f32.mrb[21].mxu1 }
 0x486   : > { %v9742_v21 = vpop.f32.mrb[22].mxu1 }
 0x487   : > { %v9744_v22 = vpop.f32.mrb[23].mxu1 }
 0x48a   : > { %v9746_v23 = vpop.f32.mrb[24].mxu1 }
 0x48b   : > { %v9748_v24 = vpop.f32.mrb[25].mxu1 }
 0x48e   : > { %v9750_v25 = vpop.f32.mrb[26].mxu1 }
 0x48f   : > { %v9752_v29 = vpop.f32.mrb[27].mxu1 }
 0x49a   : > { %v3241_v31 = vpop.f32.mrb[28].mxu1 }
 0x49b   : > { %v9760_v33 = vmax.f32 %v3021_v17, %v3241_v31  ;;  %v3243_v41 = vpop.f32.mrb[29].mxu1  ;;  %v6592_v31 = vld [vmem:[%s11083_s4 + $0x108] sm:$0xff] }
 0x49c   : > { %v9762_v42 = vmax.f32 %v3023_v20, %v3243_v41  ;;  %v6593_v41 = vld [vmem:[%s11083_s4 + $0x110] sm:$0xff] }
 0x49d   : > { %v7432_v61 = vpack.c.bf16 %v6593_v41, %v6592_v31 }
 0x49e   : > { %v3247_v63 = vpop.f32.mrb[30].mxu1  ;;  %6566 = vmatprep.mubr.msk.f32.mxu1 %vm3373_vm5, %v9762_v42 }
 0x49f   : > { %v9772_v12 = vmax.f32 %v3027_v43, %v3247_v63  ;;  %v3249_v14 = vpop.f32.mrb[31].mxu1  ;;  %3481 = vmatmul.mubr.f32.vlgmr.msra.gmra.mrb[56].mxu1 %v9760_v33  ;;  %v6594_v63 = vld [vmem:[%s11083_s4 + $0x118] sm:$0xff] }
 0x4a0   : > { %v9775_v26 = vmax.f32 %v3029_v44, %v3249_v14  ;;  %7415 = vmatpush1.bf16.msra.mxu1 %v7414_v48  ;;  %v6595_v14 = vld [vmem:[%s11083_s4 + $0x120] sm:$0xff] }
 0x4a1   : > { %7416 = vmatprep.subr.bf16.mxu1 %v8245_v9  ;;  %v7435_v47 = vpack.c.bf16 %v6595_v14, %v6594_v63  ;;  %v6627_v63 = vld [vmem:[%s11084_s5 + $0x110] sm:$0xff] }
 0x4a2   : > { %v3253_v62 = vpop.f32.mrb[32].mxu1  ;;  %6567 = vmatprep.mubr.msk.f32.mxu1 %vm3373_vm5, %v9775_v26 }
 0x4a3   : > { %v9786_v1 = vmax.f32 %v3033_v46, %v3253_v62  ;;  %v3255_v16 = vpop.f32.mrb[33].mxu1  ;;  %3486 = vmatmul.mubr.f32.gmra.mrb[58].mxu1 %v9772_v12  ;;  %v7426_v46 = vpack.c.bf16 %v6589_v59, %v6588_v56  ;;  %v6596_v62 = vld [vmem:[%s11083_s4 + $0x128] sm:$0xff] }
 0x4a4   : > { %v9789_v18 = vmax.f32 %v3035_v50, %v3255_v16  ;;  %7418 = vmatpush1.bf16.msra.mxu1 %v7417_v32  ;;  %v6590_v50 = vld [vmem:[%s11083_s4 + $0xf8] sm:$0xff]  ;;  %v6597_v16 = vld [vmem:[%s11083_s4 + $0x130] sm:$0xff] }
 0x4a5   : > { %7419 = vmatprep.subr.bf16.mxu1 %v8245_v9  ;;  %v7438_v55 = vpack.c.bf16 %v6597_v16, %v6596_v62  ;;  %v6633_v16 = vld [vmem:[%s11084_s5 + $0x140] sm:$0xff] }
 0x4a6   : > { %v3259_v57 = vpop.f32.mrb[34].mxu1  ;;  %6568 = vmatprep.mubr.msk.f32.mxu1 %vm3373_vm5, %v9789_v18 }
 0x4a7   : > { %v9800_v10 = vmax.f32 %v3039_v51, %v3259_v57  ;;  %v3261_v13 = vpop.f32.mrb[35].mxu1  ;;  %3491 = vmatmul.mubr.f32.gmra.mrb[60].mxu1 %v9786_v1  ;;  %v6591_v51 = vld [vmem:[%s11083_s4 + $0x100] sm:$0xff]  ;;  %v6598_v57 = vld [vmem:[%s11083_s4 + $0x138] sm:$0xff] }
 0x4a8   : > { %v9803_v35 = vmax.f32 %v3041_v52, %v3261_v13  ;;  %7421 = vmatpush1.bf16.msra.mxu1 %v7420_v37  ;;  %v7429_v40 = vpack.c.bf16 %v6591_v51, %v6590_v50  ;;  %v6599_v13 = vld [vmem:[%s11083_s4 + $0x140] sm:$0xff] }
 0x4a9   : > { %7422 = vmatprep.subr.bf16.mxu1 %v8245_v9  ;;  %v7441_v59 = vpack.c.bf16 %v6599_v13, %v6598_v57 }
 0x4aa   : > { %v3265_v17 = vpop.f32.mrb[36].mxu1  ;;  %6569 = vmatprep.mubr.msk.f32.mxu1 %vm3373_vm5, %v9803_v35 }
 0x4ab   : > { %v9815_v20 = vmax.f32 %v9714_v53, %v3265_v17  ;;  %v3267_v43 = vpop.f32.mrb[37].mxu1  ;;  %3496 = vmatmul.mubr.f32.gmra.mrb[62].mxu1 %v9800_v10 }
 0x4ac   : > { %v9819_v44 = vmax.f32 %v9716_v54, %v3267_v43  ;;  %7424 = vmatpush1.bf16.msra.mxu1 %v7423_v38 }
 0x4ad   : > { %7425 = vmatprep.subr.bf16.mxu1 %v8245_v9 }
 0x4ae   : > { %v3271_v52 = vpop.f32.mrb[38].mxu1  ;;  %6570 = vmatprep.mubr.msk.f32.mxu1 %vm3373_vm5, %v9819_v44 }
 0x4af   : > { %v9831_v53 = vmax.f32 %v9718_v58, %v3271_v52  ;;  %v3273_v54 = vpop.f32.mrb[39].mxu1  ;;  %3501 = vmatmul.mubr.f32.gmra.mrb[64].mxu1 %v9815_v20 }
 0x4b0   : > { %v9835_v34 = vmax.f32 %v9720_v60, %v3273_v54  ;;  %7427 = vmatpush1.bf16.msra.mxu1 %v7426_v46 }
 0x4b1   : > { %7428 = vmatprep.subr.bf16.mxu1 %v8245_v9 }
 0x4b2   : > { %v3277_v58 = vpop.f32.mrb[40].mxu1  ;;  %6571 = vmatprep.mubr.msk.f32.mxu1 %vm3373_vm5, %v9835_v34 }
 0x4b3   : > { %v9847_v48 = vmax.f32 %v9722_v0, %v3277_v58  ;;  %v3279_v60 = vpop.f32.mrb[41].mxu1  ;;  %3506 = vmatmul.mubr.f32.gmra.mrb[66].mxu1 %v9831_v53 }
 0x4b4   : > { %v9851_v49 = vmax.f32 %v9724_v2, %v3279_v60  ;;  %7430 = vmatpush1.bf16.msra.mxu1 %v7429_v40 }
 0x4b5   : > { %7431 = vmatprep.subr.bf16.mxu1 %v8245_v9 }
 0x4b6   : > { %v3283_v0 = vpop.f32.mrb[42].mxu1  ;;  %6572 = vmatprep.mubr.msk.f32.mxu1 %vm3373_vm5, %v9851_v49 }
 0x4b7   : > { %v9863_v32 = vmax.f32 %v9726_v3, %v3283_v0  ;;  %v3285_v2 = vpop.f32.mrb[43].mxu1  ;;  %3511 = vmatmul.mubr.f32.gmra.mrb[68].mxu1 %v9847_v48  ;;  %v6629_v0 = vld [vmem:[%s11084_s5 + $0x120] sm:$0xff] }
 0x4b8   : > { %v9867_v45 = vmax.f32 %v9728_v4, %v3285_v2  ;;  %7433 = vmatpush1.bf16.msra.mxu1 %v7432_v61  ;;  %v6630_v61 = vld [vmem:[%s11084_s5 + $0x128] sm:$0xff]  ;;  %v6632_v2 = vld [vmem:[%s11084_s5 + $0x138] sm:$0xff] }
 0x4b9   : > { %7434 = vmatprep.subr.bf16.mxu1 %v8245_v9 }
 0x4ba   : > { %v3289_v3 = vpop.f32.mrb[44].mxu1  ;;  %6573 = vmatprep.mubr.msk.f32.mxu1 %vm3373_vm5, %v9867_v45 }
 0x4bb   : > { %v9879_v37 = vmax.f32 %v9730_v5, %v3289_v3  ;;  %v3291_v4 = vpop.f32.mrb[45].mxu1  ;;  %3516 = vmatmul.mubr.f32.gmra.mrb[70].mxu1 %v9863_v32 }
 0x4bc   : > { %v3341_v39 = vmax.f32 %v9732_v6, %v3291_v4  ;;  %7436 = vmatpush1.bf16.msra.mxu1 %v7435_v47  ;;  %v6631_v47 = vld [vmem:[%s11084_s5 + $0x130] sm:$0xff] }
 0x4bd   : > { %7437 = vmatprep.subr.bf16.mxu1 %v8245_v9  ;;  %v7461_v3 = vpack.c.bf16 %v6633_v16, %v6631_v47  ;;  %v6635_v4 = vld [vmem:[%s11084_s5 + $0x150] sm:$0xf]  ;;  %v3760_v47 = vld [vmem:[%s11084_s5 + $0x48] sm:$0xff] }
 0x4be   : > { %v3295_v38 = vpop.f32.mrb[46].mxu1  ;;  %6574 = vmatprep.mubr.msk.f32.mxu1 %vm3373_vm5, %v3341_v39 }
 0x4bf   : > { %v3342_v5 = vmax.f32 %v9734_v8, %v3295_v38  ;;  %v3297_v56 = vpop.f32.mrb[47].mxu1  ;;  %3521 = vmatmul.mubr.f32.gmra.mrb[72].mxu1 %v9879_v37  ;;  %v6600_v8 = vld [vmem:[%s11083_s4 + $0x148] sm:$0xff] }
 0x4c0   : > { %v3343_v6 = vmax.f32 %v9736_v11, %v3297_v56  ;;  %7439 = vmatpush1.bf16.msra.mxu1 %v7438_v55  ;;  %v3754_v55 = vld [vmem:[%s11084_s5 + $0x18] sm:$0xff] }
 0x4c1   : > { %7440 = vmatprep.subr.bf16.mxu1 %v8245_v9 }
 0x4c2   : > { %v3301_v17 = vpop.f32.mrb[48].mxu1  ;;  %6575 = vmatprep.mubr.msk.f32.mxu1 %vm3373_vm5, %v3343_v6 }
 0x4c3   : > { %v3344_v43 = vmax.f32 %v9738_v15, %v3301_v17  ;;  %v3303_v46 = vpop.f32.mrb[49].mxu1  ;;  %3526 = vmatmul.mubr.f32.gmra.mrb[74].mxu1 %v3342_v5 }
 0x4c4   : > { %v3345_v50 = vmax.f32 %v9740_v19, %v3303_v46  ;;  %7442 = vmatpush1.bf16.msra.mxu1 %v7441_v59 }
 0x4c5   : > { %3613 = vmatprep.subr.mxu1 %v8243_v7 }
 0x4c6   : > { %v3307_v11 = vpop.f32.mrb[50].mxu1  ;;  %6576 = vmatprep.mubr.msk.f32.mxu1 %vm3373_vm5, %v3345_v50 }
 0x4c7   : > { %v3346_v51 = vmax.f32 %v9742_v21, %v3307_v11  ;;  %v3309_v52 = vpop.f32.mrb[51].mxu1  ;;  %3531 = vmatmul.mubr.f32.gmra.mrb[76].mxu1 %v3344_v43 }
 0x4c8   : > { %v3347_v15 = vmax.f32 %v9744_v22, %v3309_v52  ;;  %3614 = vmatpush1.msra.mxu1 %v6600_v8  ;;  %v6616_v22 = vld [vmem:[%s11084_s5 + $0xb8] sm:$0xff] }
 0x4ca   : > { %v3313_v54 = vpop.f32.mrb[52].mxu1  ;;  %6577 = vmatprep.mubr.msk.f32.mxu1 %vm3373_vm5, %v3347_v15 }
 0x4cb   : > { %v3348_v19 = vmax.f32 %v9746_v23, %v3313_v54  ;;  %v3315_v40 = vpop.f32.mrb[53].mxu1  ;;  %3536 = vmatmul.mubr.f32.gmra.mrb[78].mxu1 %v3346_v51  ;;  %v6618_v23 = vld [vmem:[%s11084_s5 + $0xc8] sm:$0xff] }
 0x4cc   : > { %v3349_v31 = vmax.f32 %v9748_v24, %v3315_v40  ;;  %v6615_v24 = vld [vmem:[%s11084_s5 + $0xb0] sm:$0xff] }
 0x4ce   : > { %v3319_v41 = vpop.f32.mrb[54].mxu1  ;;  %6578 = vmatprep.mubr.msk.f32.mxu1 %vm3373_vm5, %v3349_v31 }
 0x4cf   : > { %v3350_v58 = vmax.f32 %v9750_v25, %v3319_v41  ;;  %v3321_v21 = vpop.f32.mrb[55].mxu1  ;;  %3541 = vmatmul.mubr.f32.gmra.mrb[80].mxu1 %v3348_v19  ;;  %v7443_v25 = vpack.c.bf16 %v6618_v23, %v6616_v22 }
 0x4d0   : > { %v3351_v60 = vmax.f32 %v9752_v29, %v3321_v21  ;;  %v6617_v29 = vld [vmem:[%s11084_s5 + $0xc0] sm:$0xff] }
 0x4d1   : > { %7444 = vmatprep.subr.bf16.mxu1 %v7443_v25 }
 0x4d2   : > { %6579 = vmatprep.mubr.msk.f32.mxu1 %vm3373_vm5, %v3351_v60 }
 0x4d3   : > { %3546 = vmatmul.mubr.f32.gmra.mrb[82].mxu1 %v3350_v58 }
 0x4d4   : > { %6601 = vmatprep.mubr.msk.f32.mxu1 %vm3373_vm5, %v9762_v42  ;;  %v6620_v42 = vld [vmem:[%s11084_s5 + $0xd8] sm:$0xff] }
 0x4d7   : > { %3638 = vmatmul.mubr.f32.vlgmr.msra.gmra.mrb[84].mxu1 %v9760_v33  ;;  %v7445_v33 = vpack.c.bf16 %v6617_v29, %v6615_v24 }
 0x4d8   : > { %6602 = vmatprep.mubr.msk.f32.mxu1 %vm3373_vm5, %v9775_v26 }
 0x4d9   : > { %7446 = vmatpush1.bf16.msra.mxu1 %v7445_v33 }
 0x4db   : > { %3643 = vmatmul.mubr.f32.gmra.mrb[86].mxu1 %v9772_v12  ;;  %v6622_v12 = vld [vmem:[%s11084_s5 + $0xe8] sm:$0xff] }
 0x4dc   : > { %6603 = vmatprep.mubr.msk.f32.mxu1 %vm3373_vm5, %v9789_v18  ;;  %v7447_v26 = vpack.c.bf16 %v6622_v12, %v6620_v42  ;;  %v6621_v18 = vld [vmem:[%s11084_s5 + $0xe0] sm:$0xff] }
 0x4de   : > { %7448 = vmatprep.subr.bf16.mxu1 %v7447_v26 }
 0x4df   : > { %3648 = vmatmul.mubr.f32.gmra.mrb[88].mxu1 %v9786_v1  ;;  %v6619_v1 = vld [vmem:[%s11084_s5 + $0xd0] sm:$0xff] }
 0x4e0   : > { %6604 = vmatprep.mubr.msk.f32.mxu1 %vm3373_vm5, %v9803_v35  ;;  %v6624_v35 = vld [vmem:[%s11084_s5 + $0xf8] sm:$0xff] }
 0x4e3   : > { %3653 = vmatmul.mubr.f32.gmra.mrb[90].mxu1 %v9800_v10  ;;  %v7449_v10 = vpack.c.bf16 %v6621_v18, %v6619_v1 }
 0x4e4   : > { %6605 = vmatprep.mubr.msk.f32.mxu1 %vm3373_vm5, %v9819_v44  ;;  %v6623_v44 = vld [vmem:[%s11084_s5 + $0xf0] sm:$0xff] }
 0x4e5   : > { %7450 = vmatpush1.bf16.msra.mxu1 %v7449_v10 }
 0x4e7   : > { %3658 = vmatmul.mubr.f32.gmra.mrb[92].mxu1 %v9815_v20  ;;  %v6626_v20 = vld [vmem:[%s11084_s5 + $0x108] sm:$0xff] }
 0x4e8   : > { %6606 = vmatprep.mubr.msk.f32.mxu1 %vm3373_vm5, %v9835_v34  ;;  %v6625_v34 = vld [vmem:[%s11084_s5 + $0x100] sm:$0xff] }
 0x4eb   : > { %3663 = vmatmul.mubr.f32.gmra.mrb[94].mxu1 %v9831_v53  ;;  %v7451_v53 = vpack.c.bf16 %v6626_v20, %v6624_v35 }
 0x4ec   : > { %6607 = vmatprep.mubr.msk.f32.mxu1 %vm3373_vm5, %v9851_v49  ;;  %v6628_v49 = vld [vmem:[%s11084_s5 + $0x118] sm:$0xff] }
 0x4ed   : > { %7452 = vmatprep.subr.bf16.mxu1 %v7451_v53  ;;  %v7455_v14 = vpack.c.bf16 %v6630_v61, %v6628_v49  ;;  %v3753_v53 = vld [vmem:[%s11084_s5 + $0x10] sm:$0xff] }
 0x4ef   : > { %3668 = vmatmul.mubr.f32.gmra.mrb[96].mxu1 %v9847_v48  ;;  %v7453_v48 = vpack.c.bf16 %v6625_v34, %v6623_v44  ;;  %v3751_v44 = vld [vmem:[%s11084_s5] sm:$0xff]  ;;  %v3756_v34 = vld [vmem:[%s11084_s5 + $0x28] sm:$0xff] }
 0x4f0   : > { %6608 = vmatprep.mubr.msk.f32.mxu1 %vm3373_vm5, %v9867_v45  ;;  %v6634_v45 = vld [vmem:[%s11084_s5 + $0x148] sm:$0xff]  ;;  %v7465_v61 = vpack.c.bf16 %v3753_v53, %v3751_v44  ;;  %v3771_v53 = vld [vmem:[%s11084_s5 + $0xa0] sm:$0xf] }
 0x4f1   : > { %7454 = vmatpush1.bf16.msra.mxu1 %v7453_v48  ;;  %v7459_v62 = vpack.c.bf16 %v6634_v45, %v6632_v2  ;;  %v3758_v48 = vld [vmem:[%s11084_s5 + $0x38] sm:$0xff]  ;;  %v3757_v2 = vld [vmem:[%s11084_s5 + $0x30] sm:$0xff] }
 0x4f2   : > { %7456 = vmatprep.subr.bf16.mxu1 %v7455_v14 }
 0x4f3   : > { %3673 = vmatmul.mubr.f32.gmra.mrb[98].mxu1 %v9863_v32  ;;  %v7457_v32 = vpack.c.bf16 %v6629_v0, %v6627_v63  ;;  %v7467_v0 = vpack.c.bf16 %v3758_v48, %v3756_v34 }
 0x4f4   : > { %6609 = vmatprep.mubr.msk.f32.mxu1 %vm3373_vm5, %v3341_v39  ;;  %v3752_v39 = vld [vmem:[%s11084_s5 + $0x8] sm:$0xff] }
 0x4f5   : > { %7458 = vmatpush1.bf16.msra.mxu1 %v7457_v32  ;;  %v7463_v57 = vpack.c.bf16 %v3754_v55, %v3752_v39  ;;  %v3755_v32 = vld [vmem:[%s11084_s5 + $0x20] sm:$0xff] }
 0x4f6   : > { %7460 = vmatprep.subr.bf16.mxu1 %v7459_v62  ;;  %v3762_v62 = vld [vmem:[%s11084_s5 + $0x58] sm:$0xff]  ;;  %v3759_v55 = vld [vmem:[%s11084_s5 + $0x40] sm:$0xff] }
 0x4f7   : > { %3678 = vmatmul.mubr.f32.gmra.mrb[100].mxu1 %v9879_v37  ;;  %v6636_v37 = vld [vmem:[%s11084_s5 + $0x158] sm:$0xf]  ;;  %v7471_v39 = vpack.c.bf16 %v3762_v62, %v3760_v47 }
 0x4f8   : > { %6610 = vmatprep.mubr.msk.f32.mxu1 %vm3373_vm5, %v3343_v6 }
 0x4f9   : > { %7462 = vmatpush1.bf16.msra.mxu1 %v7461_v3  ;;  %v7469_v3 = vpack.c.bf16 %v3757_v2, %v3755_v32 }
 0x4fa   : > { %6637 = vmatprep.subr.msk.mxu1 %vm2948_vm2, %v6636_v37 }
 0x4fb   : > { %3683 = vmatmul.mubr.f32.gmra.mrb[102].mxu1 %v3342_v5 }
 0x4fc   : > { %6611 = vmatprep.mubr.msk.f32.mxu1 %vm3373_vm5, %v3345_v50 }
 0x4fd   : > { %6638 = vmatpush1.msk.msra.mxu1 %vm2948_vm2, %v6635_v4 }
 0x4fe   : > { %7464 = vmatprep.subr.bf16.mxu1 %v7463_v57  ;;  %v3761_v57 = vld [vmem:[%s11084_s5 + $0x50] sm:$0xff] }
 0x4ff   : > { %3688 = vmatmul.mubr.f32.gmra.mrb[104].mxu1 %v3344_v43 }
 0x500   : > { %6612 = vmatprep.mubr.msk.f32.mxu1 %vm3373_vm5, %v3347_v15 }
 0x503   : > { %3693 = vmatmul.mubr.f32.gmra.mrb[106].mxu1 %v3346_v51 }
 0x504   : > { %6613 = vmatprep.mubr.msk.f32.mxu1 %vm3373_vm5, %v3349_v31 }
 0x507   : > { %3698 = vmatmul.mubr.f32.gmra.mrb[108].mxu1 %v3348_v19 }
 0x508   : > { %6614 = vmatprep.mubr.msk.f32.mxu1 %vm3373_vm5, %v3351_v60 }
 0x50b   : > { %3703 = vmatmul.mubr.f32.gmra.mrb[110].mxu1 %v3350_v58 }
 0x50c   : > { %3922 = vmatprep.mubr.f32.mxu1 %v8243_v7 }
 0x572   : > { %v3482_v13 = vpop.f32.mrb[56].mxu1 }
 0x573   : > { %v3484_v38 = vpop.f32.mrb[57].mxu1 }
 0x574   : > { %v3764_v38 = vld [vmem:[%s11084_s5 + $0x68] sm:$0xff] }
 0x576   : > { %v3487_v5 = vpop.f32.mrb[58].mxu1 }
 0x577   : > { %v3489_v56 = vpop.f32.mrb[59].mxu1 }
 0x57a   : > { %v3492_v6 = vpop.f32.mrb[60].mxu1 }
 0x57b   : > { %v3494_v59 = vpop.f32.mrb[61].mxu1 }
 0x57e   : > { %v3497_v17 = vpop.f32.mrb[62].mxu1 }
 0x57f   : > { %v3499_v43 = vpop.f32.mrb[63].mxu1 }
 0x582   : > { %v10018_v46 = vpop.f32.mrb[64].mxu1 }
 0x583   : > { %v3504_v50 = vpop.f32.mrb[65].mxu1 }
 0x584   : > { %v3765_v50 = vld [vmem:[%s11084_s5 + $0x70] sm:$0xff] }
 0x586   : > { %v10020_v8 = vpop.f32.mrb[66].mxu1 }
 0x587   : > { %v3509_v11 = vpop.f32.mrb[67].mxu1 }
 0x58a   : > { %v10022_v51 = vpop.f32.mrb[68].mxu1 }
 0x58b   : > { %v3514_v52 = vpop.f32.mrb[69].mxu1 }
 0x58c   : > { %v3768_v52 = vld [vmem:[%s11084_s5 + $0x88] sm:$0xff] }
 0x58e   : > { %v10024_v15 = vpop.f32.mrb[70].mxu1 }
 0x58f   : > { %v3519_v54 = vpop.f32.mrb[71].mxu1 }
 0x592   : > { %v10026_v19 = vpop.f32.mrb[72].mxu1 }
 0x593   : > { %v3524_v40 = vpop.f32.mrb[73].mxu1 }
 0x596   : > { %v10028_v31 = vpop.f32.mrb[74].mxu1 }
 0x597   : > { %v3529_v41 = vpop.f32.mrb[75].mxu1 }
 0x59a   : > { %v10030_v58 = vpop.f32.mrb[76].mxu1 }
 0x59b   : > { %v3534_v21 = vpop.f32.mrb[77].mxu1 }
 0x59e   : > { %v10032_v60 = vpop.f32.mrb[78].mxu1 }
 0x59f   : > { %v3539_v22 = vpop.f32.mrb[79].mxu1 }
 0x5a2   : > { %v10034_v23 = vpop.f32.mrb[80].mxu1 }
 0x5a3   : > { %v3544_v24 = vpop.f32.mrb[81].mxu1 }
 0x5a4   : > { %v3767_v24 = vld [vmem:[%s11084_s5 + $0x80] sm:$0xff] }
 0x5a6   : > { %v10036_v25 = vpop.f32.mrb[82].mxu1 }
 0x5a7   : > { %v3549_v29 = vpop.f32.mrb[83].mxu1 }
 0x5a8   : > { %v3769_v29 = vld [vmem:[%s11084_s5 + $0x90] sm:$0xff] }
 0x5aa   : > { %v3639_v33 = vpop.f32.mrb[84].mxu1 }
 0x5ab   : > { %v3708_v42 = vmax.f32 %v3482_v13, %v3639_v33  ;;  %v3641_v12 = vpop.f32.mrb[85].mxu1 }
 0x5ad   : > { %3723 = vst.msk [vmem:[#allocation2] sm:$0xff] %vm3722_vm6, %v3708_v42 }
 0x5ae   : > { %v3644_v26 = vpop.f32.mrb[86].mxu1 }
 0x5af   : > { %v3709_v1 = vmax.f32 %v3487_v5, %v3644_v26  ;;  %v3646_v18 = vpop.f32.mrb[87].mxu1  ;;  %v3766_v5 = vld [vmem:[%s11084_s5 + $0x78] sm:$0xff] }
 0x5b0   : > { %v7475_v43 = vpack.c.bf16 %v3766_v5, %v3764_v38  ;;  %v6674_v5 = vld [vmem:[%s11084_s5 + $0x188] sm:$0xff] }
 0x5b1   : > { %3724 = vst.msk [vmem:[#allocation2 + $0x8] sm:$0xff] %vm3722_vm6, %v3709_v1  ;;  %v3772_v1 = vld [vmem:[%s11084_s5 + $0xa8] sm:$0xf] }
 0x5b2   : > { %v3649_v10 = vpop.f32.mrb[88].mxu1 }
 0x5b3   : > { %v3710_v35 = vmax.f32 %v3492_v6, %v3649_v10  ;;  %v3651_v20 = vpop.f32.mrb[89].mxu1  ;;  %v7473_v6 = vpack.c.bf16 %v3761_v57, %v3759_v55  ;;  %v6670_v10 = vld [vmem:[%s11084_s5 + $0x168] sm:$0xff] }
 0x5b5   : > { %3725 = vst.msk [vmem:[#allocation2 + $0x10] sm:$0xff] %vm3722_vm6, %v3710_v35  ;;  %v6672_v35 = vld [vmem:[%s11084_s5 + $0x178] sm:$0xff] }
 0x5b6   : > { %v3654_v49 = vpop.f32.mrb[90].mxu1  ;;  %v7483_v34 = vpack.c.bf16 %v6672_v35, %v6670_v10  ;;  %v6685_v10 = vld [vmem:[%s11084_s5 + $0x1e0] sm:$0xff]  ;;  %v6687_v35 = vld [vmem:[%s11084_s5 + $0x1f0] sm:$0xff] }
 0x5b7   : > { %v3711_v63 = vmax.f32 %v3497_v17, %v3654_v49  ;;  %v3656_v14 = vpop.f32.mrb[91].mxu1 }
 0x5b8   : > { %v3773_v45 = vld [vmem:[#allocation2 + $0x1] sm:$0xff] }
 0x5b9   : > { %3726 = vst.msk [vmem:[#allocation2 + $0x18] sm:$0xff] %vm3722_vm6, %v3711_v63  ;;  %6639 = vmatmul.mubr.msk.f32.vlgmr.msra.gmra.mrb[112].mxu1 %vm3722_vm6, %v3773_v45 }
 0x5ba   : > { %v3659_v16 = vpop.f32.mrb[92].mxu1  ;;  %3928 = vmatprep.mubr.f32.mxu1 %v8243_v7  ;;  %7466 = vmatpush1.bf16.msra.mxu1 %v7465_v61 }
 0x5bb   : > { %v3712_v37 = vmax.f32 %v10018_v46, %v3659_v16  ;;  %v3661_v4 = vpop.f32.mrb[93].mxu1  ;;  %7468 = vmatprep.subr.bf16.mxu1 %v7467_v0  ;;  %v3763_v46 = vld [vmem:[%s11084_s5 + $0x60] sm:$0xff] }
 0x5bc   : > { %v3774_v13 = vld [vmem:[#allocation2 + $0x9] sm:$0xff]  ;;  %v7477_v40 = vpack.c.bf16 %v3765_v50, %v3763_v46  ;;  %v3737_v46 = vld [vmem:[#allocation2] sm:$0xff] }
 0x5bd   : > { %3727 = vst.msk [vmem:[#allocation2 + $0x20] sm:$0xff] %vm3722_vm6, %v3712_v37  ;;  %6640 = vmatmul.mubr.msk.f32.gmra.mrb[114].mxu1 %vm3722_vm6, %v3774_v13  ;;  %v6671_v13 = vld [vmem:[%s11084_s5 + $0x170] sm:$0xff]  ;;  %v6678_v50 = vld [vmem:[%s11084_s5 + $0x1a8] sm:$0xff] }
 0x5be   : > { %v3664_v56 = vpop.f32.mrb[94].mxu1  ;;  %3934 = vmatprep.mubr.f32.mxu1 %v8243_v7  ;;  %7470 = vmatpush1.bf16.msra.mxu1 %v7469_v3 }
 0x5bf   : > { %v3713_v59 = vmax.f32 %v10020_v8, %v3664_v56  ;;  %v3666_v17 = vpop.f32.mrb[95].mxu1  ;;  %7472 = vmatprep.subr.bf16.mxu1 %v7471_v39  ;;  %v3770_v8 = vld [vmem:[%s11084_s5 + $0x98] sm:$0xff] }
 0x5c0   : > { %v3775_v11 = vld [vmem:[#allocation2 + $0x11] sm:$0xff]  ;;  %v7479_v22 = vpack.c.bf16 %v3770_v8, %v3768_v52  ;;  %v6673_v17 = vld [vmem:[%s11084_s5 + $0x180] sm:$0xff] }
 0x5c1   : > { %3728 = vst.msk [vmem:[#allocation2 + $0x28] sm:$0xff] %vm3722_vm6, %v3713_v59  ;;  %6641 = vmatmul.mubr.msk.f32.gmra.mrb[116].mxu1 %vm3722_vm6, %v3775_v11  ;;  %v6676_v56 = vld [vmem:[%s11084_s5 + $0x198] sm:$0xff] }
 0x5c2   : > { %v3669_v54 = vpop.f32.mrb[96].mxu1  ;;  %3940 = vmatprep.mubr.f32.mxu1 %v8243_v7  ;;  %7474 = vmatpush1.bf16.msra.mxu1 %v7473_v6  ;;  %v7487_v59 = vpack.c.bf16 %v6676_v56, %v6674_v5  ;;  %v6680_v11 = vld [vmem:[%s11084_s5 + $0x1b8] sm:$0xff]  ;;  %v6717_v5 = vld [vmem:[%s11084_s5 + $0x260] sm:$0xff]  ;;  %v4205_v56 = vld [vmem:[#allocation2 + $0xa] sm:$0xff] }
 0x5c3   : > { %v3714_v41 = vmax.f32 %v10022_v51, %v3669_v54  ;;  %v3671_v21 = vpop.f32.mrb[97].mxu1  ;;  %7476 = vmatprep.subr.bf16.mxu1 %v7475_v43  ;;  %v7481_v51 = vpack.c.bf16 %v3769_v29, %v3767_v24  ;;  %v6675_v43 = vld [vmem:[%s11084_s5 + $0x190] sm:$0xff]  ;;  %v7491_v8 = vpack.c.bf16 %v6680_v11, %v6678_v50  ;;  %v6677_v54 = vld [vmem:[%s11084_s5 + $0x1a0] sm:$0xff] }
 0x5c4   : > { %v3776_v33 = vld [vmem:[#allocation2 + $0x19] sm:$0xff]  ;;  %v7489_v52 = vpack.c.bf16 %v6675_v43, %v6673_v17  ;;  %v6682_v21 = vld [vmem:[%s11084_s5 + $0x1c8] sm:$0xff] }
 0x5c5   : > { %3729 = vst.msk [vmem:[#allocation2 + $0x30] sm:$0xff] %vm3722_vm6, %v3714_v41  ;;  %6642 = vmatmul.mubr.msk.f32.gmra.mrb[118].mxu1 %vm3722_vm6, %v3776_v33  ;;  %v3738_v41 = vld [vmem:[#allocation2 + $0x8] sm:$0xff]  ;;  %v6681_v33 = vld [vmem:[%s11084_s5 + $0x1c0] sm:$0xff]  ;;  %v4206_v11 = vld [vmem:[#allocation2 + $0x12] sm:$0xff] }
 0x5c6   : > { %v3674_v42 = vpop.f32.mrb[98].mxu1  ;;  %3946 = vmatprep.mubr.f32.mxu1 %v8243_v7  ;;  %7478 = vmatpush1.bf16.msra.mxu1 %v7477_v40  ;;  %v6679_v40 = vld [vmem:[%s11084_s5 + $0x1b0] sm:$0xff]  ;;  %v6721_v50 = vld [vmem:[%s11084_s5 + $0x280] sm:$0xff] }
 0x5c7   : > { %v3715_v12 = vmax.f32 %v10024_v15, %v3674_v42  ;;  %v3676_v26 = vpop.f32.mrb[99].mxu1  ;;  %7480 = vmatprep.subr.bf16.mxu1 %v7479_v22  ;;  %v6684_v22 = vld [vmem:[%s11084_s5 + $0x1d8] sm:$0xff]  ;;  %v7493_v24 = vpack.c.bf16 %v6679_v40, %v6677_v54  ;;  %v6683_v42 = vld [vmem:[%s11084_s5 + $0x1d0] sm:$0xff] }
 0x5c8   : > { %v3777_v18 = vld [vmem:[#allocation2 + $0x21] sm:$0xff]  ;;  %v7495_v29 = vpack.c.bf16 %v6684_v22, %v6682_v21  ;;  %v6688_v26 = vld [vmem:[%s11084_s5 + $0x1f8] sm:$0xff] }
 0x5c9   : > { %3730 = vst.msk [vmem:[#allocation2 + $0x38] sm:$0xff] %vm3722_vm6, %v3715_v12  ;;  %6643 = vmatmul.mubr.msk.f32.gmra.mrb[120].mxu1 %vm3722_vm6, %v3777_v18  ;;  %v6686_v12 = vld [vmem:[%s11084_s5 + $0x1e8] sm:$0xff]  ;;  %v6725_v21 = vld [vmem:[%s11084_s5 + $0x2a0] sm:$0xff] }
 0x5ca   : > { %v3679_v15 = vpop.f32.mrb[100].mxu1  ;;  %3952 = vmatprep.mubr.f32.mxu1 %v8243_v7  ;;  %7482 = vmatpush1.bf16.msra.mxu1 %v7481_v51  ;;  %v3739_v51 = vld [vmem:[#allocation2 + $0x10] sm:$0xff]  ;;  %v7499_v18 = vpack.c.bf16 %v6688_v26, %v6686_v12  ;;  %v4207_v22 = vld [vmem:[#allocation2 + $0x1a] sm:$0xff] }
 0x5cb   : > { %v3716_v20 = vmax.f32 %v10026_v19, %v3679_v15  ;;  %v3681_v44 = vpop.f32.mrb[101].mxu1  ;;  %6653 = vmatprep.subr.msk.mxu1 %vm2948_vm2, %v3772_v1  ;;  %v7497_v1 = vpack.c.bf16 %v6683_v42, %v6681_v33  ;;  %v3740_v15 = vld [vmem:[#allocation2 + $0x18] sm:$0xff]  ;;  %v6746_v42 = vld [vmem:[%s11084_s5 + $0x2c8] sm:$0xff]  ;;  %v6727_v12 = vld [vmem:[%s11084_s5 + $0x2b0] sm:$0xf] }
 0x5cc   : > { %v3778_v48 = vld [vmem:[#allocation2 + $0x29] sm:$0xff]  ;;  %v6728_v33 = vld [vmem:[%s11084_s5 + $0x2b8] sm:$0xf] }
 0x5cd   : > { %3731 = vst.msk [vmem:[#allocation2 + $0x40] sm:$0xff] %vm3722_vm6, %v3716_v20  ;;  %6644 = vmatmul.mubr.msk.f32.gmra.mrb[122].mxu1 %vm3722_vm6, %v3778_v48  ;;  %v7501_v20 = vpack.c.bf16 %v6687_v35, %v6685_v10  ;;  %v6690_v44 = vld [vmem:[%s11084_s5 + $0x208] sm:$0xf] }
 0x5ce   : > { %v3684_v49 = vpop.f32.mrb[102].mxu1  ;;  %3958 = vmatprep.mubr.f32.mxu1 %v8243_v7  ;;  %6654 = vmatpush1.msk.msra.mxu1 %vm2948_vm2, %v3771_v53  ;;  %v3741_v53 = vld [vmem:[#allocation2 + $0x20] sm:$0xff]  ;;  %v6710_v48 = vld [vmem:[%s11084_s5 + $0x228] sm:$0xff] }
 0x5cf   : > { %v3717_v19 = vmax.f32 %v10028_v31, %v3684_v49  ;;  %v3686_v61 = vpop.f32.mrb[103].mxu1  ;;  %7484 = vmatprep.subr.bf16.mxu1 %v7483_v34  ;;  %v6708_v34 = vld [vmem:[%s11084_s5 + $0x218] sm:$0xff]  ;;  %v6689_v49 = vld [vmem:[%s11084_s5 + $0x200] sm:$0xf] }
 0x5d0   : > { %v3779_v63 = vld [vmem:[#allocation2 + $0x31] sm:$0xff]  ;;  %v3742_v61 = vld [vmem:[#allocation2 + $0x28] sm:$0xff] }
 0x5d1   : > { %3732 = vst.msk [vmem:[#allocation2 + $0x48] sm:$0xff] %vm3722_vm6, %v3717_v19  ;;  %6645 = vmatmul.mubr.msk.f32.gmra.mrb[124].mxu1 %vm3722_vm6, %v3779_v63  ;;  %v7503_v19 = vpack.c.bf16 %v6710_v48, %v6708_v34  ;;  %v3743_v63 = vld [vmem:[#allocation2 + $0x30] sm:$0xff]  ;;  %v6745_v34 = vld [vmem:[%s11084_s5 + $0x2c0] sm:$0xff] }
 0x5d2   : > { %v3689_v14 = vpop.f32.mrb[104].mxu1  ;;  %3964 = vmatprep.mubr.f32.mxu1 %v8243_v7  ;;  %v6747_v48 = vld [vmem:[%s11084_s5 + $0x2d0] sm:$0xff] }
 0x5d3   : > { %v3718_v0 = vmax.f32 %v10030_v58, %v3689_v14  ;;  %v3691_v32 = vpop.f32.mrb[105].mxu1  ;;  %v3744_v14 = vld [vmem:[#allocation2 + $0x38] sm:$0xff] }
 0x5d4   : > { %v3780_v2 = vld [vmem:[#allocation2 + $0x39] sm:$0xff] }
 0x5d5   : > { %3733 = vst.msk [vmem:[#allocation2 + $0x50] sm:$0xff] %vm3722_vm6, %v3718_v0  ;;  %6646 = vmatmul.mubr.msk.f32.gmra.mrb[126].mxu1 %vm3722_vm6, %v3780_v2  ;;  %v3745_v0 = vld [vmem:[#allocation2 + $0x40] sm:$0xff] }
 0x5d6   : > { %v3694_v45 = vpop.f32.mrb[106].mxu1  ;;  %3970 = vmatprep.mubr.f32.mxu1 %v8243_v7  ;;  %v4211_v10 = vld [vmem:[#allocation2 + $0x3a] sm:$0xff] }
 0x5d7   : > { %v3719_v31 = vmax.f32 %v10032_v60, %v3694_v45  ;;  %v3696_v47 = vpop.f32.mrb[107].mxu1 }
 0x5d8   : > { %v3781_v62 = vld [vmem:[#allocation2 + $0x41] sm:$0xff]  ;;  %v6707_v47 = vld [vmem:[%s11084_s5 + $0x210] sm:$0xff] }
 0x5d9   : > { %3734 = vst.msk [vmem:[#allocation2 + $0x58] sm:$0xff] %vm3722_vm6, %v3719_v31  ;;  %6647 = vmatmul.mubr.msk.f32.gmra.mrb[128].mxu1 %vm3722_vm6, %v3781_v62  ;;  %v3746_v32 = vld [vmem:[#allocation2 + $0x48] sm:$0xff]  ;;  %v6709_v62 = vld [vmem:[%s11084_s5 + $0x220] sm:$0xff] }
 0x5da   : > { %v3699_v16 = vpop.f32.mrb[108].mxu1  ;;  %3976 = vmatprep.mubr.f32.mxu1 %v8243_v7  ;;  %v4212_v35 = vld [vmem:[#allocation2 + $0x42] sm:$0xff] }
 0x5db   : > { %v3720_v58 = vmax.f32 %v10034_v23, %v3699_v16  ;;  %v3701_v3 = vpop.f32.mrb[109].mxu1 }
 0x5dc   : > { %v3782_v37 = vld [vmem:[#allocation2 + $0x49] sm:$0xff] }
 0x5dd   : > { %3735 = vst.msk [vmem:[#allocation2 + $0x60] sm:$0xff] %vm3722_vm6, %v3720_v58  ;;  %6648 = vmatmul.mubr.msk.f32.gmra.mrb[130].mxu1 %vm3722_vm6, %v3782_v37  ;;  %v3747_v2 = vld [vmem:[#allocation2 + $0x50] sm:$0xff]  ;;  %v6712_v58 = vld [vmem:[%s11084_s5 + $0x238] sm:$0xff]  ;;  %v6714_v3 = vld [vmem:[%s11084_s5 + $0x248] sm:$0xff]  ;;  %v7505_v37 = vpack.c.bf16 %v6709_v62, %v6707_v47 }
 0x5de   : > { %v3704_v4 = vpop.f32.mrb[110].mxu1  ;;  %3982 = vmatprep.mubr.f32.mxu1 %v8243_v7 }
 0x5df   : > { %v3721_v60 = vmax.f32 %v10036_v25, %v3704_v4  ;;  %v3706_v39 = vpop.f32.mrb[111].mxu1  ;;  %v6669_v25 = vld [vmem:[%s11084_s5 + $0x160] sm:$0xff]  ;;  %v7507_v4 = vpack.c.bf16 %v6714_v3, %v6712_v58  ;;  %v6755_v58 = vld [vmem:[%s11084_s5 + $0x310] sm:$0xff] }
 0x5e0   : > { %v3783_v55 = vld [vmem:[#allocation2 + $0x51] sm:$0xff]  ;;  %v7485_v6 = vpack.c.bf16 %v6671_v13, %v6669_v25  ;;  %v6713_v39 = vld [vmem:[%s11084_s5 + $0x240] sm:$0xff] }
 0x5e1   : > { %3736 = vst.msk [vmem:[#allocation2 + $0x68] sm:$0xff] %vm3722_vm6, %v3721_v60  ;;  %6649 = vmatmul.mubr.msk.f32.gmra.mrb[132].mxu1 %vm3722_vm6, %v3783_v55  ;;  %v3748_v45 = vld [vmem:[#allocation2 + $0x58] sm:$0xff]  ;;  %v6711_v60 = vld [vmem:[%s11084_s5 + $0x230] sm:$0xff]  ;;  %v4204_v55 = vld [vmem:[#allocation2 + $0x2] sm:$0xff] }
 0x5e2   : > { %3988 = vmatprep.mubr.f32.mxu1 %v8243_v7  ;;  %v7509_v25 = vpack.c.bf16 %v6713_v39, %v6711_v60  ;;  %v4467_v3 = vld [vmem:[#allocation2 + $0xb] sm:$0xff] }
 0x5e4   : > { %v3784_v23 = vld [vmem:[#allocation2 + $0x59] sm:$0xff] }
 0x5e5   : > { %6650 = vmatmul.mubr.msk.f32.gmra.mrb[134].mxu1 %vm3722_vm6, %v3784_v23  ;;  %v3749_v31 = vld [vmem:[#allocation2 + $0x60] sm:$0xff]  ;;  %v6716_v23 = vld [vmem:[%s11084_s5 + $0x258] sm:$0xff] }
 0x5e6   : > { %3994 = vmatprep.mubr.f32.mxu1 %v8243_v7 }
 0x5e8   : > { %v3785_v57 = vld [vmem:[#allocation2 + $0x61] sm:$0xff]  ;;  %v3786_v38 = vld [vmem:[#allocation2 + $0x69] sm:$0xf] }
 0x5e9   : > { %6651 = vmatmul.mubr.msk.f32.gmra.mrb[136].mxu1 %vm3722_vm6, %v3785_v57  ;;  %v3750_v16 = vld [vmem:[#allocation2 + $0x68] sm:$0xf] }
 0x5ea   : > { %4000 = vmatprep.mubr.f32.mxu1 %v8243_v7  ;;  %v6718_v57 = vld [vmem:[%s11084_s5 + $0x268] sm:$0xff] }
 0x5eb   : > { %v7511_v13 = vpack.c.bf16 %v6718_v57, %v6716_v23  ;;  %v6759_v23 = vld [vmem:[%s11084_s5 + $0x330] sm:$0xff] }
 0x5ec   : > { %v4468_v57 = vld [vmem:[#allocation2 + $0x13] sm:$0xff] }
 0x5ed   : > { %6652 = vmatmul.mubr.msk.f32.gmra.mrb[138].mxu1 %vm3722_vm6, %v3786_v38  ;;  %v6715_v38 = vld [vmem:[%s11084_s5 + $0x250] sm:$0xff] }
 0x5ee   : > { %4119 = vmatprep.mubr.f32.mxu1 %v8243_v7  ;;  %v7513_v17 = vpack.c.bf16 %v6717_v5, %v6715_v38 }
 0x5f1   : > { %6655 = vmatmul.mubr.msk.f32.vlgmr.msra.gmra.mrb[112].mxu1 %vm3722_vm6, %v3737_v46  ;;  %v6719_v46 = vld [vmem:[%s11084_s5 + $0x270] sm:$0xff] }
 0x5f2   : > { %4125 = vmatprep.mubr.f32.mxu1 %v8243_v7  ;;  %7486 = vmatpush1.bf16.msra.mxu1 %v7485_v6  ;;  %v6720_v6 = vld [vmem:[%s11084_s5 + $0x278] sm:$0xff]  ;;  %v7517_v54 = vpack.c.bf16 %v6721_v50, %v6719_v46  ;;  %v6766_v46 = vld [vmem:[%s11084_s5 + $0x368] sm:$0xf]  ;;  %v6765_v50 = vld [vmem:[%s11084_s5 + $0x360] sm:$0xf] }
 0x5f3   : > { %7488 = vmatprep.subr.bf16.mxu1 %v7487_v59  ;;  %v6722_v59 = vld [vmem:[%s11084_s5 + $0x288] sm:$0xff] }
 0x5f4   : > { %v7515_v43 = vpack.c.bf16 %v6722_v59, %v6720_v6  ;;  %v6763_v6 = vld [vmem:[%s11084_s5 + $0x350] sm:$0xff]  ;;  %v4469_v59 = vld [vmem:[#allocation2 + $0x1b] sm:$0xff] }
 0x5f5   : > { %6656 = vmatmul.mubr.msk.f32.gmra.mrb[114].mxu1 %vm3722_vm6, %v3738_v41  ;;  %v6723_v41 = vld [vmem:[%s11084_s5 + $0x290] sm:$0xff] }
 0x5f6   : > { %4131 = vmatprep.mubr.f32.mxu1 %v8243_v7  ;;  %7490 = vmatpush1.bf16.msra.mxu1 %v7489_v52  ;;  %v6724_v52 = vld [vmem:[%s11084_s5 + $0x298] sm:$0xff] }
 0x5f7   : > { %7492 = vmatprep.subr.bf16.mxu1 %v7491_v8  ;;  %v6726_v8 = vld [vmem:[%s11084_s5 + $0x2a8] sm:$0xff] }
 0x5f8   : > { %v7519_v40 = vpack.c.bf16 %v6726_v8, %v6724_v52  ;;  %v4472_v52 = vld [vmem:[#allocation2 + $0x33] sm:$0xff]  ;;  %v4473_v8 = vld [vmem:[#allocation2 + $0x3b] sm:$0xff] }
 0x5f9   : > { %6657 = vmatmul.mubr.msk.f32.gmra.mrb[116].mxu1 %vm3722_vm6, %v3739_v51  ;;  %v6748_v51 = vld [vmem:[%s11084_s5 + $0x2d8] sm:$0xff] }
 0x5fa   : > { %4137 = vmatprep.mubr.f32.mxu1 %v8243_v7  ;;  %7494 = vmatpush1.bf16.msra.mxu1 %v7493_v24  ;;  %v7521_v24 = vpack.c.bf16 %v6725_v21, %v6723_v41  ;;  %v7523_v26 = vpack.c.bf16 %v6748_v51, %v6746_v42  ;;  %v4476_v41 = vld [vmem:[#allocation2 + $0x53] sm:$0xff]  ;;  %v4477_v21 = vld [vmem:[#allocation2 + $0x5b] sm:$0xff] }
 0x5fb   : > { %7496 = vmatprep.subr.bf16.mxu1 %v7495_v29  ;;  %v4208_v29 = vld [vmem:[#allocation2 + $0x22] sm:$0xff]  ;;  %v4730_v42 = vld [vmem:[#allocation2 + $0x14] sm:$0xff] }
 0x5fc   : > { %v4731_v51 = vld [vmem:[#allocation2 + $0x1c] sm:$0xff] }
 0x5fd   : > { %6658 = vmatmul.mubr.msk.f32.gmra.mrb[118].mxu1 %vm3722_vm6, %v3740_v15  ;;  %v4213_v15 = vld [vmem:[#allocation2 + $0x4a] sm:$0xff] }
 0x5fe   : > { %4143 = vmatprep.mubr.f32.mxu1 %v8243_v7  ;;  %7498 = vmatpush1.bf16.msra.mxu1 %v7497_v1  ;;  %v4209_v1 = vld [vmem:[#allocation2 + $0x2a] sm:$0xff] }
 0x5ff   : > { %7500 = vmatprep.subr.bf16.mxu1 %v7499_v18  ;;  %v4210_v18 = vld [vmem:[#allocation2 + $0x32] sm:$0xff] }
 0x601   : > { %6659 = vmatmul.mubr.msk.f32.gmra.mrb[120].mxu1 %vm3722_vm6, %v3741_v53  ;;  %v4216_v53 = vld [vmem:[#allocation2 + $0x62] sm:$0xff] }
 0x602   : > { %4149 = vmatprep.mubr.f32.mxu1 %v8243_v7  ;;  %7502 = vmatpush1.bf16.msra.mxu1 %v7501_v20  ;;  %v4214_v20 = vld [vmem:[#allocation2 + $0x52] sm:$0xff] }
 0x603   : > { %6691 = vmatprep.subr.msk.mxu1 %vm2948_vm2, %v6690_v44  ;;  %v4215_v44 = vld [vmem:[#allocation2 + $0x5a] sm:$0xff] }
 0x605   : > { %6660 = vmatmul.mubr.msk.f32.gmra.mrb[122].mxu1 %vm3722_vm6, %v3742_v61  ;;  %v6752_v61 = vld [vmem:[%s11084_s5 + $0x2f8] sm:$0xff] }
 0x606   : > { %4155 = vmatprep.mubr.f32.mxu1 %v8243_v7  ;;  %6692 = vmatpush1.msk.msra.mxu1 %vm2948_vm2, %v6689_v49  ;;  %v4217_v49 = vld [vmem:[#allocation2 + $0x6a] sm:$0xf] }
 0x607   : > { %7504 = vmatprep.subr.bf16.mxu1 %v7503_v19  ;;  %v6750_v19 = vld [vmem:[%s11084_s5 + $0x2e8] sm:$0xff] }
 0x609   : > { %6661 = vmatmul.mubr.msk.f32.gmra.mrb[124].mxu1 %vm3722_vm6, %v3743_v63  ;;  %v7525_v63 = vpack.c.bf16 %v6747_v48, %v6745_v34  ;;  %v6807_v34 = vld [vmem:[%s11087_s8 + $0xa0] sm:$0xff]  ;;  %v6808_v48 = vld [vmem:[%s11087_s8 + $0xa8] sm:$0xff] }
 0x60a   : > { %4161 = vmatprep.mubr.f32.mxu1 %v8243_v7 }
 0x60d   : > { %6662 = vmatmul.mubr.msk.f32.gmra.mrb[126].mxu1 %vm3722_vm6, %v3744_v14  ;;  %v7527_v14 = vpack.c.bf16 %v6752_v61, %v6750_v19  ;;  %v7634_v19 = vpack.c.bf16 %v6808_v48, %v6807_v34  ;;  %v6810_v61 = vld [vmem:[%s11087_s8 + $0xb8] sm:$0xff] }
 0x60e   : > { %4167 = vmatprep.mubr.f32.mxu1 %v8243_v7 }
 0x60f   : > { %7635 = vmatpush1.bf16.msra.mxu0 %v7634_v19 }
 0x610   : > { %7636 = vmatprep.subr.bf16.mxu0 %v8245_v9 }
 0x611   : > { %6663 = vmatmul.mubr.msk.f32.gmra.mrb[128].mxu1 %vm3722_vm6, %v3745_v0  ;;  %v6749_v0 = vld [vmem:[%s11084_s5 + $0x2e0] sm:$0xff] }
 0x612   : > { %4173 = vmatprep.mubr.f32.mxu1 %v8243_v7 }
 0x615   : > { %6664 = vmatmul.mubr.msk.f32.gmra.mrb[130].mxu1 %vm3722_vm6, %v3746_v32  ;;  %v6751_v32 = vld [vmem:[%s11084_s5 + $0x2f0] sm:$0xff] }
 0x616   : > { %4179 = vmatprep.mubr.f32.mxu1 %v8243_v7  ;;  %v7529_v47 = vpack.c.bf16 %v6751_v32, %v6749_v0  ;;  %v6812_v0 = vld [vmem:[%s11087_s8 + $0xc8] sm:$0xff] }
 0x619   : > { %6665 = vmatmul.mubr.msk.f32.gmra.mrb[132].mxu1 %vm3722_vm6, %v3747_v2  ;;  %v4466_v2 = vld [vmem:[#allocation2 + $0x3] sm:$0xff] }
 0x61a   : > { %4185 = vmatprep.mubr.f32.mxu1 %v8243_v7 }
 0x61d   : > { %6666 = vmatmul.mubr.msk.f32.gmra.mrb[134].mxu1 %vm3722_vm6, %v3748_v45  ;;  %v6754_v45 = vld [vmem:[%s11084_s5 + $0x308] sm:$0xff] }
 0x61e   : > { %4191 = vmatprep.mubr.f32.mxu1 %v8243_v7 }
 0x621   : > { %6667 = vmatmul.mubr.msk.f32.gmra.mrb[136].mxu1 %vm3722_vm6, %v3749_v31  ;;  %v6756_v31 = vld [vmem:[%s11084_s5 + $0x318] sm:$0xff] }
 0x622   : > { %4197 = vmatprep.mubr.f32.mxu1 %v8243_v7  ;;  %v7531_v62 = vpack.c.bf16 %v6756_v31, %v6754_v45  ;;  %v6814_v45 = vld [vmem:[%s11087_s8 + $0xd8] sm:$0xff] }
 0x625   : > { %6668 = vmatmul.mubr.msk.f32.gmra.mrb[138].mxu1 %vm3722_vm6, %v3750_v16  ;;  %v6753_v16 = vld [vmem:[%s11084_s5 + $0x300] sm:$0xff] }
 0x626   : > { %4353 = vmatprep.mubr.f32.mxu1 %v8243_v7  ;;  %v7533_v60 = vpack.c.bf16 %v6755_v58, %v6753_v16  ;;  %v4990_v58 = vld [vmem:[%s11085_s6] sm:$0x3] }
 0x629   : > { %6693 = vmatmul.mubr.msk.f32.vlgmr.msra.gmra.mrb[112].mxu1 %vm3722_vm6, %v4204_v55  ;;  %v6757_v55 = vld [vmem:[%s11084_s5 + $0x320] sm:$0xff] }
 0x62a   : > { %4359 = vmatprep.mubr.f32.mxu1 %v8243_v7  ;;  %7506 = vmatpush1.bf16.msra.mxu1 %v7505_v37  ;;  %v6758_v37 = vld [vmem:[%s11084_s5 + $0x328] sm:$0xff]  ;;  %v7537_v38 = vpack.c.bf16 %v6759_v23, %v6757_v55  ;;  %v10517_v55 = vrot.slane %v4990_v58, %v2745_v30  ;;  %v6819_v23 = vld [vmem:[%s11087_s8 + $0x100] sm:$0xff]  ;;  %v6821_v30 = vld [vmem:[%s11087_s8 + $0x110] sm:$0xff] }
 0x62b   : > { %7508 = vmatprep.subr.bf16.mxu1 %v7507_v4  ;;  %v6760_v4 = vld [vmem:[%s11084_s5 + $0x338] sm:$0xff] }
 0x62c   : > { %v7535_v39 = vpack.c.bf16 %v6760_v4, %v6758_v37  ;;  %v6818_v37 = vld [vmem:[%s11087_s8 + $0xf8] sm:$0xff]  ;;  %v10513_v4 = vrot.slane %v4990_v58, %v2741_v28 }
 0x62d   : > { %6694 = vmatmul.mubr.msk.f32.gmra.mrb[114].mxu1 %vm3722_vm6, %v4205_v56  ;;  %v6761_v56 = vld [vmem:[%s11084_s5 + $0x340] sm:$0xff] }
 0x62e   : > { %4365 = vmatprep.mubr.f32.mxu1 %v8243_v7  ;;  %7510 = vmatpush1.bf16.msra.mxu1 %v7509_v25  ;;  %v6762_v25 = vld [vmem:[%s11084_s5 + $0x348] sm:$0xff] }
 0x62f   : > { %7512 = vmatprep.subr.bf16.mxu1 %v7511_v13  ;;  %v6764_v13 = vld [vmem:[%s11084_s5 + $0x358] sm:$0xff] }
 0x630   : > { %v7539_v5 = vpack.c.bf16 %v6764_v13, %v6762_v25 }
 0x631   : > { %6695 = vmatmul.mubr.msk.f32.gmra.mrb[116].mxu1 %vm3722_vm6, %v4206_v11  ;;  %v4471_v11 = vld [vmem:[#allocation2 + $0x2b] sm:$0xff] }
 0x632   : > { %4371 = vmatprep.mubr.f32.mxu1 %v8243_v7  ;;  %7514 = vmatpush1.bf16.msra.mxu1 %v7513_v17  ;;  %v7541_v17 = vpack.c.bf16 %v6763_v6, %v6761_v56 }
 0x633   : > { %7516 = vmatprep.subr.bf16.mxu1 %v7515_v43  ;;  %v4470_v43 = vld [vmem:[#allocation2 + $0x23] sm:$0xff] }
 0x635   : > { %6696 = vmatmul.mubr.msk.f32.gmra.mrb[118].mxu1 %vm3722_vm6, %v4207_v22  ;;  %v4478_v22 = vld [vmem:[#allocation2 + $0x63] sm:$0xff] }
 0x636   : > { %4377 = vmatprep.mubr.f32.mxu1 %v8243_v7  ;;  %7518 = vmatpush1.bf16.msra.mxu1 %v7517_v54  ;;  %v4474_v54 = vld [vmem:[#allocation2 + $0x43] sm:$0xff] }
 0x637   : > { %7520 = vmatprep.subr.bf16.mxu1 %v7519_v40  ;;  %v4475_v40 = vld [vmem:[#allocation2 + $0x4b] sm:$0xff] }
 0x639   : > { %6697 = vmatmul.mubr.msk.f32.gmra.mrb[120].mxu1 %vm3722_vm6, %v4208_v29  ;;  %v4728_v29 = vld [vmem:[#allocation2 + $0x4] sm:$0xff] }
 0x63a   : > { %4383 = vmatprep.mubr.f32.mxu1 %v8243_v7  ;;  %7522 = vmatpush1.bf16.msra.mxu1 %v7521_v24  ;;  %v4479_v24 = vld [vmem:[#allocation2 + $0x6b] sm:$0xf] }
 0x63b   : > { %6729 = vmatprep.subr.msk.mxu1 %vm2948_vm2, %v6728_v33  ;;  %v4729_v33 = vld [vmem:[#allocation2 + $0xc] sm:$0xff] }
 0x63d   : > { %6698 = vmatmul.mubr.msk.f32.gmra.mrb[122].mxu1 %vm3722_vm6, %v4209_v1  ;;  %v4734_v1 = vld [vmem:[#allocation2 + $0x34] sm:$0xff] }
 0x63e   : > { %4389 = vmatprep.mubr.f32.mxu1 %v8243_v7  ;;  %6730 = vmatpush1.msk.msra.mxu1 %vm2948_vm2, %v6727_v12  ;;  %v4732_v12 = vld [vmem:[#allocation2 + $0x24] sm:$0xff] }
 0x63f   : > { %7524 = vmatprep.subr.bf16.mxu1 %v7523_v26  ;;  %v4733_v26 = vld [vmem:[#allocation2 + $0x2c] sm:$0xff] }
 0x641   : > { %6699 = vmatmul.mubr.msk.f32.gmra.mrb[124].mxu1 %vm3722_vm6, %v4210_v18  ;;  %v4735_v18 = vld [vmem:[#allocation2 + $0x3c] sm:$0xff] }
 0x642   : > { %4395 = vmatprep.mubr.f32.mxu1 %v8243_v7 }
 0x645   : > { %6700 = vmatmul.mubr.msk.f32.gmra.mrb[126].mxu1 %vm3722_vm6, %v4211_v10  ;;  %v4736_v10 = vld [vmem:[#allocation2 + $0x44] sm:$0xff] }
 0x646   : > { %4401 = vmatprep.mubr.f32.mxu1 %v8243_v7 }
 0x649   : > { %6701 = vmatmul.mubr.msk.f32.gmra.mrb[128].mxu1 %vm3722_vm6, %v4212_v35  ;;  %v4737_v35 = vld [vmem:[#allocation2 + $0x4c] sm:$0xff] }
 0x64a   : > { %4407 = vmatprep.mubr.f32.mxu1 %v8243_v7 }
 0x64d   : > { %6702 = vmatmul.mubr.msk.f32.gmra.mrb[130].mxu1 %vm3722_vm6, %v4213_v15  ;;  %v4738_v15 = vld [vmem:[#allocation2 + $0x54] sm:$0xff] }
 0x64e   : > { %4413 = vmatprep.mubr.f32.mxu1 %v8243_v7 }
 0x651   : > { %6703 = vmatmul.mubr.msk.f32.gmra.mrb[132].mxu1 %vm3722_vm6, %v4214_v20  ;;  %v4739_v20 = vld [vmem:[#allocation2 + $0x5c] sm:$0xff] }
 0x652   : > { %4419 = vmatprep.mubr.f32.mxu1 %v8243_v7 }
 0x655   : > { %6704 = vmatmul.mubr.msk.f32.gmra.mrb[134].mxu1 %vm3722_vm6, %v4215_v44  ;;  %v4740_v44 = vld [vmem:[#allocation2 + $0x64] sm:$0xff] }
 0x656   : > { %4425 = vmatprep.mubr.f32.mxu1 %v8243_v7 }
 0x659   : > { %6705 = vmatmul.mubr.msk.f32.gmra.mrb[136].mxu1 %vm3722_vm6, %v4216_v53  ;;  %v4741_v53 = vld [vmem:[#allocation2 + $0x6c] sm:$0xf] }
 0x65a   : > { %4431 = vmatprep.mubr.f32.mxu1 %v8243_v7 }
 0x65d   : > { %6706 = vmatmul.mubr.msk.f32.gmra.mrb[138].mxu1 %vm3722_vm6, %v4217_v49  ;;  %v6809_v49 = vld [vmem:[%s11087_s8 + $0xb0] sm:$0xff] }
 0x65e   : > { %4615 = vmatprep.mubr.f32.mxu1 %v8243_v7 }
 0x661   : > { %6731 = vmatmul.mubr.msk.f32.vlgmr.msra.gmra.mrb[112].mxu1 %vm3722_vm6, %v4466_v2  ;;  %v6813_v2 = vld [vmem:[%s11087_s8 + $0xd0] sm:$0xff] }
 0x662   : > { %4621 = vmatprep.mubr.f32.mxu1 %v8243_v7  ;;  %7526 = vmatpush1.bf16.msra.mxu1 %v7525_v63  ;;  %v7637_v63 = vpack.c.bf16 %v6810_v61, %v6809_v49  ;;  %v7643_v31 = vpack.c.bf16 %v6814_v45, %v6813_v2 }
 0x663   : > { %7528 = vmatprep.subr.bf16.mxu1 %v7527_v14  ;;  %v6811_v14 = vld [vmem:[%s11087_s8 + $0xc0] sm:$0xff] }
 0x664   : > { %7638 = vmatpush1.bf16.msra.mxu0 %v7637_v63  ;;  %v7640_v32 = vpack.c.bf16 %v6812_v0, %v6811_v14 }
 0x665   : > { %6732 = vmatmul.mubr.msk.f32.gmra.mrb[114].mxu1 %vm3722_vm6, %v4467_v3  ;;  %7639 = vmatprep.subr.bf16.mxu0 %v8245_v9  ;;  %v6817_v3 = vld [vmem:[%s11087_s8 + $0xf0] sm:$0xff] }
 0x666   : > { %4627 = vmatprep.mubr.f32.mxu1 %v8243_v7  ;;  %7530 = vmatpush1.bf16.msra.mxu1 %v7529_v47  ;;  %v6815_v47 = vld [vmem:[%s11087_s8 + $0xe0] sm:$0xff] }
 0x667   : > { %7532 = vmatprep.subr.bf16.mxu1 %v7531_v62  ;;  %v6816_v62 = vld [vmem:[%s11087_s8 + $0xe8] sm:$0xff] }
 0x668   : > { %7641 = vmatpush1.bf16.msra.mxu0 %v7640_v32  ;;  %v7646_v16 = vpack.c.bf16 %v6816_v62, %v6815_v47 }
 0x669   : > { %6733 = vmatmul.mubr.msk.f32.gmra.mrb[116].mxu1 %vm3722_vm6, %v4468_v57  ;;  %7642 = vmatprep.subr.bf16.mxu0 %v8245_v9  ;;  %v6820_v57 = vld [vmem:[%s11087_s8 + $0x108] sm:$0xff] }
 0x66a   : > { %4633 = vmatprep.mubr.f32.mxu1 %v8243_v7  ;;  %7534 = vmatpush1.bf16.msra.mxu1 %v7533_v60  ;;  %v7649_v60 = vpack.c.bf16 %v6818_v37, %v6817_v3  ;;  %v7652_v13 = vpack.c.bf16 %v6820_v57, %v6819_v23 }
 0x66b   : > { %7536 = vmatprep.subr.bf16.mxu1 %v7535_v39 }
 0x66c   : > { %7644 = vmatpush1.bf16.msra.mxu0 %v7643_v31 }
 0x66d   : > { %6734 = vmatmul.mubr.msk.f32.gmra.mrb[118].mxu1 %vm3722_vm6, %v4469_v59  ;;  %7645 = vmatprep.subr.bf16.mxu0 %v8245_v9 }
 0x66e   : > { %4639 = vmatprep.mubr.f32.mxu1 %v8243_v7  ;;  %7538 = vmatpush1.bf16.msra.mxu1 %v7537_v38 }
 0x66f   : > { %7540 = vmatprep.subr.bf16.mxu1 %v7539_v5  ;;  %v6822_v5 = vld [vmem:[%s11087_s8 + $0x118] sm:$0xff] }
 0x670   : > { %7647 = vmatpush1.bf16.msra.mxu0 %v7646_v16 }
 0x671   : > { %6735 = vmatmul.mubr.msk.f32.gmra.mrb[120].mxu1 %vm3722_vm6, %v4470_v43  ;;  %7648 = vmatprep.subr.bf16.mxu0 %v8245_v9 }
 0x672   : > { %4645 = vmatprep.mubr.f32.mxu1 %v8243_v7  ;;  %7542 = vmatpush1.bf16.msra.mxu1 %v7541_v17 }
 0x673   : > { %6767 = vmatprep.subr.msk.mxu1 %vm2948_vm2, %v6766_v46  ;;  %v7655_v46 = vpack.c.bf16 %v6822_v5, %v6821_v30 }
 0x674   : > { %7650 = vmatpush1.bf16.msra.mxu0 %v7649_v60 }
 0x675   : > { %6736 = vmatmul.mubr.msk.f32.gmra.mrb[122].mxu1 %vm3722_vm6, %v4471_v11  ;;  %7651 = vmatprep.subr.bf16.mxu0 %v8245_v9 }
 0x676   : > { %4651 = vmatprep.mubr.f32.mxu1 %v8243_v7  ;;  %6768 = vmatpush1.msk.msra.mxu1 %vm2948_vm2, %v6765_v50 }
 0x678   : > { %7653 = vmatpush1.bf16.msra.mxu0 %v7652_v13 }
 0x679   : > { %6737 = vmatmul.mubr.msk.f32.gmra.mrb[124].mxu1 %vm3722_vm6, %v4472_v52  ;;  %7654 = vmatprep.subr.bf16.mxu0 %v8245_v9 }
 0x67a   : > { %4657 = vmatprep.mubr.f32.mxu1 %v8243_v7 }
 0x67c   : > { %7656 = vmatpush1.bf16.msra.mxu0 %v7655_v46 }
 0x67d   : > { %6738 = vmatmul.mubr.msk.f32.gmra.mrb[126].mxu1 %vm3722_vm6, %v4473_v8  ;;  %7657 = vmatprep.subr.bf16.mxu0 %v8245_v9 }
 0x67e   : > { %4663 = vmatprep.mubr.f32.mxu1 %v8243_v7 }
 0x681   : > { %6739 = vmatmul.mubr.msk.f32.gmra.mrb[128].mxu1 %vm3722_vm6, %v4474_v54 }
 0x682   : > { %4669 = vmatprep.mubr.f32.mxu1 %v8243_v7 }
 0x685   : > { %6740 = vmatmul.mubr.msk.f32.gmra.mrb[130].mxu1 %vm3722_vm6, %v4475_v40 }
 0x686   : > { %4675 = vmatprep.mubr.f32.mxu1 %v8243_v7 }
 0x689   : > { %6741 = vmatmul.mubr.msk.f32.gmra.mrb[132].mxu1 %vm3722_vm6, %v4476_v41 }
 0x68a   : > { %4681 = vmatprep.mubr.f32.mxu1 %v8243_v7 }
 0x68d   : > { %6742 = vmatmul.mubr.msk.f32.gmra.mrb[134].mxu1 %vm3722_vm6, %v4477_v21 }
 0x68e   : > { %4687 = vmatprep.mubr.f32.mxu1 %v8243_v7 }
 0x691   : > { %6743 = vmatmul.mubr.msk.f32.gmra.mrb[136].mxu1 %vm3722_vm6, %v4478_v22 }
 0x692   : > { %4693 = vmatprep.mubr.f32.mxu1 %v8243_v7 }
 0x695   : > { %6744 = vmatmul.mubr.msk.f32.gmra.mrb[138].mxu1 %vm3722_vm6, %v4479_v24 }
 0x696   : > { %4877 = vmatprep.mubr.f32.mxu1 %v8243_v7 }
 0x699   : > { %6769 = vmatmul.mubr.msk.f32.vlgmr.msra.gmra.mrb[112].mxu1 %vm3722_vm6, %v4728_v29 }
 0x69a   : > { %4883 = vmatprep.mubr.f32.mxu1 %v8243_v7 }
 0x69d   : > { %6770 = vmatmul.mubr.msk.f32.gmra.mrb[114].mxu1 %vm3722_vm6, %v4729_v33 }
 0x69e   : > { %4889 = vmatprep.mubr.f32.mxu1 %v8243_v7 }
 0x6a1   : > { %6771 = vmatmul.mubr.msk.f32.gmra.mrb[116].mxu1 %vm3722_vm6, %v4730_v42 }
 0x6a2   : > { %4895 = vmatprep.mubr.f32.mxu1 %v8243_v7 }
 0x6a5   : > { %6772 = vmatmul.mubr.msk.f32.gmra.mrb[118].mxu1 %vm3722_vm6, %v4731_v51 }
 0x6a6   : > { %4901 = vmatprep.mubr.f32.mxu1 %v8243_v7 }
 0x6a9   : > { %6773 = vmatmul.mubr.msk.f32.gmra.mrb[120].mxu1 %vm3722_vm6, %v4732_v12 }
 0x6aa   : > { %4907 = vmatprep.mubr.f32.mxu1 %v8243_v7 }
 0x6ad   : > { %6774 = vmatmul.mubr.msk.f32.gmra.mrb[122].mxu1 %vm3722_vm6, %v4733_v26 }
 0x6ae   : > { %4913 = vmatprep.mubr.f32.mxu1 %v8243_v7 }
 0x6b1   : > { %6775 = vmatmul.mubr.msk.f32.gmra.mrb[124].mxu1 %vm3722_vm6, %v4734_v1 }
 0x6b2   : > { %4919 = vmatprep.mubr.f32.mxu1 %v8243_v7 }
 0x6b5   : > { %6776 = vmatmul.mubr.msk.f32.gmra.mrb[126].mxu1 %vm3722_vm6, %v4735_v18 }
 0x6b6   : > { %4925 = vmatprep.mubr.f32.mxu1 %v8243_v7 }
 0x6b9   : > { %6777 = vmatmul.mubr.msk.f32.gmra.mrb[128].mxu1 %vm3722_vm6, %v4736_v10 }
 0x6ba   : > { %4931 = vmatprep.mubr.f32.mxu1 %v8243_v7 }
 0x6bd   : > { %6778 = vmatmul.mubr.msk.f32.gmra.mrb[130].mxu1 %vm3722_vm6, %v4737_v35 }
 0x6be   : > { %4937 = vmatprep.mubr.f32.mxu1 %v8243_v7 }
 0x6c1   : > { %6779 = vmatmul.mubr.msk.f32.gmra.mrb[132].mxu1 %vm3722_vm6, %v4738_v15 }
 0x6c2   : > { %4943 = vmatprep.mubr.f32.mxu1 %v8243_v7 }
 0x6c5   : > { %6780 = vmatmul.mubr.msk.f32.gmra.mrb[134].mxu1 %vm3722_vm6, %v4739_v20 }
 0x6c6   : > { %4949 = vmatprep.mubr.f32.mxu1 %v8243_v7 }
 0x6c9   : > { %6781 = vmatmul.mubr.msk.f32.gmra.mrb[136].mxu1 %vm3722_vm6, %v4740_v44 }
 0x6ca   : > { %4955 = vmatprep.mubr.f32.mxu1 %v8243_v7 }
 0x6cd   : > { %6782 = vmatmul.mubr.msk.f32.gmra.mrb[138].mxu1 %vm3722_vm6, %v4741_v53 }
 0x6ce   : > { %5149 = vmatprep.mubr.f32.mxu1 %v8243_v7 }
 0x76c   : > { %v4879_v39 = vpop.f32.mrb[112].mxu1 }
 0x76d   : > { %v4881_v25 = vpop.f32.mrb[113].mxu1  ;;  %v5002_v28 = vadd.f32 %v10513_v4, %v4879_v39 }
 0x76e   : > { %v5003_v38 = vadd.f32 %v10517_v55, %v4881_v25 }
 0x76f   : > { %v5030_v17 = vmax.f32 %v5002_v28, 0.0 }
 0x770   : > { %v4885_v27 = vpop.f32.mrb[114].mxu1  ;;  %v5031_v50 = vmax.f32 %v5003_v38, 0.0 }
 0x771   : > { %v5004_v56 = vadd.f32 %v10513_v4, %v4885_v27  ;;  %v4887_v6 = vpop.f32.mrb[115].mxu1 }
 0x772   : > { %v5005_v59 = vadd.f32 %v10517_v55, %v4887_v6 }
 0x773   : > { %v5032_v43 = vmax.f32 %v5004_v56, 0.0 }
 0x774   : > { %v5033_v11 = vmax.f32 %v5005_v59, 0.0  ;;  %v4891_v52 = vpop.f32.mrb[116].mxu1 }
 0x775   : > { %v10538_v8 = vpack.c.bf16 %v5032_v43, %v5030_v17  ;;  %v4893_v54 = vpop.f32.mrb[117].mxu1  ;;  %v5006_v41 = vadd.f32 %v10513_v4, %v4891_v52 }
 0x776   : > { %v10540_v40 = vpack.c.bf16 %v5033_v11, %v5031_v50  ;;  %v5007_v21 = vadd.f32 %v10517_v55, %v4893_v54 }
 0x777   : > { %v5034_v42 = vmax.f32 %v5006_v41, 0.0 }
 0x778   : > { %v4897_v22 = vpop.f32.mrb[118].mxu1  ;;  %7544 = vmatprep.subr.bf16.mxu1 %v10540_v40  ;;  %v5035_v12 = vmax.f32 %v5007_v21, 0.0 }
 0x779   : > { %v5008_v24 = vadd.f32 %v10513_v4, %v4897_v22  ;;  %v4899_v29 = vpop.f32.mrb[119].mxu1  ;;  %7546 = vmatpush1.bf16.msra.mxu1 %v10538_v8 }
 0x77a   : > { %v5009_v33 = vadd.f32 %v10517_v55, %v4899_v29 }
 0x77b   : > { %v5036_v51 = vmax.f32 %v5008_v24, 0.0 }
 0x77c   : > { %v5037_v26 = vmax.f32 %v5009_v33, 0.0  ;;  %v4903_v1 = vpop.f32.mrb[120].mxu1 }
 0x77d   : > { %v10549_v18 = vpack.c.bf16 %v5036_v51, %v5034_v42  ;;  %v4905_v10 = vpop.f32.mrb[121].mxu1  ;;  %v5010_v15 = vadd.f32 %v10513_v4, %v4903_v1 }
 0x77e   : > { %v10551_v35 = vpack.c.bf16 %v5037_v26, %v5035_v12  ;;  %v5011_v20 = vadd.f32 %v10517_v55, %v4905_v10 }
 0x77f   : > { %v5038_v49 = vmax.f32 %v5010_v15, 0.0 }
 0x780   : > { %v4909_v44 = vpop.f32.mrb[122].mxu1  ;;  %7548 = vmatprep.subr.bf16.mxu1 %v10551_v35  ;;  %v5039_v61 = vmax.f32 %v5011_v20, 0.0 }
 0x781   : > { %v5012_v53 = vadd.f32 %v10513_v4, %v4909_v44  ;;  %v4911_v34 = vpop.f32.mrb[123].mxu1  ;;  %7550 = vmatpush1.bf16.msra.mxu1 %v10549_v18 }
 0x782   : > { %v5013_v48 = vadd.f32 %v10517_v55, %v4911_v34 }
 0x783   : > { %v5040_v19 = vmax.f32 %v5012_v53, 0.0 }
 0x784   : > { %v5041_v63 = vmax.f32 %v5013_v48, 0.0  ;;  %v4915_v14 = vpop.f32.mrb[124].mxu1 }
 0x785   : > { %v10559_v0 = vpack.c.bf16 %v5040_v19, %v5038_v49  ;;  %v4917_v32 = vpop.f32.mrb[125].mxu1  ;;  %v5014_v45 = vadd.f32 %v10513_v4, %v4915_v14 }
 0x786   : > { %v10561_v2 = vpack.c.bf16 %v5041_v63, %v5039_v61  ;;  %v5015_v31 = vadd.f32 %v10517_v55, %v4917_v32 }
 0x787   : > { %v5042_v3 = vmax.f32 %v5014_v45, 0.0 }
 0x788   : > { %v4921_v47 = vpop.f32.mrb[126].mxu1  ;;  %7552 = vmatprep.subr.bf16.mxu1 %v10561_v2  ;;  %v5043_v60 = vmax.f32 %v5015_v31, 0.0 }
 0x789   : > { %v5016_v62 = vadd.f32 %v10513_v4, %v4921_v47  ;;  %v4923_v16 = vpop.f32.mrb[127].mxu1  ;;  %7554 = vmatpush1.bf16.msra.mxu1 %v10559_v0  ;;  %v5308_v47 = vld [vmem:[%s11087_s8 + $0x10] sm:$0xff] }
 0x78a   : > { %v5017_v58 = vadd.f32 %v10517_v55, %v4923_v16 }
 0x78b   : > { %v5044_v37 = vmax.f32 %v5016_v62, 0.0  ;;  %v5309_v62 = vld [vmem:[%s11087_s8 + $0x18] sm:$0xff] }
 0x78c   : > { %v5045_v39 = vmax.f32 %v5017_v58, 0.0  ;;  %v4927_v23 = vpop.f32.mrb[128].mxu1  ;;  %v7607_v16 = vpack.c.bf16 %v5309_v62, %v5308_v47  ;;  %v5310_v58 = vld [vmem:[%s11087_s8 + $0x20] sm:$0xff] }
 0x78d   : > { %v10569_v57 = vpack.c.bf16 %v5044_v37, %v5042_v3  ;;  %v4929_v25 = vpop.f32.mrb[129].mxu1  ;;  %v5018_v13 = vadd.f32 %v10513_v4, %v4927_v23  ;;  %v5311_v3 = vld [vmem:[%s11087_s8 + $0x28] sm:$0xff]  ;;  %v6792_v37 = vld [vmem:[%s11086_s7 + $0x38] sm:$0xff] }
 0x78e   : > { %v10571_v28 = vpack.c.bf16 %v5045_v39, %v5043_v60  ;;  %v5019_v38 = vadd.f32 %v10517_v55, %v4929_v25  ;;  %v7610_v60 = vpack.c.bf16 %v5311_v3, %v5310_v58  ;;  %v6793_v39 = vld [vmem:[%s11086_s7 + $0x40] sm:$0xff]  ;;  %v6794_v23 = vld [vmem:[%s11086_s7 + $0x48] sm:$0xff]  ;;  %v5313_v25 = vld [vmem:[%s11087_s8 + $0x38] sm:$0xff] }
 0x78f   : > { %v5046_v6 = vmax.f32 %v5018_v13, 0.0  ;;  %v5552_v3 = vld [vmem:[%s11088_s9 + $0x20] sm:$0xff] }
 0x790   : > { %v4933_v27 = vpop.f32.mrb[130].mxu1  ;;  %7556 = vmatprep.subr.bf16.mxu1 %v10571_v28  ;;  %v5047_v17 = vmax.f32 %v5019_v38, 0.0  ;;  %v5315_v38 = vld [vmem:[%s11087_s8 + $0x48] sm:$0xff] }
 0x791   : > { %v5020_v30 = vadd.f32 %v10513_v4, %v4933_v27  ;;  %v4935_v5 = vpop.f32.mrb[131].mxu1  ;;  %7558 = vmatpush1.bf16.msra.mxu1 %v10569_v57  ;;  %v6823_v27 = vld [vmem:[%s11087_s8 + $0x120] sm:$0xff] }
 0x792   : > { %v5021_v56 = vadd.f32 %v10517_v55, %v4935_v5 }
 0x793   : > { %v5048_v59 = vmax.f32 %v5020_v30, 0.0  ;;  %v6824_v30 = vld [vmem:[%s11087_s8 + $0x128] sm:$0xff] }
 0x794   : > { %v5049_v43 = vmax.f32 %v5021_v56, 0.0  ;;  %v4939_v46 = vpop.f32.mrb[132].mxu1  ;;  %v7658_v5 = vpack.c.bf16 %v6824_v30, %v6823_v27  ;;  %v5554_v27 = vld [vmem:[%s11088_s9 + $0x30] sm:$0xff]  ;;  %v5555_v30 = vld [vmem:[%s11088_s9 + $0x38] sm:$0xff] }
 0x795   : > { %v7561_v50 = vpack.c.bf16 %v5048_v59, %v5046_v6  ;;  %v4941_v11 = vpop.f32.mrb[133].mxu1  ;;  %v5022_v54 = vadd.f32 %v10513_v4, %v4939_v46  ;;  %v5316_v6 = vld [vmem:[%s11087_s8 + $0x50] sm:$0xff]  ;;  %v5317_v59 = vld [vmem:[%s11087_s8 + $0x58] sm:$0xff]  ;;  %v5319_v46 = vld [vmem:[%s11087_s8 + $0x68] sm:$0xff] }
 0x796   : > { %v7559_v52 = vpack.c.bf16 %v5049_v43, %v5047_v17  ;;  %v5023_v41 = vadd.f32 %v10517_v55, %v4941_v11  ;;  %7659 = vmatpush1.bf16.msra.mxu0 %v7658_v5  ;;  %v7619_v17 = vpack.c.bf16 %v5317_v59, %v5316_v6  ;;  %v5318_v43 = vld [vmem:[%s11087_s8 + $0x60] sm:$0xff]  ;;  %v5320_v11 = vld [vmem:[%s11087_s8 + $0x70] sm:$0xff] }
 0x797   : > { %v5050_v33 = vmax.f32 %v5022_v54, 0.0  ;;  %7660 = vmatprep.subr.bf16.mxu0 %v8245_v9  ;;  %v6825_v54 = vld [vmem:[%s11087_s8 + $0x130] sm:$0xff]  ;;  %v6838_v5 = vld [vmem:[%s11088_s9 + $0x80] sm:$0xff] }
 0x798   : > { %v4945_v21 = vpop.f32.mrb[134].mxu1  ;;  %7560 = vmatprep.subr.bf16.mxu1 %v7559_v52  ;;  %v5051_v51 = vmax.f32 %v5023_v41, 0.0  ;;  %v6826_v41 = vld [vmem:[%s11087_s8 + $0x138] sm:$0xff] }
 0x799   : > { %v5024_v22 = vadd.f32 %v10513_v4, %v4945_v21  ;;  %v4947_v24 = vpop.f32.mrb[135].mxu1  ;;  %7562 = vmatpush1.bf16.msra.mxu1 %v7561_v50  ;;  %v7661_v21 = vpack.c.bf16 %v6826_v41, %v6825_v54 }
 0x79a   : > { %v5025_v29 = vadd.f32 %v10517_v55, %v4947_v24  ;;  %v5322_v24 = vld [vmem:[%s11087_s8 + $0x80] sm:$0xff] }
 0x79b   : > { %v5052_v42 = vmax.f32 %v5024_v22, 0.0  ;;  %7662 = vmatpush1.bf16.msra.mxu0 %v7661_v21 }
 0x79c   : > { %v5053_v12 = vmax.f32 %v5025_v29, 0.0  ;;  %v4951_v26 = vpop.f32.mrb[136].mxu1  ;;  %v5323_v29 = vld [vmem:[%s11087_s8 + $0x88] sm:$0xff]  ;;  %7678 = vmatprep.subr.bf16.mxu0 %v8245_v9 }
 0x79d   : > { %v7565_v1 = vpack.c.bf16 %v5052_v42, %v5050_v33  ;;  %v4953_v10 = vpop.f32.mrb[137].mxu1  ;;  %v5026_v20 = vadd.f32 %v10513_v4, %v4951_v26  ;;  %v7628_v33 = vpack.c.bf16 %v5323_v29, %v5322_v24  ;;  %v5324_v42 = vld [vmem:[%s11087_s8 + $0x90] sm:$0xff] }
 0x79e   : > { %v7563_v15 = vpack.c.bf16 %v5053_v12, %v5051_v51  ;;  %v5027_v44 = vadd.f32 %v10517_v55, %v4953_v10  ;;  %v5325_v51 = vld [vmem:[%s11087_s8 + $0x98] sm:$0xff]  ;;  %v6840_v29 = vld [vmem:[%s11088_s9 + $0x90] sm:$0xff] }
 0x79f   : > { %v5054_v19 = vmax.f32 %v5026_v20, 0.0  ;;  %v7631_v12 = vpack.c.bf16 %v5325_v51, %v5324_v42  ;;  %v6855_v51 = vld [vmem:[%s11088_s9 + $0xf0] sm:$0xff] }
 0x7a0   : > { %v4957_v53 = vpop.f32.mrb[138].mxu1  ;;  %7564 = vmatprep.subr.bf16.mxu1 %v7563_v15  ;;  %v5055_v63 = vmax.f32 %v5027_v44, 0.0 }
 0x7a1   : > { %v5028_v34 = vadd.f32 %v10513_v4, %v4957_v53  ;;  %v4959_v48 = vpop.f32.mrb[139].mxu1  ;;  %7566 = vmatpush1.bf16.msra.mxu1 %v7565_v1  ;;  %v5058_v4 = vld [vmem:[%s11086_s7] sm:$0xff] }
 0x7a2   : > { %v5029_v49 = vadd.f32 %v10517_v55, %v4959_v48  ;;  %v5059_v55 = vld [vmem:[%s11086_s7 + $0x8] sm:$0xff] }
 0x7a3   : > { %v5056_v61 = vmax.f32 %v5028_v34, 0.0 }
 0x7a4   : > { %v5057_v14 = vmax.f32 %v5029_v49, 0.0 }
 0x7a5   : > { %v7570_v32 = vpack.c.bf16 %v5056_v61, %v5054_v19  ;;  %v5548_v19 = vld [vmem:[%s11088_s9] sm:$0xff]  ;;  %v5549_v61 = vld [vmem:[%s11088_s9 + $0x8] sm:$0xff] }
 0x7a6   : > { %v7567_v45 = vpack.c.bf16 %v5057_v14, %v5055_v63  ;;  %v6832_v63 = vld [vmem:[%s11088_s9 + $0x50] sm:$0xff]  ;;  %v6833_v14 = vld [vmem:[%s11088_s9 + $0x58] sm:$0xff] }
 0x7a8   : > { %7569 = vmatprep.subr.msk.bf16.mxu1 %vm9398_vm4, %v7567_v45 }
 0x7a9   : > { %7572 = vmatpush1.bf16.msk.msra.mxu1 %vm9398_vm4, %v7570_v32 }
 0x7aa   : > { %7574 = vmatprep.subr.bf16.mxu1 %v10540_v40  ;;  %v5060_v40 = vld [vmem:[%s11086_s7 + $0x10] sm:$0xff] }
 0x7ac   : > { %6785 = vmatmul.mubr.msk.f32.vlgmr.msra.gmra.mrb[140].mxu1 %vm5063_vm7, %v5058_v4 }
 0x7ad   : > { %7576 = vmatpush1.bf16.msra.mxu1 %v10538_v8  ;;  %5155 = vmatprep.mubr.f32.mxu1 %v8243_v7  ;;  %v5061_v8 = vld [vmem:[%s11086_s7 + $0x18] sm:$0xff] }
 0x7ae   : > { %7578 = vmatprep.subr.bf16.mxu1 %v10551_v35  ;;  %v5306_v35 = vld [vmem:[%s11087_s8] sm:$0xff] }
 0x7b0   : > { %6786 = vmatmul.mubr.msk.f32.gmra.mrb[142].mxu1 %vm5063_vm7, %v5059_v55 }
 0x7b1   : > { %7580 = vmatpush1.bf16.msra.mxu1 %v10549_v18  ;;  %5161 = vmatprep.mubr.f32.mxu1 %v8243_v7  ;;  %v5062_v18 = vld [vmem:[%s11086_s7 + $0x20] sm:$0xff] }
 0x7b2   : > { %7582 = vmatprep.subr.bf16.mxu1 %v10561_v2  ;;  %v6790_v2 = vld [vmem:[%s11086_s7 + $0x28] sm:$0xff] }
 0x7b4   : > { %6787 = vmatmul.mubr.msk.f32.gmra.mrb[144].mxu1 %vm5063_vm7, %v5060_v40  ;;  %v7679_v40 = vpack.c.bf16 %v5549_v61, %v5548_v19 }
 0x7b5   : > { %7584 = vmatpush1.bf16.msra.mxu1 %v10559_v0  ;;  %5167 = vmatprep.mubr.f32.mxu1 %v8243_v7  ;;  %v5307_v0 = vld [vmem:[%s11087_s8 + $0x8] sm:$0xff] }
 0x7b6   : > { %7586 = vmatprep.subr.bf16.mxu1 %v10571_v28  ;;  %v7604_v31 = vpack.c.bf16 %v5307_v0, %v5306_v35  ;;  %v5314_v28 = vld [vmem:[%s11087_s8 + $0x40] sm:$0xff]  ;;  %v5551_v35 = vld [vmem:[%s11088_s9 + $0x18] sm:$0xff] }
 0x7b7   : > { %v7616_v56 = vpack.c.bf16 %v5315_v38, %v5314_v28  ;;  %v6834_v0 = vld [vmem:[%s11088_s9 + $0x60] sm:$0xff] }
 0x7b8   : > { %6788 = vmatmul.mubr.msk.f32.gmra.mrb[146].mxu1 %vm5063_vm7, %v5061_v8  ;;  %v7664_v8 = vpack.c.bf16 %v6833_v14, %v6832_v63 }
 0x7b9   : > { %7588 = vmatpush1.bf16.msra.mxu1 %v10569_v57  ;;  %5173 = vmatprep.mubr.f32.mxu1 %v8243_v7  ;;  %v5312_v57 = vld [vmem:[%s11087_s8 + $0x30] sm:$0xff] }
 0x7ba   : > { %7590 = vmatprep.subr.bf16.mxu1 %v7559_v52  ;;  %v7613_v13 = vpack.c.bf16 %v5313_v25, %v5312_v57  ;;  %v5321_v52 = vld [vmem:[%s11087_s8 + $0x78] sm:$0xff] }
 0x7bb   : > { %v7625_v22 = vpack.c.bf16 %v5321_v52, %v5320_v11  ;;  %v5556_v11 = vld [vmem:[%s11088_s9 + $0x40] sm:$0xff]  ;;  %v5557_v52 = vld [vmem:[%s11088_s9 + $0x48] sm:$0xff] }
 0x7bc   : > { %6789 = vmatmul.mubr.msk.f32.gmra.mrb[148].mxu1 %vm5063_vm7, %v5062_v18  ;;  %v5550_v18 = vld [vmem:[%s11088_s9 + $0x10] sm:$0xff]  ;;  %v7691_v24 = vpack.c.bf16 %v5557_v52, %v5556_v11  ;;  %v6852_v11 = vld [vmem:[%s11088_s9 + $0xe0] sm:$0xff]  ;;  %v6853_v52 = vld [vmem:[%s11088_s9 + $0xe8] sm:$0xff] }
 0x7bd   : > { %7592 = vmatpush1.bf16.msra.mxu1 %v7561_v50  ;;  %5265 = vmatprep.mubr.f32.mxu1 %v8243_v7  ;;  %v7622_v50 = vpack.c.bf16 %v5319_v46, %v5318_v43  ;;  %v7688_v46 = vpack.c.bf16 %v5555_v30, %v5554_v27  ;;  %v6851_v27 = vld [vmem:[%s11088_s9 + $0xd8] sm:$0xff]  ;;  %v6863_v30 = vld [vmem:[%s11088_s9 + $0x130] sm:$0xff] }
 0x7be   : > { %7594 = vmatprep.subr.bf16.mxu1 %v7563_v15 }
 0x7c1   : > { %7596 = vmatpush1.bf16.msra.mxu1 %v7565_v1 }
 0x7c2   : > { %7599 = vmatprep.subr.msk.bf16.mxu1 %vm9398_vm4, %v7567_v45 }
 0x7c5   : > { %7602 = vmatpush1.bf16.msk.msra.mxu1 %vm9398_vm4, %v7570_v32 }
 0x7c6   : > { %7603 = vmatprep.subr.bf16.mxu1 %v8245_v9 }
 0x7c8   : > { %6797 = vmatmul.mubr.msk.f32.vlgmr.msra.gmra.mrb[150].mxu1 %vm5063_vm7, %v6790_v2  ;;  %v6835_v2 = vld [vmem:[%s11088_s9 + $0x68] sm:$0xff] }
 0x7c9   : > { %5271 = vmatprep.mubr.f32.mxu1 %v8243_v7  ;;  %7605 = vmatpush1.bf16.msra.mxu1 %v7604_v31  ;;  %v7667_v58 = vpack.c.bf16 %v6835_v2, %v6834_v0 }
 0x7ca   : > { %7606 = vmatprep.subr.bf16.mxu1 %v8245_v9 }
 0x7cc   : > { %6798 = vmatmul.mubr.msk.f32.gmra.mrb[152].mxu1 %vm5063_vm7, %v6791_v36 }
 0x7cd   : > { %5277 = vmatprep.mubr.f32.mxu1 %v8243_v7  ;;  %7608 = vmatpush1.bf16.msra.mxu1 %v7607_v16  ;;  %v7682_v16 = vpack.c.bf16 %v5551_v35, %v5550_v18  ;;  %v6860_v18 = vld [vmem:[%s11088_s9 + $0x118] sm:$0xff] }
 0x7ce   : > { %7609 = vmatprep.subr.bf16.mxu1 %v8245_v9 }
 0x7d0   : > { %6799 = vmatmul.mubr.msk.f32.gmra.mrb[154].mxu1 %vm5063_vm7, %v6792_v37  ;;  %v5553_v37 = vld [vmem:[%s11088_s9 + $0x28] sm:$0xff] }
 0x7d1   : > { %5283 = vmatprep.mubr.f32.mxu1 %v8243_v7  ;;  %7611 = vmatpush1.bf16.msra.mxu1 %v7610_v60  ;;  %v6836_v60 = vld [vmem:[%s11088_s9 + $0x70] sm:$0xff] }
 0x7d2   : > { %7612 = vmatprep.subr.bf16.mxu1 %v8245_v9 }
 0x7d4   : > { %6800 = vmatmul.mubr.msk.f32.gmra.mrb[156].mxu1 %vm5063_vm7, %v6793_v39  ;;  %v6837_v39 = vld [vmem:[%s11088_s9 + $0x78] sm:$0xff] }
 0x7d5   : > { %5289 = vmatprep.mubr.f32.mxu1 %v8243_v7  ;;  %7614 = vmatpush1.bf16.msra.mxu1 %v7613_v13  ;;  %v7685_v13 = vpack.c.bf16 %v5553_v37, %v5552_v3  ;;  %v7670_v38 = vpack.c.bf16 %v6837_v39, %v6836_v60  ;;  %v6861_v3 = vld [vmem:[%s11088_s9 + $0x120] sm:$0xff]  ;;  %v6862_v37 = vld [vmem:[%s11088_s9 + $0x128] sm:$0xff] }
 0x7d6   : > { %7615 = vmatprep.subr.bf16.mxu1 %v8245_v9 }
 0x7d8   : > { %6801 = vmatmul.mubr.msk.f32.gmra.mrb[158].mxu1 %vm5063_vm7, %v6794_v23 }
 0x7d9   : > { %7617 = vmatpush1.bf16.msra.mxu1 %v7616_v56  ;;  %v6839_v56 = vld [vmem:[%s11088_s9 + $0x88] sm:$0xff] }
 0x7da   : > { %7618 = vmatprep.subr.bf16.mxu1 %v8245_v9 }
 0x7dd   : > { %7620 = vmatpush1.bf16.msra.mxu1 %v7619_v17 }
 0x7de   : > { %7621 = vmatprep.subr.bf16.mxu1 %v8245_v9 }
 0x7e1   : > { %7623 = vmatpush1.bf16.msra.mxu1 %v7622_v50  ;;  %v7673_v50 = vpack.c.bf16 %v6839_v56, %v6838_v5  ;;  %v6864_v5 = vld [vmem:[%s11088_s9 + $0x138] sm:$0xff] }
 0x7e2   : > { %7624 = vmatprep.subr.bf16.mxu1 %v8245_v9 }
 0x7e5   : > { %7626 = vmatpush1.bf16.msra.mxu1 %v7625_v22 }
 0x7e6   : > { %7627 = vmatprep.subr.bf16.mxu1 %v8245_v9 }
 0x7e9   : > { %7629 = vmatpush1.bf16.msra.mxu1 %v7628_v33  ;;  %v6841_v33 = vld [vmem:[%s11088_s9 + $0x98] sm:$0xff] }
 0x7ea   : > { %7630 = vmatprep.subr.bf16.mxu1 %v8245_v9  ;;  %v7676_v42 = vpack.c.bf16 %v6841_v33, %v6840_v29  ;;  %v6869_v29 = vld [vmem:[%s11088_s9 + $0x158] sm:$0xff] }
 0x7ed   : > { %7632 = vmatpush1.bf16.msra.mxu1 %v7631_v12  ;;  %v6856_v12 = vld [vmem:[%s11088_s9 + $0xf8] sm:$0xff] }
 0x7ee   : > { %7663 = vmatprep.subr.bf16.mxu1 %v8245_v9 }
 0x87f   : > { %v5151_v26 = vpop.f32.mrb[140].mxu1 }
 0x880   : > { %v5153_v1 = vpop.f32.mrb[141].mxu1 }
 0x883   : > { %v5157_v10 = vpop.f32.mrb[142].mxu1 }
 0x884   : > { %v5159_v15 = vpop.f32.mrb[143].mxu1 }
 0x887   : > { %v5163_v20 = vpop.f32.mrb[144].mxu1 }
 0x888   : > { %v5165_v44 = vpop.f32.mrb[145].mxu1 }
 0x88b   : > { %v5169_v53 = vpop.f32.mrb[146].mxu1 }
 0x88c   : > { %v5171_v34 = vpop.f32.mrb[147].mxu1 }
 0x88f   : > { %v10737_v48 = vpop.f32.mrb[148].mxu1 }
 0x890   : > { %v10739_v49 = vpop.f32.mrb[149].mxu1 }
 0x89b   : > { %v5267_v32 = vpop.f32.mrb[150].mxu1 }
 0x89c   : > { %v5296_v45 = vmax.f32 %v5151_v26, %v5267_v32  ;;  %v5269_v4 = vpop.f32.mrb[151].mxu1  ;;  %v6846_v32 = vld [vmem:[%s11088_s9 + $0xb0] sm:$0xff] }
 0x89d   : > { %v5297_v55 = vmax.f32 %v5153_v1, %v5269_v4 }
 0x89f   : > { %v5273_v31 = vpop.f32.mrb[152].mxu1  ;;  %6802 = vmatprep.mubr.msk.f32.mxu1 %vm5326_vm8, %v5297_v55  ;;  %6827 = vmatprep.mubr.msk.f32.mxu0 %vm5326_vm8, %v5297_v55 }
 0x8a0   : > { %v5298_v47 = vmax.f32 %v5157_v10, %v5273_v31  ;;  %v5275_v62 = vpop.f32.mrb[153].mxu1  ;;  %5407 = vmatmul.mubr.f32.vlgmr.msra.gmra.mrb[160].mxu1 %v5296_v45  ;;  %5518 = vmatmul.mubr.f32.vlgmr.msra.gmra.mrb[64].mxu0 %v5296_v45  ;;  %v7709_v10 = vpack.c.bf16 %v6856_v12, %v6855_v51  ;;  %v6871_v51 = vld [vmem:[%s11088_s9 + $0x168] sm:$0xff] }
 0x8a1   : > { %v5299_v36 = vmax.f32 %v5159_v15, %v5275_v62  ;;  %7680 = vmatpush3.bf16.msra.mxu0 %v7679_v40  ;;  %7665 = vmatpush3.bf16.msra.mxu1 %v7664_v8  ;;  %v6844_v15 = vld [vmem:[%s11088_s9 + $0xa0] sm:$0xff]  ;;  %v6847_v40 = vld [vmem:[%s11088_s9 + $0xb8] sm:$0xff]  ;;  %v6859_v8 = vld [vmem:[%s11088_s9 + $0x110] sm:$0xff] }
 0x8a2   : > { %7681 = vmatprep.subr.bf16.mxu0 %v8245_v9  ;;  %7666 = vmatprep.subr.bf16.mxu1 %v8245_v9  ;;  %v7697_v2 = vpack.c.bf16 %v6847_v40, %v6846_v32  ;;  %v7715_v31 = vpack.c.bf16 %v6860_v18, %v6859_v8  ;;  %v5988_v40 = vld [vmem:[%s11090_s11 + $0x40] sm:$0xff]  ;;  %v5989_v8 = vld [vmem:[%s11090_s11 + $0x48] sm:$0xff] }
 0x8a3   : > { %v5279_v23 = vpop.f32.mrb[154].mxu1  ;;  %6803 = vmatprep.mubr.msk.f32.mxu1 %vm5326_vm8, %v5299_v36  ;;  %6828 = vmatprep.mubr.msk.f32.mxu0 %vm5326_vm8, %v5299_v36  ;;  %v7751_v18 = vpack.c.bf16 %v5989_v8, %v5988_v40 }
 0x8a4   : > { %v5300_v57 = vmax.f32 %v5163_v20, %v5279_v23  ;;  %v5281_v25 = vpop.f32.mrb[155].mxu1  ;;  %5412 = vmatmul.mubr.f32.gmra.mrb[162].mxu1 %v5298_v47  ;;  %5523 = vmatmul.mubr.f32.gmra.mrb[66].mxu0 %v5298_v47  ;;  %v6848_v47 = vld [vmem:[%s11088_s9 + $0xc0] sm:$0xff] }
 0x8a5   : > { %v5301_v28 = vmax.f32 %v5165_v44, %v5281_v25  ;;  %7683 = vmatpush3.bf16.msra.mxu0 %v7682_v16  ;;  %7668 = vmatpush3.bf16.msra.mxu1 %v7667_v58  ;;  %v6849_v58 = vld [vmem:[%s11088_s9 + $0xc8] sm:$0xff]  ;;  %v6850_v25 = vld [vmem:[%s11088_s9 + $0xd0] sm:$0xff] }
 0x8a6   : > { %7684 = vmatprep.subr.bf16.mxu0 %v8245_v9  ;;  %7669 = vmatprep.subr.bf16.mxu1 %v8245_v9  ;;  %v7700_v23 = vpack.c.bf16 %v6849_v58, %v6848_v47  ;;  %v5993_v47 = vld [vmem:[%s11090_s11 + $0x68] sm:$0xff] }
 0x8a7   : > { %v5285_v6 = vpop.f32.mrb[156].mxu1  ;;  %6804 = vmatprep.mubr.msk.f32.mxu1 %vm5326_vm8, %v5301_v28  ;;  %6829 = vmatprep.mubr.msk.f32.mxu0 %vm5326_vm8, %v5301_v28  ;;  %v6078_v58 = vld [vmem:[%s11092_s13 + $0x8] sm:$0xff] }
 0x8a8   : > { %v5302_v59 = vmax.f32 %v5169_v53, %v5285_v6  ;;  %v5287_v17 = vpop.f32.mrb[157].mxu1  ;;  %5417 = vmatmul.mubr.f32.gmra.mrb[164].mxu1 %v5300_v57  ;;  %5528 = vmatmul.mubr.f32.gmra.mrb[68].mxu0 %v5300_v57  ;;  %v7718_v57 = vpack.c.bf16 %v6862_v37, %v6861_v3  ;;  %v6079_v3 = vld [vmem:[%s11092_s13 + $0x10] sm:$0xff] }
 0x8a9   : > { %v5303_v43 = vmax.f32 %v5171_v34, %v5287_v17  ;;  %7686 = vmatpush3.bf16.msra.mxu0 %v7685_v13  ;;  %7671 = vmatpush3.bf16.msra.mxu1 %v7670_v38  ;;  %v6845_v34 = vld [vmem:[%s11088_s9 + $0xa8] sm:$0xff]  ;;  %v7721_v17 = vpack.c.bf16 %v6864_v5, %v6863_v30 }
 0x8aa   : > { %7687 = vmatprep.subr.bf16.mxu0 %v8245_v9  ;;  %7672 = vmatprep.subr.bf16.mxu1 %v8245_v9  ;;  %v7694_v63 = vpack.c.bf16 %v6845_v34, %v6844_v15  ;;  %v6874_v15 = vld [vmem:[%s11088_s9 + $0x180] sm:$0xff]  ;;  %v5981_v34 = vld [vmem:[%s11090_s11 + $0x8] sm:$0xff] }
 0x8ab   : > { %v5291_v54 = vpop.f32.mrb[158].mxu1  ;;  %6805 = vmatprep.mubr.msk.f32.mxu1 %vm5326_vm8, %v5303_v43  ;;  %6830 = vmatprep.mubr.msk.f32.mxu0 %vm5326_vm8, %v5303_v43 }
 0x8ac   : > { %v5304_v41 = vmax.f32 %v10737_v48, %v5291_v54  ;;  %v5293_v21 = vpop.f32.mrb[159].mxu1  ;;  %5422 = vmatmul.mubr.f32.gmra.mrb[166].mxu1 %v5302_v59  ;;  %5533 = vmatmul.mubr.f32.gmra.mrb[70].mxu0 %v5302_v59  ;;  %v6857_v48 = vld [vmem:[%s11088_s9 + $0x100] sm:$0xff]  ;;  %v7703_v59 = vpack.c.bf16 %v6851_v27, %v6850_v25  ;;  %v7706_v54 = vpack.c.bf16 %v6853_v52, %v6852_v11  ;;  %v6082_v52 = vld [vmem:[%s11092_s13 + $0x28] sm:$0xff] }
 0x8ad   : > { %v5305_v22 = vmax.f32 %v10739_v49, %v5293_v21  ;;  %7689 = vmatpush3.bf16.msra.mxu0 %v7688_v46  ;;  %7674 = vmatpush3.bf16.msra.mxu1 %v7673_v50  ;;  %v6858_v49 = vld [vmem:[%s11088_s9 + $0x108] sm:$0xff]  ;;  %v6081_v11 = vld [vmem:[%s11092_s13 + $0x20] sm:$0xff] }
 0x8ae   : > { %7690 = vmatprep.subr.bf16.mxu0 %v8245_v9  ;;  %7675 = vmatprep.subr.bf16.mxu1 %v8245_v9  ;;  %v7712_v14 = vpack.c.bf16 %v6858_v49, %v6857_v48  ;;  %v6867_v21 = vld [vmem:[%s11088_s9 + $0x148] sm:$0xff]  ;;  %v5982_v49 = vld [vmem:[%s11090_s11 + $0x10] sm:$0xff] }
 0x8af   : > { %6806 = vmatprep.mubr.msk.f32.mxu1 %vm5326_vm8, %v5305_v22  ;;  %6831 = vmatprep.mubr.msk.f32.mxu0 %vm5326_vm8, %v5305_v22 }
 0x8b0   : > { %5427 = vmatmul.mubr.f32.gmra.mrb[168].mxu1 %v5304_v41  ;;  %5538 = vmatmul.mubr.f32.gmra.mrb[72].mxu0 %v5304_v41  ;;  %v6866_v41 = vld [vmem:[%s11088_s9 + $0x140] sm:$0xff] }
 0x8b1   : > { %7692 = vmatpush3.bf16.msra.mxu0 %v7691_v24  ;;  %7009 = vmatprep.mubr.msk.f32.mxu0 %vm8246_vm9, %v8243_v7  ;;  %v7724_v22 = vpack.c.bf16 %v6867_v21, %v6866_v41  ;;  %v6868_v24 = vld [vmem:[%s11088_s9 + $0x150] sm:$0xff]  ;;  %v6878_v21 = vld [vmem:[%s11091_s12] ss:$0 sm:$0xff] }
 0x8b2   : > { %7708 = vmatprep.subr.bf16.mxu0 %v8245_v9  ;;  %6986 = vmatprep.mubr.msk.f32.mxu1 %vm8246_vm9, %v8243_v7  ;;  %v7727_v33 = vpack.c.bf16 %v6869_v29, %v6868_v24  ;;  %v6083_v41 = vld [vmem:[%s11092_s13 + $0x30] sm:$0x3] }
 0x8b3   : > { %7677 = vmatpush3.bf16.msra.mxu1 %v7676_v42  ;;  %v6870_v42 = vld [vmem:[%s11088_s9 + $0x160] sm:$0xff] }
 0x8b4   : > { %7693 = vmatprep.subr.bf16.mxu1 %v8245_v9  ;;  %v7730_v12 = vpack.c.bf16 %v6871_v51, %v6870_v42 }
 0x973   : > { %v5408_v26 = vpop.f32.mrb[160].mxu1  ;;  %v5519_v1 = vpop.f32.mrb[64].mxu0 }
 0x974   : > { %v5543_v20 = vmax.f32 %v5408_v26, %v5519_v1  ;;  %v5410_v44 = vpop.f32.mrb[161].mxu1  ;;  %v5521_v53 = vpop.f32.mrb[65].mxu0  ;;  %v6872_v26 = vld [vmem:[%s11088_s9 + $0x170] sm:$0xff]  ;;  %v6873_v1 = vld [vmem:[%s11088_s9 + $0x178] sm:$0xff] }
 0x975   : > { %v5980_v53 = vld [vmem:[%s11090_s11] sm:$0xff] }
 0x976   : > { %7010 = vmatmul.mubr.msk.f32.vlgmr.msra.gmra.mrb[74].mxu0 %vm5569_vm10, %v5543_v20  ;;  %v6875_v20 = vld [vmem:[%s11088_s9 + $0x188] sm:$0xff]  ;;  %v7739_v48 = vpack.c.bf16 %v5981_v34, %v5980_v53 }
 0x977   : > { %7710 = vmatpush3.bf16.msra.mxu0 %v7709_v10  ;;  %v5413_v19 = vpop.f32.mrb[162].mxu1  ;;  %v5524_v61 = vpop.f32.mrb[66].mxu0  ;;  %7055 = vmatprep.mubr.msk.f32.mxu0 %vm8246_vm9, %v8243_v7  ;;  %v7733_v10 = vpack.c.bf16 %v6873_v1, %v6872_v26  ;;  %v7736_v44 = vpack.c.bf16 %v6875_v20, %v6874_v15 }
 0x978   : > { %v5544_v45 = vmax.f32 %v5413_v19, %v5524_v61  ;;  %v5415_v4 = vpop.f32.mrb[163].mxu1  ;;  %v5526_v55 = vpop.f32.mrb[67].mxu0  ;;  %7711 = vmatprep.subr.bf16.mxu0 %v8245_v9  ;;  %v5983_v19 = vld [vmem:[%s11090_s11 + $0x18] sm:$0xff] }
 0x979   : > { %v7742_v61 = vpack.c.bf16 %v5983_v19, %v5982_v49  ;;  %v5987_v4 = vld [vmem:[%s11090_s11 + $0x38] sm:$0xff] }
 0x97a   : > { %6987 = vmatmul.mubr.msk.f32.vlgmr.msra.gmra.mrb[170].mxu1 %vm5569_vm10, %v5544_v45  ;;  %v5986_v45 = vld [vmem:[%s11090_s11 + $0x30] sm:$0xff] }
 0x97b   : > { %7695 = vmatpush3.bf16.msra.mxu1 %v7694_v63  ;;  %7713 = vmatpush3.bf16.msra.mxu0 %v7712_v14  ;;  %v5418_v35 = vpop.f32.mrb[164].mxu1  ;;  %v5529_v0 = vpop.f32.mrb[68].mxu0  ;;  %v5984_v63 = vld [vmem:[%s11090_s11 + $0x20] sm:$0xff]  ;;  %v5985_v14 = vld [vmem:[%s11090_s11 + $0x28] sm:$0xff]  ;;  %v7748_v55 = vpack.c.bf16 %v5987_v4, %v5986_v45 }
 0x97c   : > { %v5545_v62 = vmax.f32 %v5418_v35, %v5529_v0  ;;  %v5420_v36 = vpop.f32.mrb[165].mxu1  ;;  %v5531_v16 = vpop.f32.mrb[69].mxu0  ;;  %7696 = vmatprep.subr.bf16.mxu1 %v8245_v9  ;;  %7714 = vmatprep.subr.bf16.mxu0 %v8245_v9  ;;  %v7745_v32 = vpack.c.bf16 %v5985_v14, %v5984_v63  ;;  %v5990_v35 = vld [vmem:[%s11090_s11 + $0x50] sm:$0xff]  ;;  %v5991_v0 = vld [vmem:[%s11090_s11 + $0x58] sm:$0xff] }
 0x97d   : > { %7032 = vmatprep.mubr.msk.f32.mxu1 %vm8246_vm9, %v8243_v7  ;;  %v5994_v36 = vld [vmem:[%s11090_s11 + $0x70] sm:$0xff]  ;;  %v6077_v16 = vld [vmem:[%s11092_s13] sm:$0xff] }
 0x97e   : > { %v7760_v37 = vpack.c.bf16 %v6078_v58, %v6077_v16 }
 0x97f   : > { %7698 = vmatpush3.bf16.msra.mxu1 %v7697_v2  ;;  %7716 = vmatpush3.bf16.msra.mxu0 %v7715_v31  ;;  %v5423_v60 = vpop.f32.mrb[166].mxu1  ;;  %v5534_v39 = vpop.f32.mrb[70].mxu0  ;;  %v7754_v2 = vpack.c.bf16 %v5991_v0, %v5990_v35  ;;  %v5992_v31 = vld [vmem:[%s11090_s11 + $0x60] sm:$0xff] }
 0x980   : > { %v5546_v28 = vmax.f32 %v5423_v60, %v5534_v39  ;;  %v5425_v13 = vpop.f32.mrb[167].mxu1  ;;  %v5536_v38 = vpop.f32.mrb[71].mxu0  ;;  %7699 = vmatprep.subr.bf16.mxu1 %v8245_v9  ;;  %7717 = vmatprep.subr.bf16.mxu0 %v8245_v9  ;;  %v6080_v60 = vld [vmem:[%s11092_s13 + $0x18] sm:$0xff] }
 0x981   : > { %v7763_v39 = vpack.c.bf16 %v6080_v60, %v6079_v3 }
 0x983   : > { %7701 = vmatpush3.bf16.msra.mxu1 %v7700_v23  ;;  %7719 = vmatpush3.bf16.msra.mxu0 %v7718_v57  ;;  %v5428_v56 = vpop.f32.mrb[168].mxu1  ;;  %v5539_v6 = vpop.f32.mrb[72].mxu0 }
 0x984   : > { %v5547_v43 = vmax.f32 %v5428_v56, %v5539_v6  ;;  %v5430_v46 = vpop.f32.mrb[169].mxu1  ;;  %v5541_v50 = vpop.f32.mrb[73].mxu0  ;;  %7702 = vmatprep.subr.bf16.mxu1 %v8245_v9  ;;  %7720 = vmatprep.subr.bf16.mxu0 %v8245_v9 }
 0x987   : > { %7704 = vmatpush3.bf16.msra.mxu1 %v7703_v59  ;;  %7722 = vmatpush3.bf16.msra.mxu0 %v7721_v17  ;;  %v6877_v17 = vld [vmem:[%s11089_s10] ss:$0 sm:$0xff] }
 0x988   : > { %7705 = vmatprep.subr.bf16.mxu1 %v8245_v9  ;;  %7738 = vmatprep.subr.bf16.mxu0 %v8245_v9 }
 0x98a   : > { %7056 = vmatmul.mubr.msk.f32.vlgmr.msra.gmra.mrb[76].mxu0 %vm5569_vm10, %v5546_v28 }
 0x98b   : > { %7707 = vmatpush3.bf16.msra.mxu1 %v7706_v54  ;;  %7111 = vmatprep.mubr.msk.f32.mxu0 %vm8246_vm9, %v8243_v7  ;;  %v7766_v54 = vpack.c.bf16 %v6082_v52, %v6081_v11 }
 0x98c   : > { %7723 = vmatprep.subr.bf16.mxu1 %v8245_v9  ;;  %7740 = vmatpush3.bf16.msra.mxu0 %v7739_v48 }
 0x98d   : > { %7741 = vmatprep.subr.bf16.mxu0 %v8245_v9 }
 0x98e   : > { %7033 = vmatmul.mubr.msk.f32.vlgmr.msra.gmra.mrb[172].mxu1 %vm5569_vm10, %v5545_v62  ;;  %v7757_v62 = vpack.c.bf16 %v5993_v47, %v5992_v31 }
 0x98f   : > { %7725 = vmatpush3.bf16.msra.mxu1 %v7724_v22  ;;  %7078 = vmatprep.mubr.msk.f32.mxu1 %vm8246_vm9, %v8243_v7 }
 0x990   : > { %7726 = vmatprep.subr.bf16.mxu1 %v8245_v9  ;;  %7743 = vmatpush3.bf16.msra.mxu0 %v7742_v61 }
 0x991   : > { %7744 = vmatprep.subr.bf16.mxu0 %v8245_v9 }
 0x993   : > { %7728 = vmatpush3.bf16.msra.mxu1 %v7727_v33 }
 0x994   : > { %7729 = vmatprep.subr.bf16.mxu1 %v8245_v9  ;;  %7746 = vmatpush3.bf16.msra.mxu0 %v7745_v32 }
 0x995   : > { %7747 = vmatprep.subr.bf16.mxu0 %v8245_v9 }
 0x997   : > { %7731 = vmatpush3.bf16.msra.mxu1 %v7730_v12 }
 0x998   : > { %7732 = vmatprep.subr.bf16.mxu1 %v8245_v9  ;;  %7749 = vmatpush3.bf16.msra.mxu0 %v7748_v55 }
 0x999   : > { %7750 = vmatprep.subr.bf16.mxu0 %v8245_v9 }
 0x99b   : > { %7734 = vmatpush3.bf16.msra.mxu1 %v7733_v10 }
 0x99c   : > { %7735 = vmatprep.subr.bf16.mxu1 %v8245_v9  ;;  %7752 = vmatpush3.bf16.msra.mxu0 %v7751_v18 }
 0x99d   : > { %7753 = vmatprep.subr.bf16.mxu0 %v8245_v9 }
 0x99f   : > { %7737 = vmatpush3.bf16.msra.mxu1 %v7736_v44 }
 0x9a0   : > { %7759 = vmatprep.subr.bf16.mxu1 %v8245_v9  ;;  %7755 = vmatpush3.bf16.msra.mxu0 %v7754_v2 }
 0x9a1   : > { %7756 = vmatprep.subr.bf16.mxu0 %v8245_v9 }
 0x9a2   : > { %7079 = vmatmul.mubr.msk.f32.vlgmr.msra.gmra.mrb[174].mxu1 %vm5569_vm10, %v5547_v43 }
 0x9a3   : > { %7128 = vmatprep.mubr.msk.f32.mxu1 %vm8246_vm9, %v8243_v7  ;;  %7761 = vmatpush3.bf16.msra.mxu1 %v7760_v37 }
 0x9a4   : > { %7758 = vmatpush3.bf16.msra.mxu0 %v7757_v62  ;;  %7762 = vmatprep.subr.bf16.mxu1 %v8245_v9 }
 0x9a5   : > { %7109 = vmatprep.subr.mxu0 %v8243_v7 }
 0x9a7   : > { %7764 = vmatpush3.bf16.msra.mxu1 %v7763_v39 }
 0x9a8   : > { %7110 = vmatpush3.msra.mxu0 %v5994_v36  ;;  %7765 = vmatprep.subr.bf16.mxu1 %v8245_v9 }
 0x9ab   : > { %7767 = vmatpush3.bf16.msra.mxu1 %v7766_v54 }
 0x9ac   : > { %7126 = vmatprep.subr.mxu1 %v8243_v7  ;;  %v6880_v7 = vld [vmem:[%s11093_s14] ss:$0 sm:$0xff] }
 0x9af   : > { %7127 = vmatpush3.msk.msra.mxu1 %vm6095_vm12, %v6083_v41 }
 0xa49   : > { %v5712_v23 = vpop.f32.mrb[74].mxu0 }
 0xa4a   : > { %v7011_v57 = vpop.f32.mrb[75].mxu0 }
 0xa4d   : > { %v5639_v25 = vpop.f32.mrb[170].mxu1 }
 0xa4e   : > { %v5713_v28 = vadd.f32 %v5712_v23, %v5639_v25  ;;  %v6988_v13 = vpop.f32.mrb[171].mxu1 }
 0xa5d   : > { %v5881_v38 = vpop.f32.mrb[76].mxu0 }
 0xa5e   : > { %v7057_v27 = vpop.f32.mrb[77].mxu0 }
 0xa61   : > { %v5796_v30 = vpop.f32.mrb[172].mxu1 }
 0xa62   : > { %v5800_v5 = vadd.f32 %v5796_v30, %v5713_v28  ;;  %v7034_v56 = vpop.f32.mrb[173].mxu1 }
 0xa64   : > { %v5885_v6 = vadd.f32 %v5881_v38, %v5800_v5 }
 0xa75   : > { %v5966_v59 = vpop.f32.mrb[174].mxu1 }
 0xa76   : > { %v5970_v43 = vadd.f32 %v5966_v59, %v5885_v6  ;;  %v7080_v46 = vpop.f32.mrb[175].mxu1 }
 0xa78   : > { %v5978_v50 = vadd.f32 %v6877_v17, %v5970_v43 }
 0xa7a   : > { %v5979_v9 = vmax.f32 %v5978_v50, 0.0 }
 0xa7c   : > { %7112 = vmatmul.mubr.msk.f32.vlgmr.msra.gmra.mrb[78].mxu0 %vm6002_vm11, %v5979_v9 }
 0xb4f   : > { %v6072_v22 = vpop.f32.mrb[78].mxu0 }
 0xb50   : > { %v6073_v24 = vadd.f32 %v6878_v21, %v6072_v22  ;;  %v7113_v29 = vpop.f32.mrb[79].mxu0 }
 0xb52   : > { %v6076_v33 = vmax.f32 %v6073_v24, 0.0 }
 0xb54   : > { %7129 = vmatmul.mubr.msk.f32.vlgmr.msra.gmra.mrb[176].mxu1 %vm6091_vm13, %v6076_v33 }
 0xc27   : > { %v6165_v42 = vpop.f32.mrb[176].mxu1 }
 0xc28   : > { %v6166_v51 = vadd.f32 %v6880_v7, %v6165_v42  ;;  %v7130_v12 = vpop.f32.mrb[177].mxu1 }
 0xc2a   : > { %6169 = vst [vmem:[%s488_s27] sm:$0xff] %v6166_v51 }
 0xc2b   : > { %8192 = shalt.err (!%p8189_p3)
}
 0xc2c   : > { %s8193_s21 = scalar_lea.hbm %s11037_s25, 128  ;;  %s8197_s27 = scalar_lea.hbm %s11094_s15, 256 }
 0xc2d   : > { %p8194_p4 = scmp.ne.s32.totalorder %s11037_s25, %s8193_s21  ;;  %p8198_p9 = scmp.lt.u32.totalorder %s11037_s25, %s11094_s15 }
 0xc2e   : > { %p8199_p10 = scmp.lt.u32.totalorder %s8197_s27, %s8193_s21  ;;  %p8201_p12 = scmp.lt.u32.totalorder %s8193_s21, %s11037_s25 }
 0xc2f   : > { %p8195_p7 = pnand %p8194_p4, %p8366_p5 }
 0xc30   : > { %p8200_p11 = por %p8199_p10, %p8198_p9 }
 0xc31   : > { %p8196_p8 = pneg %p8195_p7 }
 0xc32   : > { %p8202_p13 = por %p8201_p12, %p8200_p11 }
 0xc34   : > { %p8203_p0 = pnand %p8202_p13, %p8196_p8 }
 0xc36   : > { %8206 = shalt.err (!%p8203_p0)
}
 0xc37   : > { %8136 = dma.vmem_to_hbm [thread:$0]  (%p8366_p5), %s11039_s17, 128, %s11037_s25, %s6171_s26  }
 0xc38 PF: > { %s11111_s30 = sld [smem:[#allocation8_spill]]  ;;  %s11112_s22 = sld [smem:[#allocation6_spill]] }
 0xc3e   : > { %p8142_p1 = scmp.ge.s32.totalorder %s11111_s30, 2  ;;  %s6196_s16 = sand.u32 1, %s11112_s22  }
 0xc3f   : > { %s6197_s20 = scalar_lea.sflag [#allocation4], %s6196_s16 }
 0xc40   : > { %p8139_p2 = pnand %p8142_p1, %p8370_p6 }
 0xc42   : > { %8224 = dma.done.wait (!%p8139_p2), %s6197_s20, 128  }
 0xc43   : > { %8226 = vsyncadd (!%p8139_p2), %s6197_s20, 4294967168  ;;  %s11114_s21 = sld [smem:[#allocation9_spill]]  ;;  %s11115_s29 = sld [smem:[#allocation7_spill]] }
 0xc44   : > { %s11116_s20 = sld [smem:[#allocation10_spill]]  ;;  %s11117_s18 = smov %s8233_s19 }
 0xc49   : > { %p25_p3 = scmp.ge.s32.totalorder %s11114_s21, 4   ;;  %s11118_s19 = smov %s11115_s29 }
 0xc4b   :  { %27 = sbr.rel (!%p25_p3) target bundleno = 3 (0x3), region = 131 }
 0xc52   :  { %6202 = vsyncpa [#allocation4], 1 }
 0xc53   :  { %6204 = vsyncpa [#allocation4 + $0x1], 1 }

</bundles_post_ra>
